<compile_context>
chip_gen: v5e
topology: v5e:2x2
jax: 0.10.0
libtpu: 0.0.40
codegen_flags: <defaults>
</compile_context>

<pallas_src>
import jax
import jax.numpy as jnp
from jax import lax
from jax.experimental import pallas as pl
from jax.experimental.pallas import tpu as pltpu

LEAKY_SLOPE = 0.01   # nn.LeakyReLU default
BN_EPS = 1e-5        # nn.BatchNorm1d default


# ----------------------------------------------------------------------------
# Fused Pallas kernel: the whole GCNGRU forward in a single launch.
# ----------------------------------------------------------------------------
def _make_fused_kernel(input_n, output_n, batch, node_n, f_feature, hidden):
    B, N, F, H = batch, node_n, f_feature, hidden
    assert F == H, "hidden_feature == f_feature assumed (see header)"
    BF = B * F
    BH = B * H

    f32 = jnp.float32
    bf16 = jnp.bfloat16

    def mm(a, b):
        # bf16 MXU matmul with f32 accumulation (weights stored bf16; the
        # activation operand is truncated to bf16 right at the dot).
        return jnp.dot(a.astype(bf16), b.astype(bf16), preferred_element_type=f32)

    def kernel(x_ref,                                    # (N, Tin*B*3)   f32
               w1all_ref, w1d_ref, att1_ref,             # gc1 (enc batched / dec)
               bns_e_ref, bnb_e_ref,                     # folded BN (+b1), encoder tiling
               bns_d_ref, bnb_d_ref,                     # folded BN (+b1), decoder tiling
               wx_ref, wh_ref, attg_ref, bg_ref,         # GRU-style graph-conv blocks
               wd_ref, attd_ref, bd_ref,                 # decoder graph-convs
               aw1_ref, aw2_ref, ab_ref,                 # attention linear
               out_ref):                                 # (N, Tout*B*3)  f32

        # ---- hoisted invariant loads (reused across frames / blocks) ----
        att1 = att1_ref[...]
        w1d = w1d_ref[...]
        bns_e = bns_e_ref[...]
        bnb_e = bnb_e_ref[...]
        bns_d = bns_d_ref[...]
        bnb_d = bnb_d_ref[...]
        aw1 = aw1_ref[...]
        aw2 = aw2_ref[...]
        ab = ab_ref[...]

        def leaky(y):
            return jnp.where(y >= 0, y, LEAKY_SLOPE * y)

        def gc_block(blk, h, xz, xn):
            # GRU-style graph-conv cell (update gate + candidate, no reset).
            # xz / xn: precomputed att_{zx,nx} @ (x @ W_{zx,nx}) contributions.
            sh = mm(h, wh_ref[blk])                          # (N, 2*B*H)
            hz = mm(attg_ref[blk, 2], sh[:, :BH])            # (N, B*H)
            hn = mm(attg_ref[blk, 3], sh[:, BH:])            # (N, B*H)
            z = jax.nn.sigmoid(xz + hz + bg_ref[blk, 0])
            n = jnp.tanh(xn + hn + bg_ref[blk, 1])
            return (1.0 - z) * n + z * h

        # ========================= encoder =========================
        # gc1 + BatchNorm + LeakyReLU for ALL input frames in two matmuls
        # (frames & batch folded into the lane axis).  Dropout = identity.
        sup_all = mm(x_ref[...], w1all_ref[...])             # (N, Tin*B*F)
        f1_all = leaky(mm(att1, sup_all) * bns_e + bnb_e)    # (N, Tin*B*F)

        # x-path gate contributions are independent of the recurrent state:
        # keep them off the serial chain.
        enc_xz, enc_xn = [], []
        for i in range(input_n):
            f1_i = f1_all[:, i * BF:(i + 1) * BF]            # (N, B*F)
            sx = mm(f1_i, wx_ref[i])                         # (N, 2*B*H)
            enc_xz.append(mm(attg_ref[i, 0], sx[:, :BH]))
            enc_xn.append(mm(attg_ref[i, 1], sx[:, BH:]))

        # Serial GRU recurrence: 1 feature matmul + 2 att matmuls + EUP / step.
        g1 = None
        for i in range(input_n):
            f1_i = f1_all[:, i * BF:(i + 1) * BF]
            h_prev = f1_i if i == 0 else g1                  # gcbs[0](f1, f1)
            g1 = gc_block(i, h_prev, enc_xz[i], enc_xn[i])

        # ========================= decoder =========================
        out_frames = []
        for i in range(output_n):
            blk = input_n + i
            # decoder graph-conv (hidden -> 3)
            outF = mm(attd_ref[i], mm(g1, wd_ref[i])) + bd_ref[i]    # (N, B*3)
            out_frames.append(outF)
            # gc1 + BN + LeakyReLU on the decoded frame (dropout = identity)
            outF1 = leaky(mm(att1, mm(outF, w1d)) * bns_d + bnb_d)   # (N, B*F)

            # attention(q=g1, context=outF1): per-batch Luong attention with a
            # shared output linear applied in the batch-folded layout.
            mixes = []
            for b in range(B):
                qb = g1[:, b * F:(b + 1) * F]                # (N, F)
                cb = outF1[:, b * F:(b + 1) * F]             # (N, F)
                scores = lax.dot_general(                    # q @ c^T (contract feat)
                    qb, cb, (((1,), (1,)), ((), ())),
                    preferred_element_type=f32)              # (N, N)
                scores = scores - jnp.max(scores, axis=-1, keepdims=True)
                e = jnp.exp(scores)
                attn = e / jnp.sum(e, axis=-1, keepdims=True)   # exact divide
                mixes.append(mm(attn, cb))                   # (N, F)
            mix_all = jnp.concatenate(mixes, axis=1)         # (N, B*F)
            g1 = jnp.tanh(mm(mix_all, aw1) + mm(g1, aw2) + ab)

            # x-path of the decoder block depends on outF1 -> stays in loop.
            sx = mm(outF1, wx_ref[blk])                      # (N, 2*B*H)
            xz = mm(attg_ref[blk, 0], sx[:, :BH])
            xn = mm(attg_ref[blk, 1], sx[:, BH:])
            g1 = gc_block(blk, g1, xz, xn)

        # Single lane-dense store of all decoded frames.
        out_ref[...] = jnp.concatenate(out_frames, axis=1)   # (N, Tout*B*3)

    return kernel


# ----------------------------------------------------------------------------
# Parameter construction (deterministic, synthetic) — same scheme as before.
# ----------------------------------------------------------------------------
def _gc_params(key, in_f, out_f, node_n):
    k1, k2, k3 = jax.random.split(key, 3)
    stdv = 1.0 / jnp.sqrt(out_f)
    w = jax.random.uniform(k1, (in_f, out_f), jnp.float32, -stdv, stdv)
    att = jax.random.uniform(k2, (node_n, node_n), jnp.float32, -stdv, stdv)
    b = jax.random.uniform(k3, (out_f,), jnp.float32, -stdv, stdv)
    return (w, att, b)


def init_params(key, *, f_feature, hidden_feature, input_n, output_n, node_n):
    assert hidden_feature == f_feature, "assumed for shape-consistency (see header)"
    keys = jax.random.split(key, 8)
    params = {"input_n": input_n, "output_n": output_n}

    # gc1: GraphConvolution(3, f_feature)
    params["gc1"] = _gc_params(keys[0], 3, f_feature, node_n)

    # bn1: BatchNorm1d(node_n * f_feature) — PyTorch defaults (eval mode)
    params["bn1"] = (
        jnp.ones((node_n, f_feature), jnp.float32),    # gamma
        jnp.zeros((node_n, f_feature), jnp.float32),   # beta
        jnp.zeros((node_n, f_feature), jnp.float32),   # running_mean
        jnp.ones((node_n, f_feature), jnp.float32),    # running_var
    )

    # gcbs: (input_n + output_n) GRU-style graph-conv blocks
    gcbs = []
    bkeys = jax.random.split(keys[1], input_n + output_n)
    for bk in bkeys:
        k_zx, k_zh, k_nx, k_nh = jax.random.split(bk, 4)
        gcbs.append({
            "zx": _gc_params(k_zx, f_feature, hidden_feature, node_n),
            "zh": _gc_params(k_zh, hidden_feature, hidden_feature, node_n),
            "nx": _gc_params(k_nx, f_feature, hidden_feature, node_n),
            "nh": _gc_params(k_nh, hidden_feature, hidden_feature, node_n),
        })
    params["gcbs"] = gcbs

    # decoder: output_n x GraphConvolution(hidden, 3)
    dkeys = jax.random.split(keys[2], output_n)
    params["decoder"] = [_gc_params(dk, hidden_feature, 3, node_n) for dk in dkeys]

    # attention: Linear(2F -> F) split into two (F, F) halves + bias
    k_w1, k_w2, k_b = jax.random.split(keys[3], 3)
    stdv = 1.0 / jnp.sqrt(2 * f_feature)
    params["attention"] = (
        jax.random.uniform(k_w1, (f_feature, f_feature), jnp.float32, -stdv, stdv),
        jax.random.uniform(k_w2, (f_feature, f_feature), jnp.float32, -stdv, stdv),
        jax.random.uniform(k_b, (f_feature,), jnp.float32, -stdv, stdv),
    )
    return params


# ----------------------------------------------------------------------------
# One-time packing into the lane-folded kernel layout.
#   * activations: (N, B*F) — batch folded into lanes; att stays (N, N).
#   * per-batch feature weights: kron(I_B, W) (tiny), gate-concatenated.
#   * BN folded to per-(node,feature) scale/shift with the gc1 bias absorbed,
#     tiled to the encoder (N, Tin*B*F) and decoder (N, B*F) column layouts.
#   * z/n gate biases merged; all matmul operands cast to bf16.
# ----------------------------------------------------------------------------
def pack_params(params, batch):
    B = batch
    w1, att1, b1 = params["gc1"]
    N = att1.shape[0]
    F = w1.shape[1]
    Tin = params["input_n"]
    Tout = params["output_n"]

    gamma, beta, mean, var = params["bn1"]
    scale = gamma * jax.lax.rsqrt(var + BN_EPS)              # (N, F)
    shift = beta - mean * scale + b1[None, :] * scale        # gc1 bias folded in

    def bkron(w):                                            # per-batch block-diag
        return jnp.kron(jnp.eye(B, dtype=jnp.float32), w)

    bf16 = jnp.bfloat16
    packed = {
        "w1_all": jnp.kron(jnp.eye(Tin * B, dtype=jnp.float32), w1).astype(bf16),
        "w1_d": bkron(w1).astype(bf16),
        "att1": att1.astype(bf16),
        "bns_e": jnp.tile(scale, (1, Tin * B)),
        "bnb_e": jnp.tile(shift, (1, Tin * B)),
        "bns_d": jnp.tile(scale, (1, B)),
        "bnb_d": jnp.tile(shift, (1, B)),
    }

    wx, wh, attg, bg = [], [], [], []
    for blk in params["gcbs"]:
        w_zx, a_zx, b_zx = blk["zx"]
        w_zh, a_zh, b_zh = blk["zh"]
        w_nx, a_nx, b_nx = blk["nx"]
        w_nh, a_nh, b_nh = blk["nh"]
        wx.append(jnp.concatenate([bkron(w_zx), bkron(w_nx)], axis=1))  # (B*F, 2*B*H)
        wh.append(jnp.concatenate([bkron(w_zh), bkron(w_nh)], axis=1))  # (B*H, 2*B*H)
        attg.append(jnp.stack([a_zx, a_nx, a_zh, a_nh]))                # (4, N, N)
        bz = jnp.tile(b_zx + b_zh, B)[None, :]                          # (1, B*H)
        bn_ = jnp.tile(b_nx + b_nh, B)[None, :]                         # (1, B*H)
        bg.append(jnp.stack([bz, bn_]))                                 # (2, 1, B*H)
    packed["wx"] = jnp.stack(wx).astype(bf16)
    packed["wh"] = jnp.stack(wh).astype(bf16)
    packed["attg"] = jnp.stack(attg).astype(bf16)
    packed["bg"] = jnp.stack(bg)                                        # f32

    wd, attd, bd = [], [], []
    for (w, a, b) in params["decoder"]:
        wd.append(bkron(w))                                  # (B*H, B*3)
        attd.append(a)                                       # (N, N)
        bd.append(jnp.tile(b, B)[None, :])                   # (1, B*3)
    packed["wd"] = jnp.stack(wd).astype(bf16)
    packed["attd"] = jnp.stack(attd).astype(bf16)
    packed["bd"] = jnp.stack(bd)                             # f32

    aw1, aw2, ab = params["attention"]
    packed["aw1"] = bkron(aw1).astype(bf16)
    packed["aw2"] = bkron(aw2).astype(bf16)
    packed["ab"] = jnp.tile(ab, B)[None, :]                  # (1, B*F), f32

    packed["input_n"] = Tin
    packed["output_n"] = Tout
    packed["node_n"] = N
    packed["f_feature"] = F
    packed["hidden"] = params["gcbs"][0]["zh"][0].shape[0]
    packed["batch"] = B
    return packed


# ----------------------------------------------------------------------------
# Forward pass: one fused pallas_call, everything resident in VMEM.
# ----------------------------------------------------------------------------
def gcngru_forward(packed, x):
    B, N, T, C = x.shape
    Tin = packed["input_n"]
    Tout = packed["output_n"]
    F = packed["f_feature"]
    H = packed["hidden"]
    assert T == Tin and C == 3 and N == packed["node_n"] and B == packed["batch"]

    # (B, N, T, 3) -> (N, Tin*B*3): frames & batch folded into the lane axis
    # (column index = ((t*B)+b)*3 + c).
    x_cols = jnp.transpose(x, (1, 2, 0, 3)).reshape(N, Tin * B * 3)
    x_cols = x_cols.astype(jnp.float32)

    kernel = _make_fused_kernel(Tin, Tout, B, N, F, H)
    vmem = pl.BlockSpec(memory_space=pltpu.MemorySpace.VMEM)

    args = (x_cols,
            packed["w1_all"], packed["w1_d"], packed["att1"],
            packed["bns_e"], packed["bnb_e"], packed["bns_d"], packed["bnb_d"],
            packed["wx"], packed["wh"], packed["attg"], packed["bg"],
            packed["wd"], packed["attd"], packed["bd"],
            packed["aw1"], packed["aw2"], packed["ab"])

    out = pl.pallas_call(
        kernel,
        out_shape=jax.ShapeDtypeStruct((N, Tout * B * 3), jnp.float32),
        in_specs=[vmem] * len(args),
        out_specs=vmem,
    )(*args)

    # (N, Tout*B*3) -> (B, N, Tout, 3)
    return out.reshape(N, Tout, B, 3).transpose(2, 0, 1, 3)


# ----------------------------------------------------------------------------
if __name__ == "__main__":
    B, NODE_N, F_FEAT, HIDDEN = 2, 22, 16, 16
    INPUT_N, OUTPUT_N = 3, 3

    key = jax.random.PRNGKey(0)
    k_params, k_x = jax.random.split(key)

    params = init_params(
        k_params,
        f_feature=F_FEAT,
        hidden_feature=HIDDEN,
        input_n=INPUT_N,
        output_n=OUTPUT_N,
        node_n=NODE_N,
    )
    packed = pack_params(params, batch=B)

    x = jax.random.normal(k_x, (B, NODE_N, INPUT_N, 3), jnp.float32)

    out = gcngru_forward(packed, x)
    out = jax.block_until_ready(out)

    assert out.shape == (B, NODE_N, OUTPUT_N, 3), out.shape
    assert bool(jnp.all(jnp.isfinite(out)))
    print("KERNEL_OK")
</pallas_src>

<mosaic_0001>
module attributes {stable_mosaic.version = 11 : i64} {
  func.func @kernel(%arg0: memref<22x18xf32, #tpu.memory_space<vmem>>, %arg1: memref<18x96xbf16, #tpu.memory_space<vmem>>, %arg2: memref<6x32xbf16, #tpu.memory_space<vmem>>, %arg3: memref<22x22xbf16, #tpu.memory_space<vmem>>, %arg4: memref<22x96xf32, #tpu.memory_space<vmem>>, %arg5: memref<22x96xf32, #tpu.memory_space<vmem>>, %arg6: memref<22x32xf32, #tpu.memory_space<vmem>>, %arg7: memref<22x32xf32, #tpu.memory_space<vmem>>, %arg8: memref<6x32x64xbf16, #tpu.memory_space<vmem>>, %arg9: memref<6x32x64xbf16, #tpu.memory_space<vmem>>, %arg10: memref<6x4x22x22xbf16, #tpu.memory_space<vmem>>, %arg11: memref<6x2x1x32xf32, #tpu.memory_space<vmem>>, %arg12: memref<3x32x6xbf16, #tpu.memory_space<vmem>>, %arg13: memref<3x22x22xbf16, #tpu.memory_space<vmem>>, %arg14: memref<3x1x6xf32, #tpu.memory_space<vmem>>, %arg15: memref<32x32xbf16, #tpu.memory_space<vmem>>, %arg16: memref<32x32xbf16, #tpu.memory_space<vmem>>, %arg17: memref<1x32xf32, #tpu.memory_space<vmem>>, %arg18: memref<22x18xf32, #tpu.memory_space<vmem>>) attributes {dimension_semantics = [], scalar_prefetch = 0 : i64, scratch_operands = 0 : i64, tpu.core_type = #tpu.core_type<tc>} {
    %c0 = arith.constant 0 : index
    %c0_0 = arith.constant 0 : index
    %0 = vector.load %arg3[%c0, %c0_0] : memref<22x22xbf16, #tpu.memory_space<vmem>>, vector<22x22xbf16>
    %c0_1 = arith.constant 0 : index
    %c0_2 = arith.constant 0 : index
    %1 = vector.load %arg2[%c0_1, %c0_2] : memref<6x32xbf16, #tpu.memory_space<vmem>>, vector<6x32xbf16>
    %c0_3 = arith.constant 0 : index
    %c0_4 = arith.constant 0 : index
    %2 = vector.load %arg4[%c0_3, %c0_4] : memref<22x96xf32, #tpu.memory_space<vmem>>, vector<22x96xf32>
    %c0_5 = arith.constant 0 : index
    %c0_6 = arith.constant 0 : index
    %3 = vector.load %arg5[%c0_5, %c0_6] : memref<22x96xf32, #tpu.memory_space<vmem>>, vector<22x96xf32>
    %c0_7 = arith.constant 0 : index
    %c0_8 = arith.constant 0 : index
    %4 = vector.load %arg6[%c0_7, %c0_8] : memref<22x32xf32, #tpu.memory_space<vmem>>, vector<22x32xf32>
    %c0_9 = arith.constant 0 : index
    %c0_10 = arith.constant 0 : index
    %5 = vector.load %arg7[%c0_9, %c0_10] : memref<22x32xf32, #tpu.memory_space<vmem>>, vector<22x32xf32>
    %c0_11 = arith.constant 0 : index
    %c0_12 = arith.constant 0 : index
    %6 = vector.load %arg15[%c0_11, %c0_12] : memref<32x32xbf16, #tpu.memory_space<vmem>>, vector<32x32xbf16>
    %c0_13 = arith.constant 0 : index
    %c0_14 = arith.constant 0 : index
    %7 = vector.load %arg16[%c0_13, %c0_14] : memref<32x32xbf16, #tpu.memory_space<vmem>>, vector<32x32xbf16>
    %c0_15 = arith.constant 0 : index
    %c0_16 = arith.constant 0 : index
    %8 = vector.load %arg17[%c0_15, %c0_16] : memref<1x32xf32, #tpu.memory_space<vmem>>, vector<1x32xf32>
    %c0_17 = arith.constant 0 : index
    %c0_18 = arith.constant 0 : index
    %9 = vector.load %arg0[%c0_17, %c0_18] : memref<22x18xf32, #tpu.memory_space<vmem>>, vector<22x18xf32>
    %c0_19 = arith.constant 0 : index
    %c0_20 = arith.constant 0 : index
    %10 = vector.load %arg1[%c0_19, %c0_20] : memref<18x96xbf16, #tpu.memory_space<vmem>>, vector<18x96xbf16>
    %11 = arith.truncf %9 : vector<22x18xf32> to vector<22x18xbf16>
    %cst = arith.constant dense<0.000000e+00> : vector<22x96xf32>
    %12 = tpu.matmul %11, %10, %cst {dimension_numbers = #tpu.dot_dimension_numbers<[1], [0], [0], [1], [0, 0, 1, 1], [], []>} : vector<22x18xbf16>, vector<18x96xbf16>, vector<22x96xf32> -> vector<22x96xf32>
    %13 = arith.truncf %12 : vector<22x96xf32> to vector<22x96xbf16>
    %cst_21 = arith.constant dense<0.000000e+00> : vector<22x96xf32>
    %14 = tpu.matmul %0, %13, %cst_21 {dimension_numbers = #tpu.dot_dimension_numbers<[1], [0], [0], [1], [0, 0, 1, 1], [], []>} : vector<22x22xbf16>, vector<22x96xbf16>, vector<22x96xf32> -> vector<22x96xf32>
    %15 = arith.mulf %14, %2 : vector<22x96xf32>
    %16 = arith.addf %15, %3 : vector<22x96xf32>
    %cst_22 = arith.constant 0.000000e+00 : f32
    %17 = vector.broadcast %cst_22 : f32 to vector<22x96xf32>
    %18 = arith.cmpf oge, %16, %17 : vector<22x96xf32>
    %cst_23 = arith.constant 0.00999999977 : f32
    %19 = vector.broadcast %cst_23 : f32 to vector<22x96xf32>
    %20 = arith.mulf %19, %16 : vector<22x96xf32>
    %21 = arith.select %18, %16, %20 : vector<22x96xi1>, vector<22x96xf32>
    %22 = vector.extract_strided_slice %21 {offsets = [0, 0], sizes = [22, 32], strides = [1, 1]} : vector<22x96xf32> to vector<22x32xf32>
    %c0_24 = arith.constant 0 : index
    %c0_25 = arith.constant 0 : index
    %c0_26 = arith.constant 0 : index
    %23 = vector.load %arg8[%c0_24, %c0_25, %c0_26] : memref<6x32x64xbf16, #tpu.memory_space<vmem>>, vector<1x32x64xbf16>
    %24 = vector.shape_cast %23 : vector<1x32x64xbf16> to vector<32x64xbf16>
    %25 = arith.truncf %22 : vector<22x32xf32> to vector<22x32xbf16>
    %cst_27 = arith.constant dense<0.000000e+00> : vector<22x64xf32>
    %26 = tpu.matmul %25, %24, %cst_27 {dimension_numbers = #tpu.dot_dimension_numbers<[1], [0], [0], [1], [0, 0, 1, 1], [], []>} : vector<22x32xbf16>, vector<32x64xbf16>, vector<22x64xf32> -> vector<22x64xf32>
    %c0_28 = arith.constant 0 : index
    %c0_29 = arith.constant 0 : index
    %c0_30 = arith.constant 0 : index
    %c0_31 = arith.constant 0 : index
    %27 = vector.load %arg10[%c0_28, %c0_29, %c0_30, %c0_31] : memref<6x4x22x22xbf16, #tpu.memory_space<vmem>>, vector<1x1x22x22xbf16>
    %28 = vector.shape_cast %27 : vector<1x1x22x22xbf16> to vector<22x22xbf16>
    %29 = vector.extract_strided_slice %26 {offsets = [0, 0], sizes = [22, 32], strides = [1, 1]} : vector<22x64xf32> to vector<22x32xf32>
    %30 = arith.truncf %29 : vector<22x32xf32> to vector<22x32xbf16>
    %cst_32 = arith.constant dense<0.000000e+00> : vector<22x32xf32>
    %31 = tpu.matmul %28, %30, %cst_32 {dimension_numbers = #tpu.dot_dimension_numbers<[1], [0], [0], [1], [0, 0, 1, 1], [], []>} : vector<22x22xbf16>, vector<22x32xbf16>, vector<22x32xf32> -> vector<22x32xf32>
    %c0_33 = arith.constant 0 : index
    %c1 = arith.constant 1 : index
    %c0_34 = arith.constant 0 : index
    %c0_35 = arith.constant 0 : index
    %32 = vector.load %arg10[%c0_33, %c1, %c0_34, %c0_35] : memref<6x4x22x22xbf16, #tpu.memory_space<vmem>>, vector<1x1x22x22xbf16>
    %33 = vector.shape_cast %32 : vector<1x1x22x22xbf16> to vector<22x22xbf16>
    %34 = vector.extract_strided_slice %26 {offsets = [0, 32], sizes = [22, 32], strides = [1, 1]} : vector<22x64xf32> to vector<22x32xf32>
    %35 = arith.truncf %34 : vector<22x32xf32> to vector<22x32xbf16>
    %cst_36 = arith.constant dense<0.000000e+00> : vector<22x32xf32>
    %36 = tpu.matmul %33, %35, %cst_36 {dimension_numbers = #tpu.dot_dimension_numbers<[1], [0], [0], [1], [0, 0, 1, 1], [], []>} : vector<22x22xbf16>, vector<22x32xbf16>, vector<22x32xf32> -> vector<22x32xf32>
    %37 = vector.extract_strided_slice %21 {offsets = [0, 32], sizes = [22, 32], strides = [1, 1]} : vector<22x96xf32> to vector<22x32xf32>
    %c1_37 = arith.constant 1 : index
    %c0_38 = arith.constant 0 : index
    %c0_39 = arith.constant 0 : index
    %38 = vector.load %arg8[%c1_37, %c0_38, %c0_39] : memref<6x32x64xbf16, #tpu.memory_space<vmem>>, vector<1x32x64xbf16>
    %39 = vector.shape_cast %38 : vector<1x32x64xbf16> to vector<32x64xbf16>
    %40 = arith.truncf %37 : vector<22x32xf32> to vector<22x32xbf16>
    %cst_40 = arith.constant dense<0.000000e+00> : vector<22x64xf32>
    %41 = tpu.matmul %40, %39, %cst_40 {dimension_numbers = #tpu.dot_dimension_numbers<[1], [0], [0], [1], [0, 0, 1, 1], [], []>} : vector<22x32xbf16>, vector<32x64xbf16>, vector<22x64xf32> -> vector<22x64xf32>
    %c1_41 = arith.constant 1 : index
    %c0_42 = arith.constant 0 : index
    %c0_43 = arith.constant 0 : index
    %c0_44 = arith.constant 0 : index
    %42 = vector.load %arg10[%c1_41, %c0_42, %c0_43, %c0_44] : memref<6x4x22x22xbf16, #tpu.memory_space<vmem>>, vector<1x1x22x22xbf16>
    %43 = vector.shape_cast %42 : vector<1x1x22x22xbf16> to vector<22x22xbf16>
    %44 = vector.extract_strided_slice %41 {offsets = [0, 0], sizes = [22, 32], strides = [1, 1]} : vector<22x64xf32> to vector<22x32xf32>
    %45 = arith.truncf %44 : vector<22x32xf32> to vector<22x32xbf16>
    %cst_45 = arith.constant dense<0.000000e+00> : vector<22x32xf32>
    %46 = tpu.matmul %43, %45, %cst_45 {dimension_numbers = #tpu.dot_dimension_numbers<[1], [0], [0], [1], [0, 0, 1, 1], [], []>} : vector<22x22xbf16>, vector<22x32xbf16>, vector<22x32xf32> -> vector<22x32xf32>
    %c1_46 = arith.constant 1 : index
    %c1_47 = arith.constant 1 : index
    %c0_48 = arith.constant 0 : index
    %c0_49 = arith.constant 0 : index
    %47 = vector.load %arg10[%c1_46, %c1_47, %c0_48, %c0_49] : memref<6x4x22x22xbf16, #tpu.memory_space<vmem>>, vector<1x1x22x22xbf16>
    %48 = vector.shape_cast %47 : vector<1x1x22x22xbf16> to vector<22x22xbf16>
    %49 = vector.extract_strided_slice %41 {offsets = [0, 32], sizes = [22, 32], strides = [1, 1]} : vector<22x64xf32> to vector<22x32xf32>
    %50 = arith.truncf %49 : vector<22x32xf32> to vector<22x32xbf16>
    %cst_50 = arith.constant dense<0.000000e+00> : vector<22x32xf32>
    %51 = tpu.matmul %48, %50, %cst_50 {dimension_numbers = #tpu.dot_dimension_numbers<[1], [0], [0], [1], [0, 0, 1, 1], [], []>} : vector<22x22xbf16>, vector<22x32xbf16>, vector<22x32xf32> -> vector<22x32xf32>
    %52 = vector.extract_strided_slice %21 {offsets = [0, 64], sizes = [22, 32], strides = [1, 1]} : vector<22x96xf32> to vector<22x32xf32>
    %c2 = arith.constant 2 : index
    %c0_51 = arith.constant 0 : index
    %c0_52 = arith.constant 0 : index
    %53 = vector.load %arg8[%c2, %c0_51, %c0_52] : memref<6x32x64xbf16, #tpu.memory_space<vmem>>, vector<1x32x64xbf16>
    %54 = vector.shape_cast %53 : vector<1x32x64xbf16> to vector<32x64xbf16>
    %55 = arith.truncf %52 : vector<22x32xf32> to vector<22x32xbf16>
    %cst_53 = arith.constant dense<0.000000e+00> : vector<22x64xf32>
    %56 = tpu.matmul %55, %54, %cst_53 {dimension_numbers = #tpu.dot_dimension_numbers<[1], [0], [0], [1], [0, 0, 1, 1], [], []>} : vector<22x32xbf16>, vector<32x64xbf16>, vector<22x64xf32> -> vector<22x64xf32>
    %c2_54 = arith.constant 2 : index
    %c0_55 = arith.constant 0 : index
    %c0_56 = arith.constant 0 : index
    %c0_57 = arith.constant 0 : index
    %57 = vector.load %arg10[%c2_54, %c0_55, %c0_56, %c0_57] : memref<6x4x22x22xbf16, #tpu.memory_space<vmem>>, vector<1x1x22x22xbf16>
    %58 = vector.shape_cast %57 : vector<1x1x22x22xbf16> to vector<22x22xbf16>
    %59 = vector.extract_strided_slice %56 {offsets = [0, 0], sizes = [22, 32], strides = [1, 1]} : vector<22x64xf32> to vector<22x32xf32>
    %60 = arith.truncf %59 : vector<22x32xf32> to vector<22x32xbf16>
    %cst_58 = arith.constant dense<0.000000e+00> : vector<22x32xf32>
    %61 = tpu.matmul %58, %60, %cst_58 {dimension_numbers = #tpu.dot_dimension_numbers<[1], [0], [0], [1], [0, 0, 1, 1], [], []>} : vector<22x22xbf16>, vector<22x32xbf16>, vector<22x32xf32> -> vector<22x32xf32>
    %c2_59 = arith.constant 2 : index
    %c1_60 = arith.constant 1 : index
    %c0_61 = arith.constant 0 : index
    %c0_62 = arith.constant 0 : index
    %62 = vector.load %arg10[%c2_59, %c1_60, %c0_61, %c0_62] : memref<6x4x22x22xbf16, #tpu.memory_space<vmem>>, vector<1x1x22x22xbf16>
    %63 = vector.shape_cast %62 : vector<1x1x22x22xbf16> to vector<22x22xbf16>
    %64 = vector.extract_strided_slice %56 {offsets = [0, 32], sizes = [22, 32], strides = [1, 1]} : vector<22x64xf32> to vector<22x32xf32>
    %65 = arith.truncf %64 : vector<22x32xf32> to vector<22x32xbf16>
    %cst_63 = arith.constant dense<0.000000e+00> : vector<22x32xf32>
    %66 = tpu.matmul %63, %65, %cst_63 {dimension_numbers = #tpu.dot_dimension_numbers<[1], [0], [0], [1], [0, 0, 1, 1], [], []>} : vector<22x22xbf16>, vector<22x32xbf16>, vector<22x32xf32> -> vector<22x32xf32>
    %67 = vector.extract_strided_slice %21 {offsets = [0, 0], sizes = [22, 32], strides = [1, 1]} : vector<22x96xf32> to vector<22x32xf32>
    %c0_64 = arith.constant 0 : index
    %c0_65 = arith.constant 0 : index
    %c0_66 = arith.constant 0 : index
    %68 = vector.load %arg9[%c0_64, %c0_65, %c0_66] : memref<6x32x64xbf16, #tpu.memory_space<vmem>>, vector<1x32x64xbf16>
    %69 = vector.shape_cast %68 : vector<1x32x64xbf16> to vector<32x64xbf16>
    %70 = arith.truncf %67 : vector<22x32xf32> to vector<22x32xbf16>
    %cst_67 = arith.constant dense<0.000000e+00> : vector<22x64xf32>
    %71 = tpu.matmul %70, %69, %cst_67 {dimension_numbers = #tpu.dot_dimension_numbers<[1], [0], [0], [1], [0, 0, 1, 1], [], []>} : vector<22x32xbf16>, vector<32x64xbf16>, vector<22x64xf32> -> vector<22x64xf32>
    %c0_68 = arith.constant 0 : index
    %c2_69 = arith.constant 2 : index
    %c0_70 = arith.constant 0 : index
    %c0_71 = arith.constant 0 : index
    %72 = vector.load %arg10[%c0_68, %c2_69, %c0_70, %c0_71] : memref<6x4x22x22xbf16, #tpu.memory_space<vmem>>, vector<1x1x22x22xbf16>
    %73 = vector.shape_cast %72 : vector<1x1x22x22xbf16> to vector<22x22xbf16>
    %74 = vector.extract_strided_slice %71 {offsets = [0, 0], sizes = [22, 32], strides = [1, 1]} : vector<22x64xf32> to vector<22x32xf32>
    %75 = arith.truncf %74 : vector<22x32xf32> to vector<22x32xbf16>
    %cst_72 = arith.constant dense<0.000000e+00> : vector<22x32xf32>
    %76 = tpu.matmul %73, %75, %cst_72 {dimension_numbers = #tpu.dot_dimension_numbers<[1], [0], [0], [1], [0, 0, 1, 1], [], []>} : vector<22x22xbf16>, vector<22x32xbf16>, vector<22x32xf32> -> vector<22x32xf32>
    %c0_73 = arith.constant 0 : index
    %c3 = arith.constant 3 : index
    %c0_74 = arith.constant 0 : index
    %c0_75 = arith.constant 0 : index
    %77 = vector.load %arg10[%c0_73, %c3, %c0_74, %c0_75] : memref<6x4x22x22xbf16, #tpu.memory_space<vmem>>, vector<1x1x22x22xbf16>
    %78 = vector.shape_cast %77 : vector<1x1x22x22xbf16> to vector<22x22xbf16>
    %79 = vector.extract_strided_slice %71 {offsets = [0, 32], sizes = [22, 32], strides = [1, 1]} : vector<22x64xf32> to vector<22x32xf32>
    %80 = arith.truncf %79 : vector<22x32xf32> to vector<22x32xbf16>
    %cst_76 = arith.constant dense<0.000000e+00> : vector<22x32xf32>
    %81 = tpu.matmul %78, %80, %cst_76 {dimension_numbers = #tpu.dot_dimension_numbers<[1], [0], [0], [1], [0, 0, 1, 1], [], []>} : vector<22x22xbf16>, vector<22x32xbf16>, vector<22x32xf32> -> vector<22x32xf32>
    %82 = arith.addf %31, %76 : vector<22x32xf32>
    %c0_77 = arith.constant 0 : index
    %c0_78 = arith.constant 0 : index
    %c0_79 = arith.constant 0 : index
    %c0_80 = arith.constant 0 : index
    %83 = vector.load %arg11[%c0_77, %c0_78, %c0_79, %c0_80] : memref<6x2x1x32xf32, #tpu.memory_space<vmem>>, vector<1x1x1x32xf32>
    %84 = vector.shape_cast %83 : vector<1x1x1x32xf32> to vector<1x32xf32>
    %85 = vector.broadcast %84 : vector<1x32xf32> to vector<22x32xf32>
    %86 = arith.addf %82, %85 : vector<22x32xf32>
    %87 = arith.negf %86 : vector<22x32xf32>
    %88 = math.exp %87 : vector<22x32xf32>
    %cst_81 = arith.constant 1.000000e+00 : f32
    %89 = vector.broadcast %cst_81 : f32 to vector<22x32xf32>
    %90 = arith.addf %89, %88 : vector<22x32xf32>
    %91 = arith.divf %89, %90 : vector<22x32xf32>
    %92 = arith.addf %36, %81 : vector<22x32xf32>
    %c0_82 = arith.constant 0 : index
    %c1_83 = arith.constant 1 : index
    %c0_84 = arith.constant 0 : index
    %c0_85 = arith.constant 0 : index
    %93 = vector.load %arg11[%c0_82, %c1_83, %c0_84, %c0_85] : memref<6x2x1x32xf32, #tpu.memory_space<vmem>>, vector<1x1x1x32xf32>
    %94 = vector.shape_cast %93 : vector<1x1x1x32xf32> to vector<1x32xf32>
    %95 = vector.broadcast %94 : vector<1x32xf32> to vector<22x32xf32>
    %96 = arith.addf %92, %95 : vector<22x32xf32>
    %97 = math.tanh %96 : vector<22x32xf32>
    %cst_86 = arith.constant 1.000000e+00 : f32
    %98 = vector.broadcast %cst_86 : f32 to vector<22x32xf32>
    %99 = arith.subf %98, %91 : vector<22x32xf32>
    %100 = arith.mulf %99, %97 : vector<22x32xf32>
    %101 = arith.mulf %91, %67 : vector<22x32xf32>
    %102 = arith.addf %100, %101 : vector<22x32xf32>
    %c1_87 = arith.constant 1 : index
    %c0_88 = arith.constant 0 : index
    %c0_89 = arith.constant 0 : index
    %103 = vector.load %arg9[%c1_87, %c0_88, %c0_89] : memref<6x32x64xbf16, #tpu.memory_space<vmem>>, vector<1x32x64xbf16>
    %104 = vector.shape_cast %103 : vector<1x32x64xbf16> to vector<32x64xbf16>
    %105 = arith.truncf %102 : vector<22x32xf32> to vector<22x32xbf16>
    %cst_90 = arith.constant dense<0.000000e+00> : vector<22x64xf32>
    %106 = tpu.matmul %105, %104, %cst_90 {dimension_numbers = #tpu.dot_dimension_numbers<[1], [0], [0], [1], [0, 0, 1, 1], [], []>} : vector<22x32xbf16>, vector<32x64xbf16>, vector<22x64xf32> -> vector<22x64xf32>
    %c1_91 = arith.constant 1 : index
    %c2_92 = arith.constant 2 : index
    %c0_93 = arith.constant 0 : index
    %c0_94 = arith.constant 0 : index
    %107 = vector.load %arg10[%c1_91, %c2_92, %c0_93, %c0_94] : memref<6x4x22x22xbf16, #tpu.memory_space<vmem>>, vector<1x1x22x22xbf16>
    %108 = vector.shape_cast %107 : vector<1x1x22x22xbf16> to vector<22x22xbf16>
    %109 = vector.extract_strided_slice %106 {offsets = [0, 0], sizes = [22, 32], strides = [1, 1]} : vector<22x64xf32> to vector<22x32xf32>
    %110 = arith.truncf %109 : vector<22x32xf32> to vector<22x32xbf16>
    %cst_95 = arith.constant dense<0.000000e+00> : vector<22x32xf32>
    %111 = tpu.matmul %108, %110, %cst_95 {dimension_numbers = #tpu.dot_dimension_numbers<[1], [0], [0], [1], [0, 0, 1, 1], [], []>} : vector<22x22xbf16>, vector<22x32xbf16>, vector<22x32xf32> -> vector<22x32xf32>
    %c1_96 = arith.constant 1 : index
    %c3_97 = arith.constant 3 : index
    %c0_98 = arith.constant 0 : index
    %c0_99 = arith.constant 0 : index
    %112 = vector.load %arg10[%c1_96, %c3_97, %c0_98, %c0_99] : memref<6x4x22x22xbf16, #tpu.memory_space<vmem>>, vector<1x1x22x22xbf16>
    %113 = vector.shape_cast %112 : vector<1x1x22x22xbf16> to vector<22x22xbf16>
    %114 = vector.extract_strided_slice %106 {offsets = [0, 32], sizes = [22, 32], strides = [1, 1]} : vector<22x64xf32> to vector<22x32xf32>
    %115 = arith.truncf %114 : vector<22x32xf32> to vector<22x32xbf16>
    %cst_100 = arith.constant dense<0.000000e+00> : vector<22x32xf32>
    %116 = tpu.matmul %113, %115, %cst_100 {dimension_numbers = #tpu.dot_dimension_numbers<[1], [0], [0], [1], [0, 0, 1, 1], [], []>} : vector<22x22xbf16>, vector<22x32xbf16>, vector<22x32xf32> -> vector<22x32xf32>
    %117 = arith.addf %46, %111 : vector<22x32xf32>
    %c1_101 = arith.constant 1 : index
    %c0_102 = arith.constant 0 : index
    %c0_103 = arith.constant 0 : index
    %c0_104 = arith.constant 0 : index
    %118 = vector.load %arg11[%c1_101, %c0_102, %c0_103, %c0_104] : memref<6x2x1x32xf32, #tpu.memory_space<vmem>>, vector<1x1x1x32xf32>
    %119 = vector.shape_cast %118 : vector<1x1x1x32xf32> to vector<1x32xf32>
    %120 = vector.broadcast %119 : vector<1x32xf32> to vector<22x32xf32>
    %121 = arith.addf %117, %120 : vector<22x32xf32>
    %122 = arith.negf %121 : vector<22x32xf32>
    %123 = math.exp %122 : vector<22x32xf32>
    %cst_105 = arith.constant 1.000000e+00 : f32
    %124 = vector.broadcast %cst_105 : f32 to vector<22x32xf32>
    %125 = arith.addf %124, %123 : vector<22x32xf32>
    %126 = arith.divf %124, %125 : vector<22x32xf32>
    %127 = arith.addf %51, %116 : vector<22x32xf32>
    %c1_106 = arith.constant 1 : index
    %c1_107 = arith.constant 1 : index
    %c0_108 = arith.constant 0 : index
    %c0_109 = arith.constant 0 : index
    %128 = vector.load %arg11[%c1_106, %c1_107, %c0_108, %c0_109] : memref<6x2x1x32xf32, #tpu.memory_space<vmem>>, vector<1x1x1x32xf32>
    %129 = vector.shape_cast %128 : vector<1x1x1x32xf32> to vector<1x32xf32>
    %130 = vector.broadcast %129 : vector<1x32xf32> to vector<22x32xf32>
    %131 = arith.addf %127, %130 : vector<22x32xf32>
    %132 = math.tanh %131 : vector<22x32xf32>
    %cst_110 = arith.constant 1.000000e+00 : f32
    %133 = vector.broadcast %cst_110 : f32 to vector<22x32xf32>
    %134 = arith.subf %133, %126 : vector<22x32xf32>
    %135 = arith.mulf %134, %132 : vector<22x32xf32>
    %136 = arith.mulf %126, %102 : vector<22x32xf32>
    %137 = arith.addf %135, %136 : vector<22x32xf32>
    %c2_111 = arith.constant 2 : index
    %c0_112 = arith.constant 0 : index
    %c0_113 = arith.constant 0 : index
    %138 = vector.load %arg9[%c2_111, %c0_112, %c0_113] : memref<6x32x64xbf16, #tpu.memory_space<vmem>>, vector<1x32x64xbf16>
    %139 = vector.shape_cast %138 : vector<1x32x64xbf16> to vector<32x64xbf16>
    %140 = arith.truncf %137 : vector<22x32xf32> to vector<22x32xbf16>
    %cst_114 = arith.constant dense<0.000000e+00> : vector<22x64xf32>
    %141 = tpu.matmul %140, %139, %cst_114 {dimension_numbers = #tpu.dot_dimension_numbers<[1], [0], [0], [1], [0, 0, 1, 1], [], []>} : vector<22x32xbf16>, vector<32x64xbf16>, vector<22x64xf32> -> vector<22x64xf32>
    %c2_115 = arith.constant 2 : index
    %c2_116 = arith.constant 2 : index
    %c0_117 = arith.constant 0 : index
    %c0_118 = arith.constant 0 : index
    %142 = vector.load %arg10[%c2_115, %c2_116, %c0_117, %c0_118] : memref<6x4x22x22xbf16, #tpu.memory_space<vmem>>, vector<1x1x22x22xbf16>
    %143 = vector.shape_cast %142 : vector<1x1x22x22xbf16> to vector<22x22xbf16>
    %144 = vector.extract_strided_slice %141 {offsets = [0, 0], sizes = [22, 32], strides = [1, 1]} : vector<22x64xf32> to vector<22x32xf32>
    %145 = arith.truncf %144 : vector<22x32xf32> to vector<22x32xbf16>
    %cst_119 = arith.constant dense<0.000000e+00> : vector<22x32xf32>
    %146 = tpu.matmul %143, %145, %cst_119 {dimension_numbers = #tpu.dot_dimension_numbers<[1], [0], [0], [1], [0, 0, 1, 1], [], []>} : vector<22x22xbf16>, vector<22x32xbf16>, vector<22x32xf32> -> vector<22x32xf32>
    %c2_120 = arith.constant 2 : index
    %c3_121 = arith.constant 3 : index
    %c0_122 = arith.constant 0 : index
    %c0_123 = arith.constant 0 : index
    %147 = vector.load %arg10[%c2_120, %c3_121, %c0_122, %c0_123] : memref<6x4x22x22xbf16, #tpu.memory_space<vmem>>, vector<1x1x22x22xbf16>
    %148 = vector.shape_cast %147 : vector<1x1x22x22xbf16> to vector<22x22xbf16>
    %149 = vector.extract_strided_slice %141 {offsets = [0, 32], sizes = [22, 32], strides = [1, 1]} : vector<22x64xf32> to vector<22x32xf32>
    %150 = arith.truncf %149 : vector<22x32xf32> to vector<22x32xbf16>
    %cst_124 = arith.constant dense<0.000000e+00> : vector<22x32xf32>
    %151 = tpu.matmul %148, %150, %cst_124 {dimension_numbers = #tpu.dot_dimension_numbers<[1], [0], [0], [1], [0, 0, 1, 1], [], []>} : vector<22x22xbf16>, vector<22x32xbf16>, vector<22x32xf32> -> vector<22x32xf32>
    %152 = arith.addf %61, %146 : vector<22x32xf32>
    %c2_125 = arith.constant 2 : index
    %c0_126 = arith.constant 0 : index
    %c0_127 = arith.constant 0 : index
    %c0_128 = arith.constant 0 : index
    %153 = vector.load %arg11[%c2_125, %c0_126, %c0_127, %c0_128] : memref<6x2x1x32xf32, #tpu.memory_space<vmem>>, vector<1x1x1x32xf32>
    %154 = vector.shape_cast %153 : vector<1x1x1x32xf32> to vector<1x32xf32>
    %155 = vector.broadcast %154 : vector<1x32xf32> to vector<22x32xf32>
    %156 = arith.addf %152, %155 : vector<22x32xf32>
    %157 = arith.negf %156 : vector<22x32xf32>
    %158 = math.exp %157 : vector<22x32xf32>
    %cst_129 = arith.constant 1.000000e+00 : f32
    %159 = vector.broadcast %cst_129 : f32 to vector<22x32xf32>
    %160 = arith.addf %159, %158 : vector<22x32xf32>
    %161 = arith.divf %159, %160 : vector<22x32xf32>
    %162 = arith.addf %66, %151 : vector<22x32xf32>
    %c2_130 = arith.constant 2 : index
    %c1_131 = arith.constant 1 : index
    %c0_132 = arith.constant 0 : index
    %c0_133 = arith.constant 0 : index
    %163 = vector.load %arg11[%c2_130, %c1_131, %c0_132, %c0_133] : memref<6x2x1x32xf32, #tpu.memory_space<vmem>>, vector<1x1x1x32xf32>
    %164 = vector.shape_cast %163 : vector<1x1x1x32xf32> to vector<1x32xf32>
    %165 = vector.broadcast %164 : vector<1x32xf32> to vector<22x32xf32>
    %166 = arith.addf %162, %165 : vector<22x32xf32>
    %167 = math.tanh %166 : vector<22x32xf32>
    %cst_134 = arith.constant 1.000000e+00 : f32
    %168 = vector.broadcast %cst_134 : f32 to vector<22x32xf32>
    %169 = arith.subf %168, %161 : vector<22x32xf32>
    %170 = arith.mulf %169, %167 : vector<22x32xf32>
    %171 = arith.mulf %161, %137 : vector<22x32xf32>
    %172 = arith.addf %170, %171 : vector<22x32xf32>
    %c0_135 = arith.constant 0 : index
    %c0_136 = arith.constant 0 : index
    %c0_137 = arith.constant 0 : index
    %173 = vector.load %arg13[%c0_135, %c0_136, %c0_137] : memref<3x22x22xbf16, #tpu.memory_space<vmem>>, vector<1x22x22xbf16>
    %174 = vector.shape_cast %173 : vector<1x22x22xbf16> to vector<22x22xbf16>
    %c0_138 = arith.constant 0 : index
    %c0_139 = arith.constant 0 : index
    %c0_140 = arith.constant 0 : index
    %175 = vector.load %arg12[%c0_138, %c0_139, %c0_140] : memref<3x32x6xbf16, #tpu.memory_space<vmem>>, vector<1x32x6xbf16>
    %176 = vector.shape_cast %175 : vector<1x32x6xbf16> to vector<32x6xbf16>
    %177 = arith.truncf %172 : vector<22x32xf32> to vector<22x32xbf16>
    %cst_141 = arith.constant dense<0.000000e+00> : vector<22x6xf32>
    %178 = tpu.matmul %177, %176, %cst_141 {dimension_numbers = #tpu.dot_dimension_numbers<[1], [0], [0], [1], [0, 0, 1, 1], [], []>} : vector<22x32xbf16>, vector<32x6xbf16>, vector<22x6xf32> -> vector<22x6xf32>
    %179 = arith.truncf %178 : vector<22x6xf32> to vector<22x6xbf16>
    %cst_142 = arith.constant dense<0.000000e+00> : vector<22x6xf32>
    %180 = tpu.matmul %174, %179, %cst_142 {dimension_numbers = #tpu.dot_dimension_numbers<[1], [0], [0], [1], [0, 0, 1, 1], [], []>} : vector<22x22xbf16>, vector<22x6xbf16>, vector<22x6xf32> -> vector<22x6xf32>
    %c0_143 = arith.constant 0 : index
    %c0_144 = arith.constant 0 : index
    %c0_145 = arith.constant 0 : index
    %181 = vector.load %arg14[%c0_143, %c0_144, %c0_145] : memref<3x1x6xf32, #tpu.memory_space<vmem>>, vector<1x1x6xf32>
    %182 = vector.shape_cast %181 : vector<1x1x6xf32> to vector<1x6xf32>
    %183 = vector.broadcast %182 : vector<1x6xf32> to vector<22x6xf32>
    %184 = arith.addf %180, %183 : vector<22x6xf32>
    %185 = arith.truncf %184 : vector<22x6xf32> to vector<22x6xbf16>
    %cst_146 = arith.constant dense<0.000000e+00> : vector<22x32xf32>
    %186 = tpu.matmul %185, %1, %cst_146 {dimension_numbers = #tpu.dot_dimension_numbers<[1], [0], [0], [1], [0, 0, 1, 1], [], []>} : vector<22x6xbf16>, vector<6x32xbf16>, vector<22x32xf32> -> vector<22x32xf32>
    %187 = arith.truncf %186 : vector<22x32xf32> to vector<22x32xbf16>
    %cst_147 = arith.constant dense<0.000000e+00> : vector<22x32xf32>
    %188 = tpu.matmul %0, %187, %cst_147 {dimension_numbers = #tpu.dot_dimension_numbers<[1], [0], [0], [1], [0, 0, 1, 1], [], []>} : vector<22x22xbf16>, vector<22x32xbf16>, vector<22x32xf32> -> vector<22x32xf32>
    %189 = arith.mulf %188, %4 : vector<22x32xf32>
    %190 = arith.addf %189, %5 : vector<22x32xf32>
    %cst_148 = arith.constant 0.000000e+00 : f32
    %191 = vector.broadcast %cst_148 : f32 to vector<22x32xf32>
    %192 = arith.cmpf oge, %190, %191 : vector<22x32xf32>
    %cst_149 = arith.constant 0.00999999977 : f32
    %193 = vector.broadcast %cst_149 : f32 to vector<22x32xf32>
    %194 = arith.mulf %193, %190 : vector<22x32xf32>
    %195 = arith.select %192, %190, %194 : vector<22x32xi1>, vector<22x32xf32>
    %196 = vector.extract_strided_slice %172 {offsets = [0, 0], sizes = [22, 16], strides = [1, 1]} : vector<22x32xf32> to vector<22x16xf32>
    %197 = vector.extract_strided_slice %195 {offsets = [0, 0], sizes = [22, 16], strides = [1, 1]} : vector<22x32xf32> to vector<22x16xf32>
    %cst_150 = arith.constant dense<0.000000e+00> : vector<22x22xf32>
    %198 = tpu.matmul %196, %197, %cst_150 {dimension_numbers = #tpu.dot_dimension_numbers<[1], [1], [0], [0], [0, 0, 1, 0], [], []>} : vector<22x16xf32>, vector<22x16xf32>, vector<22x22xf32> -> vector<22x22xf32>
    %cst_151 = arith.constant dense<0xFF800000> : vector<22xf32>
    %199 = vector.multi_reduction <maximumf>, %198, %cst_151 [1] : vector<22x22xf32> to vector<22xf32>
    %200 = vector.shape_cast %199 : vector<22xf32> to vector<22x1xf32>
    %201 = vector.broadcast %200 : vector<22x1xf32> to vector<22x22xf32>
    %202 = arith.subf %198, %201 : vector<22x22xf32>
    %203 = math.exp %202 : vector<22x22xf32>
    %cst_152 = arith.constant dense<0.000000e+00> : vector<22xf32>
    %204 = vector.multi_reduction <add>, %203, %cst_152 [1] : vector<22x22xf32> to vector<22xf32>
    %205 = vector.shape_cast %204 : vector<22xf32> to vector<22x1xf32>
    %206 = vector.broadcast %205 : vector<22x1xf32> to vector<22x22xf32>
    %207 = arith.divf %203, %206 : vector<22x22xf32>
    %208 = arith.truncf %207 : vector<22x22xf32> to vector<22x22xbf16>
    %209 = arith.truncf %197 : vector<22x16xf32> to vector<22x16xbf16>
    %cst_153 = arith.constant dense<0.000000e+00> : vector<22x16xf32>
    %210 = tpu.matmul %208, %209, %cst_153 {dimension_numbers = #tpu.dot_dimension_numbers<[1], [0], [0], [1], [0, 0, 1, 1], [], []>} : vector<22x22xbf16>, vector<22x16xbf16>, vector<22x16xf32> -> vector<22x16xf32>
    %211 = vector.extract_strided_slice %172 {offsets = [0, 16], sizes = [22, 16], strides = [1, 1]} : vector<22x32xf32> to vector<22x16xf32>
    %212 = vector.extract_strided_slice %195 {offsets = [0, 16], sizes = [22, 16], strides = [1, 1]} : vector<22x32xf32> to vector<22x16xf32>
    %cst_154 = arith.constant dense<0.000000e+00> : vector<22x22xf32>
    %213 = tpu.matmul %211, %212, %cst_154 {dimension_numbers = #tpu.dot_dimension_numbers<[1], [1], [0], [0], [0, 0, 1, 0], [], []>} : vector<22x16xf32>, vector<22x16xf32>, vector<22x22xf32> -> vector<22x22xf32>
    %cst_155 = arith.constant dense<0xFF800000> : vector<22xf32>
    %214 = vector.multi_reduction <maximumf>, %213, %cst_155 [1] : vector<22x22xf32> to vector<22xf32>
    %215 = vector.shape_cast %214 : vector<22xf32> to vector<22x1xf32>
    %216 = vector.broadcast %215 : vector<22x1xf32> to vector<22x22xf32>
    %217 = arith.subf %213, %216 : vector<22x22xf32>
    %218 = math.exp %217 : vector<22x22xf32>
    %cst_156 = arith.constant dense<0.000000e+00> : vector<22xf32>
    %219 = vector.multi_reduction <add>, %218, %cst_156 [1] : vector<22x22xf32> to vector<22xf32>
    %220 = vector.shape_cast %219 : vector<22xf32> to vector<22x1xf32>
    %221 = vector.broadcast %220 : vector<22x1xf32> to vector<22x22xf32>
    %222 = arith.divf %218, %221 : vector<22x22xf32>
    %223 = arith.truncf %222 : vector<22x22xf32> to vector<22x22xbf16>
    %224 = arith.truncf %212 : vector<22x16xf32> to vector<22x16xbf16>
    %cst_157 = arith.constant dense<0.000000e+00> : vector<22x16xf32>
    %225 = tpu.matmul %223, %224, %cst_157 {dimension_numbers = #tpu.dot_dimension_numbers<[1], [0], [0], [1], [0, 0, 1, 1], [], []>} : vector<22x22xbf16>, vector<22x16xbf16>, vector<22x16xf32> -> vector<22x16xf32>
    %226 = tpu.concatenate %210, %225 in 1 : vector<22x16xf32>, vector<22x16xf32> -> vector<22x32xf32>
    %227 = arith.truncf %226 : vector<22x32xf32> to vector<22x32xbf16>
    %cst_158 = arith.constant dense<0.000000e+00> : vector<22x32xf32>
    %228 = tpu.matmul %227, %6, %cst_158 {dimension_numbers = #tpu.dot_dimension_numbers<[1], [0], [0], [1], [0, 0, 1, 1], [], []>} : vector<22x32xbf16>, vector<32x32xbf16>, vector<22x32xf32> -> vector<22x32xf32>
    %229 = arith.truncf %172 : vector<22x32xf32> to vector<22x32xbf16>
    %cst_159 = arith.constant dense<0.000000e+00> : vector<22x32xf32>
    %230 = tpu.matmul %229, %7, %cst_159 {dimension_numbers = #tpu.dot_dimension_numbers<[1], [0], [0], [1], [0, 0, 1, 1], [], []>} : vector<22x32xbf16>, vector<32x32xbf16>, vector<22x32xf32> -> vector<22x32xf32>
    %231 = arith.addf %228, %230 : vector<22x32xf32>
    %232 = vector.broadcast %8 : vector<1x32xf32> to vector<22x32xf32>
    %233 = arith.addf %231, %232 : vector<22x32xf32>
    %234 = math.tanh %233 : vector<22x32xf32>
    %c3_160 = arith.constant 3 : index
    %c0_161 = arith.constant 0 : index
    %c0_162 = arith.constant 0 : index
    %235 = vector.load %arg8[%c3_160, %c0_161, %c0_162] : memref<6x32x64xbf16, #tpu.memory_space<vmem>>, vector<1x32x64xbf16>
    %236 = vector.shape_cast %235 : vector<1x32x64xbf16> to vector<32x64xbf16>
    %237 = arith.truncf %195 : vector<22x32xf32> to vector<22x32xbf16>
    %cst_163 = arith.constant dense<0.000000e+00> : vector<22x64xf32>
    %238 = tpu.matmul %237, %236, %cst_163 {dimension_numbers = #tpu.dot_dimension_numbers<[1], [0], [0], [1], [0, 0, 1, 1], [], []>} : vector<22x32xbf16>, vector<32x64xbf16>, vector<22x64xf32> -> vector<22x64xf32>
    %c3_164 = arith.constant 3 : index
    %c0_165 = arith.constant 0 : index
    %c0_166 = arith.constant 0 : index
    %c0_167 = arith.constant 0 : index
    %239 = vector.load %arg10[%c3_164, %c0_165, %c0_166, %c0_167] : memref<6x4x22x22xbf16, #tpu.memory_space<vmem>>, vector<1x1x22x22xbf16>
    %240 = vector.shape_cast %239 : vector<1x1x22x22xbf16> to vector<22x22xbf16>
    %241 = vector.extract_strided_slice %238 {offsets = [0, 0], sizes = [22, 32], strides = [1, 1]} : vector<22x64xf32> to vector<22x32xf32>
    %242 = arith.truncf %241 : vector<22x32xf32> to vector<22x32xbf16>
    %cst_168 = arith.constant dense<0.000000e+00> : vector<22x32xf32>
    %243 = tpu.matmul %240, %242, %cst_168 {dimension_numbers = #tpu.dot_dimension_numbers<[1], [0], [0], [1], [0, 0, 1, 1], [], []>} : vector<22x22xbf16>, vector<22x32xbf16>, vector<22x32xf32> -> vector<22x32xf32>
    %c3_169 = arith.constant 3 : index
    %c1_170 = arith.constant 1 : index
    %c0_171 = arith.constant 0 : index
    %c0_172 = arith.constant 0 : index
    %244 = vector.load %arg10[%c3_169, %c1_170, %c0_171, %c0_172] : memref<6x4x22x22xbf16, #tpu.memory_space<vmem>>, vector<1x1x22x22xbf16>
    %245 = vector.shape_cast %244 : vector<1x1x22x22xbf16> to vector<22x22xbf16>
    %246 = vector.extract_strided_slice %238 {offsets = [0, 32], sizes = [22, 32], strides = [1, 1]} : vector<22x64xf32> to vector<22x32xf32>
    %247 = arith.truncf %246 : vector<22x32xf32> to vector<22x32xbf16>
    %cst_173 = arith.constant dense<0.000000e+00> : vector<22x32xf32>
    %248 = tpu.matmul %245, %247, %cst_173 {dimension_numbers = #tpu.dot_dimension_numbers<[1], [0], [0], [1], [0, 0, 1, 1], [], []>} : vector<22x22xbf16>, vector<22x32xbf16>, vector<22x32xf32> -> vector<22x32xf32>
    %c3_174 = arith.constant 3 : index
    %c0_175 = arith.constant 0 : index
    %c0_176 = arith.constant 0 : index
    %249 = vector.load %arg9[%c3_174, %c0_175, %c0_176] : memref<6x32x64xbf16, #tpu.memory_space<vmem>>, vector<1x32x64xbf16>
    %250 = vector.shape_cast %249 : vector<1x32x64xbf16> to vector<32x64xbf16>
    %251 = arith.truncf %234 : vector<22x32xf32> to vector<22x32xbf16>
    %cst_177 = arith.constant dense<0.000000e+00> : vector<22x64xf32>
    %252 = tpu.matmul %251, %250, %cst_177 {dimension_numbers = #tpu.dot_dimension_numbers<[1], [0], [0], [1], [0, 0, 1, 1], [], []>} : vector<22x32xbf16>, vector<32x64xbf16>, vector<22x64xf32> -> vector<22x64xf32>
    %c3_178 = arith.constant 3 : index
    %c2_179 = arith.constant 2 : index
    %c0_180 = arith.constant 0 : index
    %c0_181 = arith.constant 0 : index
    %253 = vector.load %arg10[%c3_178, %c2_179, %c0_180, %c0_181] : memref<6x4x22x22xbf16, #tpu.memory_space<vmem>>, vector<1x1x22x22xbf16>
    %254 = vector.shape_cast %253 : vector<1x1x22x22xbf16> to vector<22x22xbf16>
    %255 = vector.extract_strided_slice %252 {offsets = [0, 0], sizes = [22, 32], strides = [1, 1]} : vector<22x64xf32> to vector<22x32xf32>
    %256 = arith.truncf %255 : vector<22x32xf32> to vector<22x32xbf16>
    %cst_182 = arith.constant dense<0.000000e+00> : vector<22x32xf32>
    %257 = tpu.matmul %254, %256, %cst_182 {dimension_numbers = #tpu.dot_dimension_numbers<[1], [0], [0], [1], [0, 0, 1, 1], [], []>} : vector<22x22xbf16>, vector<22x32xbf16>, vector<22x32xf32> -> vector<22x32xf32>
    %c3_183 = arith.constant 3 : index
    %c3_184 = arith.constant 3 : index
    %c0_185 = arith.constant 0 : index
    %c0_186 = arith.constant 0 : index
    %258 = vector.load %arg10[%c3_183, %c3_184, %c0_185, %c0_186] : memref<6x4x22x22xbf16, #tpu.memory_space<vmem>>, vector<1x1x22x22xbf16>
    %259 = vector.shape_cast %258 : vector<1x1x22x22xbf16> to vector<22x22xbf16>
    %260 = vector.extract_strided_slice %252 {offsets = [0, 32], sizes = [22, 32], strides = [1, 1]} : vector<22x64xf32> to vector<22x32xf32>
    %261 = arith.truncf %260 : vector<22x32xf32> to vector<22x32xbf16>
    %cst_187 = arith.constant dense<0.000000e+00> : vector<22x32xf32>
    %262 = tpu.matmul %259, %261, %cst_187 {dimension_numbers = #tpu.dot_dimension_numbers<[1], [0], [0], [1], [0, 0, 1, 1], [], []>} : vector<22x22xbf16>, vector<22x32xbf16>, vector<22x32xf32> -> vector<22x32xf32>
    %263 = arith.addf %243, %257 : vector<22x32xf32>
    %c3_188 = arith.constant 3 : index
    %c0_189 = arith.constant 0 : index
    %c0_190 = arith.constant 0 : index
    %c0_191 = arith.constant 0 : index
    %264 = vector.load %arg11[%c3_188, %c0_189, %c0_190, %c0_191] : memref<6x2x1x32xf32, #tpu.memory_space<vmem>>, vector<1x1x1x32xf32>
    %265 = vector.shape_cast %264 : vector<1x1x1x32xf32> to vector<1x32xf32>
    %266 = vector.broadcast %265 : vector<1x32xf32> to vector<22x32xf32>
    %267 = arith.addf %263, %266 : vector<22x32xf32>
    %268 = arith.negf %267 : vector<22x32xf32>
    %269 = math.exp %268 : vector<22x32xf32>
    %cst_192 = arith.constant 1.000000e+00 : f32
    %270 = vector.broadcast %cst_192 : f32 to vector<22x32xf32>
    %271 = arith.addf %270, %269 : vector<22x32xf32>
    %272 = arith.divf %270, %271 : vector<22x32xf32>
    %273 = arith.addf %248, %262 : vector<22x32xf32>
    %c3_193 = arith.constant 3 : index
    %c1_194 = arith.constant 1 : index
    %c0_195 = arith.constant 0 : index
    %c0_196 = arith.constant 0 : index
    %274 = vector.load %arg11[%c3_193, %c1_194, %c0_195, %c0_196] : memref<6x2x1x32xf32, #tpu.memory_space<vmem>>, vector<1x1x1x32xf32>
    %275 = vector.shape_cast %274 : vector<1x1x1x32xf32> to vector<1x32xf32>
    %276 = vector.broadcast %275 : vector<1x32xf32> to vector<22x32xf32>
    %277 = arith.addf %273, %276 : vector<22x32xf32>
    %278 = math.tanh %277 : vector<22x32xf32>
    %cst_197 = arith.constant 1.000000e+00 : f32
    %279 = vector.broadcast %cst_197 : f32 to vector<22x32xf32>
    %280 = arith.subf %279, %272 : vector<22x32xf32>
    %281 = arith.mulf %280, %278 : vector<22x32xf32>
    %282 = arith.mulf %272, %234 : vector<22x32xf32>
    %283 = arith.addf %281, %282 : vector<22x32xf32>
    %c1_198 = arith.constant 1 : index
    %c0_199 = arith.constant 0 : index
    %c0_200 = arith.constant 0 : index
    %284 = vector.load %arg13[%c1_198, %c0_199, %c0_200] : memref<3x22x22xbf16, #tpu.memory_space<vmem>>, vector<1x22x22xbf16>
    %285 = vector.shape_cast %284 : vector<1x22x22xbf16> to vector<22x22xbf16>
    %c1_201 = arith.constant 1 : index
    %c0_202 = arith.constant 0 : index
    %c0_203 = arith.constant 0 : index
    %286 = vector.load %arg12[%c1_201, %c0_202, %c0_203] : memref<3x32x6xbf16, #tpu.memory_space<vmem>>, vector<1x32x6xbf16>
    %287 = vector.shape_cast %286 : vector<1x32x6xbf16> to vector<32x6xbf16>
    %288 = arith.truncf %283 : vector<22x32xf32> to vector<22x32xbf16>
    %cst_204 = arith.constant dense<0.000000e+00> : vector<22x6xf32>
    %289 = tpu.matmul %288, %287, %cst_204 {dimension_numbers = #tpu.dot_dimension_numbers<[1], [0], [0], [1], [0, 0, 1, 1], [], []>} : vector<22x32xbf16>, vector<32x6xbf16>, vector<22x6xf32> -> vector<22x6xf32>
    %290 = arith.truncf %289 : vector<22x6xf32> to vector<22x6xbf16>
    %cst_205 = arith.constant dense<0.000000e+00> : vector<22x6xf32>
    %291 = tpu.matmul %285, %290, %cst_205 {dimension_numbers = #tpu.dot_dimension_numbers<[1], [0], [0], [1], [0, 0, 1, 1], [], []>} : vector<22x22xbf16>, vector<22x6xbf16>, vector<22x6xf32> -> vector<22x6xf32>
    %c1_206 = arith.constant 1 : index
    %c0_207 = arith.constant 0 : index
    %c0_208 = arith.constant 0 : index
    %292 = vector.load %arg14[%c1_206, %c0_207, %c0_208] : memref<3x1x6xf32, #tpu.memory_space<vmem>>, vector<1x1x6xf32>
    %293 = vector.shape_cast %292 : vector<1x1x6xf32> to vector<1x6xf32>
    %294 = vector.broadcast %293 : vector<1x6xf32> to vector<22x6xf32>
    %295 = arith.addf %291, %294 : vector<22x6xf32>
    %296 = arith.truncf %295 : vector<22x6xf32> to vector<22x6xbf16>
    %cst_209 = arith.constant dense<0.000000e+00> : vector<22x32xf32>
    %297 = tpu.matmul %296, %1, %cst_209 {dimension_numbers = #tpu.dot_dimension_numbers<[1], [0], [0], [1], [0, 0, 1, 1], [], []>} : vector<22x6xbf16>, vector<6x32xbf16>, vector<22x32xf32> -> vector<22x32xf32>
    %298 = arith.truncf %297 : vector<22x32xf32> to vector<22x32xbf16>
    %cst_210 = arith.constant dense<0.000000e+00> : vector<22x32xf32>
    %299 = tpu.matmul %0, %298, %cst_210 {dimension_numbers = #tpu.dot_dimension_numbers<[1], [0], [0], [1], [0, 0, 1, 1], [], []>} : vector<22x22xbf16>, vector<22x32xbf16>, vector<22x32xf32> -> vector<22x32xf32>
    %300 = arith.mulf %299, %4 : vector<22x32xf32>
    %301 = arith.addf %300, %5 : vector<22x32xf32>
    %cst_211 = arith.constant 0.000000e+00 : f32
    %302 = vector.broadcast %cst_211 : f32 to vector<22x32xf32>
    %303 = arith.cmpf oge, %301, %302 : vector<22x32xf32>
    %cst_212 = arith.constant 0.00999999977 : f32
    %304 = vector.broadcast %cst_212 : f32 to vector<22x32xf32>
    %305 = arith.mulf %304, %301 : vector<22x32xf32>
    %306 = arith.select %303, %301, %305 : vector<22x32xi1>, vector<22x32xf32>
    %307 = vector.extract_strided_slice %283 {offsets = [0, 0], sizes = [22, 16], strides = [1, 1]} : vector<22x32xf32> to vector<22x16xf32>
    %308 = vector.extract_strided_slice %306 {offsets = [0, 0], sizes = [22, 16], strides = [1, 1]} : vector<22x32xf32> to vector<22x16xf32>
    %cst_213 = arith.constant dense<0.000000e+00> : vector<22x22xf32>
    %309 = tpu.matmul %307, %308, %cst_213 {dimension_numbers = #tpu.dot_dimension_numbers<[1], [1], [0], [0], [0, 0, 1, 0], [], []>} : vector<22x16xf32>, vector<22x16xf32>, vector<22x22xf32> -> vector<22x22xf32>
    %cst_214 = arith.constant dense<0xFF800000> : vector<22xf32>
    %310 = vector.multi_reduction <maximumf>, %309, %cst_214 [1] : vector<22x22xf32> to vector<22xf32>
    %311 = vector.shape_cast %310 : vector<22xf32> to vector<22x1xf32>
    %312 = vector.broadcast %311 : vector<22x1xf32> to vector<22x22xf32>
    %313 = arith.subf %309, %312 : vector<22x22xf32>
    %314 = math.exp %313 : vector<22x22xf32>
    %cst_215 = arith.constant dense<0.000000e+00> : vector<22xf32>
    %315 = vector.multi_reduction <add>, %314, %cst_215 [1] : vector<22x22xf32> to vector<22xf32>
    %316 = vector.shape_cast %315 : vector<22xf32> to vector<22x1xf32>
    %317 = vector.broadcast %316 : vector<22x1xf32> to vector<22x22xf32>
    %318 = arith.divf %314, %317 : vector<22x22xf32>
    %319 = arith.truncf %318 : vector<22x22xf32> to vector<22x22xbf16>
    %320 = arith.truncf %308 : vector<22x16xf32> to vector<22x16xbf16>
    %cst_216 = arith.constant dense<0.000000e+00> : vector<22x16xf32>
    %321 = tpu.matmul %319, %320, %cst_216 {dimension_numbers = #tpu.dot_dimension_numbers<[1], [0], [0], [1], [0, 0, 1, 1], [], []>} : vector<22x22xbf16>, vector<22x16xbf16>, vector<22x16xf32> -> vector<22x16xf32>
    %322 = vector.extract_strided_slice %283 {offsets = [0, 16], sizes = [22, 16], strides = [1, 1]} : vector<22x32xf32> to vector<22x16xf32>
    %323 = vector.extract_strided_slice %306 {offsets = [0, 16], sizes = [22, 16], strides = [1, 1]} : vector<22x32xf32> to vector<22x16xf32>
    %cst_217 = arith.constant dense<0.000000e+00> : vector<22x22xf32>
    %324 = tpu.matmul %322, %323, %cst_217 {dimension_numbers = #tpu.dot_dimension_numbers<[1], [1], [0], [0], [0, 0, 1, 0], [], []>} : vector<22x16xf32>, vector<22x16xf32>, vector<22x22xf32> -> vector<22x22xf32>
    %cst_218 = arith.constant dense<0xFF800000> : vector<22xf32>
    %325 = vector.multi_reduction <maximumf>, %324, %cst_218 [1] : vector<22x22xf32> to vector<22xf32>
    %326 = vector.shape_cast %325 : vector<22xf32> to vector<22x1xf32>
    %327 = vector.broadcast %326 : vector<22x1xf32> to vector<22x22xf32>
    %328 = arith.subf %324, %327 : vector<22x22xf32>
    %329 = math.exp %328 : vector<22x22xf32>
    %cst_219 = arith.constant dense<0.000000e+00> : vector<22xf32>
    %330 = vector.multi_reduction <add>, %329, %cst_219 [1] : vector<22x22xf32> to vector<22xf32>
    %331 = vector.shape_cast %330 : vector<22xf32> to vector<22x1xf32>
    %332 = vector.broadcast %331 : vector<22x1xf32> to vector<22x22xf32>
    %333 = arith.divf %329, %332 : vector<22x22xf32>
    %334 = arith.truncf %333 : vector<22x22xf32> to vector<22x22xbf16>
    %335 = arith.truncf %323 : vector<22x16xf32> to vector<22x16xbf16>
    %cst_220 = arith.constant dense<0.000000e+00> : vector<22x16xf32>
    %336 = tpu.matmul %334, %335, %cst_220 {dimension_numbers = #tpu.dot_dimension_numbers<[1], [0], [0], [1], [0, 0, 1, 1], [], []>} : vector<22x22xbf16>, vector<22x16xbf16>, vector<22x16xf32> -> vector<22x16xf32>
    %337 = tpu.concatenate %321, %336 in 1 : vector<22x16xf32>, vector<22x16xf32> -> vector<22x32xf32>
    %338 = arith.truncf %337 : vector<22x32xf32> to vector<22x32xbf16>
    %cst_221 = arith.constant dense<0.000000e+00> : vector<22x32xf32>
    %339 = tpu.matmul %338, %6, %cst_221 {dimension_numbers = #tpu.dot_dimension_numbers<[1], [0], [0], [1], [0, 0, 1, 1], [], []>} : vector<22x32xbf16>, vector<32x32xbf16>, vector<22x32xf32> -> vector<22x32xf32>
    %340 = arith.truncf %283 : vector<22x32xf32> to vector<22x32xbf16>
    %cst_222 = arith.constant dense<0.000000e+00> : vector<22x32xf32>
    %341 = tpu.matmul %340, %7, %cst_222 {dimension_numbers = #tpu.dot_dimension_numbers<[1], [0], [0], [1], [0, 0, 1, 1], [], []>} : vector<22x32xbf16>, vector<32x32xbf16>, vector<22x32xf32> -> vector<22x32xf32>
    %342 = arith.addf %339, %341 : vector<22x32xf32>
    %343 = vector.broadcast %8 : vector<1x32xf32> to vector<22x32xf32>
    %344 = arith.addf %342, %343 : vector<22x32xf32>
    %345 = math.tanh %344 : vector<22x32xf32>
    %c4 = arith.constant 4 : index
    %c0_223 = arith.constant 0 : index
    %c0_224 = arith.constant 0 : index
    %346 = vector.load %arg8[%c4, %c0_223, %c0_224] : memref<6x32x64xbf16, #tpu.memory_space<vmem>>, vector<1x32x64xbf16>
    %347 = vector.shape_cast %346 : vector<1x32x64xbf16> to vector<32x64xbf16>
    %348 = arith.truncf %306 : vector<22x32xf32> to vector<22x32xbf16>
    %cst_225 = arith.constant dense<0.000000e+00> : vector<22x64xf32>
    %349 = tpu.matmul %348, %347, %cst_225 {dimension_numbers = #tpu.dot_dimension_numbers<[1], [0], [0], [1], [0, 0, 1, 1], [], []>} : vector<22x32xbf16>, vector<32x64xbf16>, vector<22x64xf32> -> vector<22x64xf32>
    %c4_226 = arith.constant 4 : index
    %c0_227 = arith.constant 0 : index
    %c0_228 = arith.constant 0 : index
    %c0_229 = arith.constant 0 : index
    %350 = vector.load %arg10[%c4_226, %c0_227, %c0_228, %c0_229] : memref<6x4x22x22xbf16, #tpu.memory_space<vmem>>, vector<1x1x22x22xbf16>
    %351 = vector.shape_cast %350 : vector<1x1x22x22xbf16> to vector<22x22xbf16>
    %352 = vector.extract_strided_slice %349 {offsets = [0, 0], sizes = [22, 32], strides = [1, 1]} : vector<22x64xf32> to vector<22x32xf32>
    %353 = arith.truncf %352 : vector<22x32xf32> to vector<22x32xbf16>
    %cst_230 = arith.constant dense<0.000000e+00> : vector<22x32xf32>
    %354 = tpu.matmul %351, %353, %cst_230 {dimension_numbers = #tpu.dot_dimension_numbers<[1], [0], [0], [1], [0, 0, 1, 1], [], []>} : vector<22x22xbf16>, vector<22x32xbf16>, vector<22x32xf32> -> vector<22x32xf32>
    %c4_231 = arith.constant 4 : index
    %c1_232 = arith.constant 1 : index
    %c0_233 = arith.constant 0 : index
    %c0_234 = arith.constant 0 : index
    %355 = vector.load %arg10[%c4_231, %c1_232, %c0_233, %c0_234] : memref<6x4x22x22xbf16, #tpu.memory_space<vmem>>, vector<1x1x22x22xbf16>
    %356 = vector.shape_cast %355 : vector<1x1x22x22xbf16> to vector<22x22xbf16>
    %357 = vector.extract_strided_slice %349 {offsets = [0, 32], sizes = [22, 32], strides = [1, 1]} : vector<22x64xf32> to vector<22x32xf32>
    %358 = arith.truncf %357 : vector<22x32xf32> to vector<22x32xbf16>
    %cst_235 = arith.constant dense<0.000000e+00> : vector<22x32xf32>
    %359 = tpu.matmul %356, %358, %cst_235 {dimension_numbers = #tpu.dot_dimension_numbers<[1], [0], [0], [1], [0, 0, 1, 1], [], []>} : vector<22x22xbf16>, vector<22x32xbf16>, vector<22x32xf32> -> vector<22x32xf32>
    %c4_236 = arith.constant 4 : index
    %c0_237 = arith.constant 0 : index
    %c0_238 = arith.constant 0 : index
    %360 = vector.load %arg9[%c4_236, %c0_237, %c0_238] : memref<6x32x64xbf16, #tpu.memory_space<vmem>>, vector<1x32x64xbf16>
    %361 = vector.shape_cast %360 : vector<1x32x64xbf16> to vector<32x64xbf16>
    %362 = arith.truncf %345 : vector<22x32xf32> to vector<22x32xbf16>
    %cst_239 = arith.constant dense<0.000000e+00> : vector<22x64xf32>
    %363 = tpu.matmul %362, %361, %cst_239 {dimension_numbers = #tpu.dot_dimension_numbers<[1], [0], [0], [1], [0, 0, 1, 1], [], []>} : vector<22x32xbf16>, vector<32x64xbf16>, vector<22x64xf32> -> vector<22x64xf32>
    %c4_240 = arith.constant 4 : index
    %c2_241 = arith.constant 2 : index
    %c0_242 = arith.constant 0 : index
    %c0_243 = arith.constant 0 : index
    %364 = vector.load %arg10[%c4_240, %c2_241, %c0_242, %c0_243] : memref<6x4x22x22xbf16, #tpu.memory_space<vmem>>, vector<1x1x22x22xbf16>
    %365 = vector.shape_cast %364 : vector<1x1x22x22xbf16> to vector<22x22xbf16>
    %366 = vector.extract_strided_slice %363 {offsets = [0, 0], sizes = [22, 32], strides = [1, 1]} : vector<22x64xf32> to vector<22x32xf32>
    %367 = arith.truncf %366 : vector<22x32xf32> to vector<22x32xbf16>
    %cst_244 = arith.constant dense<0.000000e+00> : vector<22x32xf32>
    %368 = tpu.matmul %365, %367, %cst_244 {dimension_numbers = #tpu.dot_dimension_numbers<[1], [0], [0], [1], [0, 0, 1, 1], [], []>} : vector<22x22xbf16>, vector<22x32xbf16>, vector<22x32xf32> -> vector<22x32xf32>
    %c4_245 = arith.constant 4 : index
    %c3_246 = arith.constant 3 : index
    %c0_247 = arith.constant 0 : index
    %c0_248 = arith.constant 0 : index
    %369 = vector.load %arg10[%c4_245, %c3_246, %c0_247, %c0_248] : memref<6x4x22x22xbf16, #tpu.memory_space<vmem>>, vector<1x1x22x22xbf16>
    %370 = vector.shape_cast %369 : vector<1x1x22x22xbf16> to vector<22x22xbf16>
    %371 = vector.extract_strided_slice %363 {offsets = [0, 32], sizes = [22, 32], strides = [1, 1]} : vector<22x64xf32> to vector<22x32xf32>
    %372 = arith.truncf %371 : vector<22x32xf32> to vector<22x32xbf16>
    %cst_249 = arith.constant dense<0.000000e+00> : vector<22x32xf32>
    %373 = tpu.matmul %370, %372, %cst_249 {dimension_numbers = #tpu.dot_dimension_numbers<[1], [0], [0], [1], [0, 0, 1, 1], [], []>} : vector<22x22xbf16>, vector<22x32xbf16>, vector<22x32xf32> -> vector<22x32xf32>
    %374 = arith.addf %354, %368 : vector<22x32xf32>
    %c4_250 = arith.constant 4 : index
    %c0_251 = arith.constant 0 : index
    %c0_252 = arith.constant 0 : index
    %c0_253 = arith.constant 0 : index
    %375 = vector.load %arg11[%c4_250, %c0_251, %c0_252, %c0_253] : memref<6x2x1x32xf32, #tpu.memory_space<vmem>>, vector<1x1x1x32xf32>
    %376 = vector.shape_cast %375 : vector<1x1x1x32xf32> to vector<1x32xf32>
    %377 = vector.broadcast %376 : vector<1x32xf32> to vector<22x32xf32>
    %378 = arith.addf %374, %377 : vector<22x32xf32>
    %379 = arith.negf %378 : vector<22x32xf32>
    %380 = math.exp %379 : vector<22x32xf32>
    %cst_254 = arith.constant 1.000000e+00 : f32
    %381 = vector.broadcast %cst_254 : f32 to vector<22x32xf32>
    %382 = arith.addf %381, %380 : vector<22x32xf32>
    %383 = arith.divf %381, %382 : vector<22x32xf32>
    %384 = arith.addf %359, %373 : vector<22x32xf32>
    %c4_255 = arith.constant 4 : index
    %c1_256 = arith.constant 1 : index
    %c0_257 = arith.constant 0 : index
    %c0_258 = arith.constant 0 : index
    %385 = vector.load %arg11[%c4_255, %c1_256, %c0_257, %c0_258] : memref<6x2x1x32xf32, #tpu.memory_space<vmem>>, vector<1x1x1x32xf32>
    %386 = vector.shape_cast %385 : vector<1x1x1x32xf32> to vector<1x32xf32>
    %387 = vector.broadcast %386 : vector<1x32xf32> to vector<22x32xf32>
    %388 = arith.addf %384, %387 : vector<22x32xf32>
    %389 = math.tanh %388 : vector<22x32xf32>
    %cst_259 = arith.constant 1.000000e+00 : f32
    %390 = vector.broadcast %cst_259 : f32 to vector<22x32xf32>
    %391 = arith.subf %390, %383 : vector<22x32xf32>
    %392 = arith.mulf %391, %389 : vector<22x32xf32>
    %393 = arith.mulf %383, %345 : vector<22x32xf32>
    %394 = arith.addf %392, %393 : vector<22x32xf32>
    %c2_260 = arith.constant 2 : index
    %c0_261 = arith.constant 0 : index
    %c0_262 = arith.constant 0 : index
    %395 = vector.load %arg13[%c2_260, %c0_261, %c0_262] : memref<3x22x22xbf16, #tpu.memory_space<vmem>>, vector<1x22x22xbf16>
    %396 = vector.shape_cast %395 : vector<1x22x22xbf16> to vector<22x22xbf16>
    %c2_263 = arith.constant 2 : index
    %c0_264 = arith.constant 0 : index
    %c0_265 = arith.constant 0 : index
    %397 = vector.load %arg12[%c2_263, %c0_264, %c0_265] : memref<3x32x6xbf16, #tpu.memory_space<vmem>>, vector<1x32x6xbf16>
    %398 = vector.shape_cast %397 : vector<1x32x6xbf16> to vector<32x6xbf16>
    %399 = arith.truncf %394 : vector<22x32xf32> to vector<22x32xbf16>
    %cst_266 = arith.constant dense<0.000000e+00> : vector<22x6xf32>
    %400 = tpu.matmul %399, %398, %cst_266 {dimension_numbers = #tpu.dot_dimension_numbers<[1], [0], [0], [1], [0, 0, 1, 1], [], []>} : vector<22x32xbf16>, vector<32x6xbf16>, vector<22x6xf32> -> vector<22x6xf32>
    %401 = arith.truncf %400 : vector<22x6xf32> to vector<22x6xbf16>
    %cst_267 = arith.constant dense<0.000000e+00> : vector<22x6xf32>
    %402 = tpu.matmul %396, %401, %cst_267 {dimension_numbers = #tpu.dot_dimension_numbers<[1], [0], [0], [1], [0, 0, 1, 1], [], []>} : vector<22x22xbf16>, vector<22x6xbf16>, vector<22x6xf32> -> vector<22x6xf32>
    %c2_268 = arith.constant 2 : index
    %c0_269 = arith.constant 0 : index
    %c0_270 = arith.constant 0 : index
    %403 = vector.load %arg14[%c2_268, %c0_269, %c0_270] : memref<3x1x6xf32, #tpu.memory_space<vmem>>, vector<1x1x6xf32>
    %404 = vector.shape_cast %403 : vector<1x1x6xf32> to vector<1x6xf32>
    %405 = vector.broadcast %404 : vector<1x6xf32> to vector<22x6xf32>
    %406 = arith.addf %402, %405 : vector<22x6xf32>
    %407 = tpu.concatenate %184, %295, %406 in 1 : vector<22x6xf32>, vector<22x6xf32>, vector<22x6xf32> -> vector<22x18xf32>
    %c0_271 = arith.constant 0 : index
    %c0_272 = arith.constant 0 : index
    %408 = vector.load %arg18[%c0_271, %c0_272] : memref<22x18xf32, #tpu.memory_space<vmem>>, vector<22x18xf32>
    tpu.vector_store %arg18[%c0_271, %c0_272], %407 {strides = array<i32>} : memref<22x18xf32, #tpu.memory_space<vmem>>, vector<22x18xf32>,
    return
  }
}

</mosaic_0001>

<bundles_post_ra>
// kernel: tpu_custom_call.1
= control target key start
LH: loop header
LB: loop body
LE: loop exit
PB: predicated region body
PF: predicated region fallthrough
CT: control target
= control target key end

     0   :  { %s4965_s0 = inlined_call_operand.vmem [shape: f32[22,18], index: 0, kind: input, shape index: {}]   ;;  %s4966_s1 = inlined_call_operand.vmem [shape: bf16[18,96], index: 1, kind: input, shape index: {}]   ;;  %s4967_s2 = inlined_call_operand.vmem [shape: bf16[6,32], index: 2, kind: input, shape index: {}]   ;;  %s4968_s3 = inlined_call_operand.vmem [shape: bf16[22,22], index: 3, kind: input, shape index: {}]   ;;  %s4969_s4 = inlined_call_operand.vmem [shape: f32[22,96], index: 4, kind: input, shape index: {}]   ;;  %s4970_s5 = inlined_call_operand.vmem [shape: f32[22,96], index: 5, kind: input, shape index: {}]   ;;  %s4971_s6 = inlined_call_operand.vmem [shape: f32[22,32], index: 6, kind: input, shape index: {}]   ;;  %s4972_s7 = inlined_call_operand.vmem [shape: f32[22,32], index: 7, kind: input, shape index: {}]   ;;  %s4973_s8 = inlined_call_operand.vmem [shape: bf16[6,32,64], index: 8, kind: input, shape index: {}]   ;;  %s4974_s9 = inlined_call_operand.vmem [shape: bf16[6,32,64], index: 9, kind: input, shape index: {}]   ;;  %s4975_s10 = inlined_call_operand.vmem [shape: bf16[6,4,22,22], index: 10, kind: input, shape index: {}]   ;;  %s4976_s11 = inlined_call_operand.vmem [shape: f32[6,2,1,32], index: 11, kind: input, shape index: {}]   ;;  %s4977_s12 = inlined_call_operand.vmem [shape: bf16[3,32,6], index: 12, kind: input, shape index: {}]   ;;  %s4978_s13 = inlined_call_operand.vmem [shape: bf16[3,22,22], index: 13, kind: input, shape index: {}]   ;;  %s4979_s14 = inlined_call_operand.vmem [shape: f32[3,1,6], index: 14, kind: input, shape index: {}]   ;;  %s4980_s15 = inlined_call_operand.vmem [shape: bf16[32,32], index: 15, kind: input, shape index: {}]   ;;  %s4981_s16 = inlined_call_operand.vmem [shape: bf16[32,32], index: 16, kind: input, shape index: {}]   ;;  %s4982_s17 = inlined_call_operand.vmem [shape: f32[1,32], index: 17, kind: input, shape index: {}]   ;;  %s4983_s18 = inlined_call_operand.hbm [shape: f32[22,18], index: 18, kind: output, shape index: {}]  }
   0x1   :  { %4986 = sst [smem:[#allocation5_spill]] %s4965_s0 }
   0x2   :  { %4987 = sst [smem:[#allocation6_spill]] %s4966_s1 }
   0x3   :  { %4988 = sst [smem:[#allocation7_spill]] %s4967_s2 }
   0x4   :  { %s4989_s29 = sld [smem:[#allocation6_spill]]  ;;  %vm110_vm0 = vcmask 1040384  }
   0x5   :  { %s4990_s20 = sld [smem:[#allocation5_spill]] }
   0xa   :  { %v91_v0 = vld [vmem:[%s4989_s29 + $0x8] sm:$0x1]  ;;  %v3611_v3 = vld [vmem:[%s4989_s29] sm:$0xff] }
   0xb   :  { %v99_v1 = vunpack.c.l.b16 %v91_v0  ;;  %v86_v4 = vld [vmem:[%s4990_s20] sm:$0xff]  ;;  %v87_v6 = vld [vmem:[%s4990_s20 + $0x8] sm:$0xff] }
   0xd   :  { %v101_v2 = vpack.c.b16 %v99_v1, %v99_v1 }
   0xf   :  { %v112_v5 = vsel %vm110_vm0, %v101_v2, 0 }
  0x10   :  { %120 = vmatpush.bf16.msra.mxu0 %v112_v5 }
  0x11   :  { %23 = vsyncpa [#allocation3], 0  ;;  %v92_v7 = vpack.c.bf16 %v87_v6, %v86_v4  ;;  %vm103_vm1 = vcmask 146432   ;;  %v88_v8 = vld [vmem:[%s4990_s20 + $0x10] sm:$0x3f]  ;;  %vm149_vm2 = vcmask 1042432  }
  0x12   :  { %v93_v9 = vpack.c.bf16 %v88_v8, %v88_v8  ;;  %v63_v13 = vld [vmem:[%s4968_s3 + $0x8] sm:$0x7]  ;;  %v3606_v18 = vld [vmem:[%s4968_s3] sm:$0xff]  ;;  %vm142_vm3 = vcmask 179200   ;;  %v3617_v28 = vld [vmem:[%s4973_s8 + $0x18] sm:$0xff]  ;;  %vm204_vm7 = vcmask 261120  }
  0x13   :  { %v139_v16 = vunpack.c.l.b16 %v63_v13  ;;  %v3613_v21 = vld [vmem:[%s4973_s8 + $0x8] sm:$0xff]  ;;  %v3612_v23 = vld [vmem:[%s4973_s8] sm:$0xff]  ;;  %v67_v31 = vld [vmem:[%s4969_s4 + $0x10] sm:$0x3f]  ;;  %273 = vmatpush.bf16.msra.mxu3 %v3617_v28  ;;  %s4997_s25 = sld [smem:[#allocation7_spill]]  ;;  %s3882_s21 = smov 112  }
  0x14   :  { %121 = vmatpush.bf16.msra.mxu0 %v3611_v3  ;;  %v3625_v22 = vld [vmem:[%s4974_s9 + $0x8] sm:$0xff]  ;;  %v3624_v24 = vld [vmem:[%s4974_s9] sm:$0xff]  ;;  %v3616_v32 = vld [vmem:[%s4973_s8 + $0x10] sm:$0xff]  ;;  %s3883_s22 = smov 16   ;;  %s3888_s26 = smov 8  }
  0x15   :  { %v4008_v19 = vpack.c.b16 %v139_v16, %v139_v16  ;;  %v65_v25 = vld [vmem:[%s4969_s4] sm:$0xff]  ;;  %v3621_v29 = vld [vmem:[%s4973_s8 + $0x28] sm:$0xff]  ;;  %v70_v40 = vld [vmem:[%s4970_s5 + $0x10] sm:$0x3f] }
  0x16   :  { %v68_v30 = vld [vmem:[%s4970_s5] sm:$0xff]  ;;  %v66_v34 = vld [vmem:[%s4969_s4 + $0x8] sm:$0xff]  ;;  %s3880_s4 = smov 96   ;;  %v3626_v4 = vld [vmem:[%s4975_s10 + $0x18] sm:$0xff] }
  0x17   :  { %3137 = vmatmul.msk.bf16.vlgmr.msra.gmra.mxu0 %vm103_vm1, %v92_v7  ;;  %v3620_v33 = vld [vmem:[%s4973_s8 + $0x20] sm:$0xff]  ;;  %v69_v38 = vld [vmem:[%s4970_s5 + $0x8] sm:$0xff]  ;;  %274 = vmatpush.bf16.msra.mxu3 %v3616_v32  ;;  %s3881_s5 = smov 64  }
  0x18   :  { %328 = vmatpush.bf16.msrb.mxu0 %v3621_v29  ;;  %v3614_v7 = vld [vmem:[%s4975_s10] sm:$0xff] }
  0x1c   :  { %329 = vmatpush.bf16.msrb.mxu0 %v3620_v33 }
  0x27   :  { %3138 = vmatmul.msk.bf16.gmra.mxu0 %vm103_vm1, %v93_v9  ;;  %v3210_v9 = vld [vmem:[%s4975_s10 + $0x20] sm:$0x7] }
  0x94   :  { %v123_v10 = vpop.f32.mrf.mxu0 }
  0x9c   :  { %v125_v11 = vpop.f32.mrf.mxu0 }
  0x9d   :  { %v132_v17 = vpack.c.bf16 %v125_v11, %v123_v10  ;;  %v395_v10 = vunpack.c.l.b16 %v3210_v9  ;;  %v231_v11 = vld [vmem:[%s4975_s10 + $0x8] sm:$0x7] }
  0x9e   :  { %v476_v13 = vunpack.c.l.b16 %v231_v11 }
  0xa4   :  { %v128_v12 = vpop.f32.mrf.mxu0 }
  0xa5   :  { %v133_v14 = vpack.c.bf16 %v128_v12, %v128_v12  ;;  %v397_v12 = vpack.c.b16 %v395_v10, %v395_v10 }
  0xa7   :  { %v151_v15 = vsel %vm149_vm2, %v133_v14, 0  ;;  %v478_v14 = vpack.c.b16 %v476_v13, %v476_v13 }
  0xa8   :  { %159 = vmatpush.bf16.msra.mxu1 %v151_v15  ;;  %3661 = vmatpush.bf16.msra.mxu2 %v151_v15 }
  0xac   :  { %v130_v20 = vpop.f32.mrf.mxu0  ;;  %160 = vmatpush.bf16.msra.mxu1 %v132_v17  ;;  %3662 = vmatpush.bf16.msra.mxu2 %v132_v17 }
  0xad   :  { %v3627_v20 = vld [vmem:[%s4975_s10 + $0x24] sm:$0xff] }
  0xaf   :  { %3143 = vmatmul.msk.bf16.vlgmr.msra.gmra.mxu1 %vm142_vm3, %v3606_v18  ;;  %3144 = vmatmul.msk.bf16.vlgmr.msra.gmra.mxu2 %vm142_vm3, %v4008_v19 }
  0xb0   :  { %217 = vmatpush.bf16.msrb.mxu2 %v3613_v21  ;;  %372 = vmatpush.bf16.msrb.mxu1 %v3625_v22 }
  0xb4   :  { %218 = vmatpush.bf16.msrb.mxu2 %v3612_v23  ;;  %373 = vmatpush.bf16.msrb.mxu1 %v3624_v24  ;;  %v3219_v23 = vld [vmem:[%s4975_s10 + $0x2c] sm:$0x7] }
 0x12c   :  { %v162_v26 = vpop.f32.mrf.mxu1 }
 0x12d   :  { %v171_v27 = vmul.f32 %v162_v26, %v65_v25  ;;  %v434_v26 = vunpack.c.l.b16 %v3219_v23  ;;  %v3686_v23 = vld [vmem:[%s4976_s11 + $0x1] ss:$0 sm:$0xff] }
 0x12f   :  { %v174_v36 = vadd.f32 %v171_v27, %v68_v30  ;;  %v436_v28 = vpack.c.b16 %v434_v26, %v434_v26 }
 0x131   :  { %v180_v42 = vmul.f32 0.01, %v174_v36  ;;  %vm177_vm4 = vcmp.ge.f32.partialorder %v174_v36, 0.0 }
 0x132   :  { %v167_v35 = vpop.f32.mrf.mxu2 }
 0x133   :  { %v173_v37 = vmul.f32 %v167_v35, %v67_v31  ;;  %v4055_v47 = vsel %vm177_vm4, %v174_v36, %v180_v42 }
 0x134   :  { %v164_v39 = vpop.f32.mrf.mxu1 }
 0x135   :  { %v172_v41 = vmul.f32 %v164_v39, %v66_v34  ;;  %v176_v44 = vadd.f32 %v173_v37, %v70_v40  ;;  %v3615_v37 = vld [vmem:[%s4975_s10 + $0xc] sm:$0xff]  ;;  %v3157_v39 = vld [vmem:[%s4975_s10 + $0x14] sm:$0x7] }
 0x136   :  { %v575_v40 = vunpack.c.l.b16 %v3157_v39 }
 0x137   :  { %v175_v43 = vadd.f32 %v172_v41, %v69_v38  ;;  %v182_v49 = vmul.f32 0.01, %v176_v44  ;;  %vm179_vm6 = vcmp.ge.f32.partialorder %v176_v44, 0.0 }
 0x139   :  { %vm178_vm5 = vcmp.ge.f32.partialorder %v175_v43, 0.0  ;;  %v181_v45 = vmul.f32 0.01, %v175_v43  ;;  %v4062_v51 = vsel %vm179_vm6, %v176_v44, %v182_v49 }
 0x13a   :  { %v169_v46 = vpop.f32.mrf.mxu2  ;;  %v191_v52 = vpack.c.bf16 %v4062_v51, %v4062_v51 }
 0x13b   :  { %v4057_v48 = vsel %vm178_vm5, %v175_v43, %v181_v45  ;;  %v577_v43 = vpack.c.b16 %v575_v40, %v575_v40  ;;  %v3629_v46 = vld [vmem:[%s4974_s9 + $0x18] sm:$0xff] }
 0x13c   :  { %v190_v50 = vpack.c.bf16 %v4057_v48, %v4055_v47 }
 0x13e   :  { %245 = vrot.lane.b32.xlu1 %v190_v50, %s3880_s4  ;;  %300 = vrot.lane.b32.xlu0 %v190_v50, %s3881_s5 }
 0x13f   :  { %3153 = vmatmul.msk.bf16.vlgmr.msrb.gmra.mxu2 %vm204_vm7, %v190_v50  ;;  %3206 = vmatmul.msk.bf16.vlgmr.msrb.gmra.mxu1 %vm204_vm7, %v190_v50 }
 0x146   :  { %247 = vrot.lane.b32.xlu1 %v191_v52, %s3880_s4  ;;  %302 = vrot.lane.b32.xlu0 %v191_v52, %s3881_s5  ;;  %s3887_s5 = smov 128  }
 0x14f   :  { %3154 = vmatmul.msk.bf16.gmra.mxu2 %vm204_vm7, %v191_v52  ;;  %3207 = vmatmul.msk.bf16.gmra.mxu1 %vm204_vm7, %v191_v52 }
 0x1b0   :  { %v246_v53 = vpop.permute.xlu1 %245  ;;  %v301_v54 = vpop.permute.xlu0 %300 }
 0x1b1   :  { %3170 = vmatmul.msk.bf16.vlgmr.msra.gmra.mxu3 %vm204_vm7, %v246_v53  ;;  %3190 = vmatmul.msk.bf16.vlgmr.msrb.gmra.mxu0 %vm204_vm7, %v301_v54  ;;  %v3628_v54 = vld [vmem:[%s4974_s9 + $0x10] sm:$0xff] }
 0x1b8   :  { %v248_v56 = vpop.permute.xlu1 %247  ;;  %v303_v57 = vpop.permute.xlu0 %302 }
 0x1bc   :  { %v375_v55 = vpop.f32.mrf.mxu1 }
 0x1c1   :  { %3171 = vmatmul.msk.bf16.gmra.mxu3 %vm204_vm7, %v248_v56  ;;  %3191 = vmatmul.msk.bf16.gmra.mxu0 %vm204_vm7, %v303_v57 }
 0x1c2   :  { %v220_v58 = vpop.f32.mrf.mxu2 }
 0x1c4   :  { %v377_v59 = vpop.f32.mrf.mxu1 }
 0x1c5   :  { %v388_v1 = vpack.c.bf16 %v377_v59, %v375_v55 }
 0x1ca   :  { %v222_v60 = vpop.f32.mrf.mxu2 }
 0x1cb   :  { %v232_v61 = vpack.c.bf16 %v222_v60, %v220_v58  ;;  %v3685_v58 = vld [vmem:[%s4976_s11] ss:$0 sm:$0xff] }
 0x1cc   :  { %v380_v62 = vpop.f32.mrf.mxu1 }
 0x1cd   :  { %v389_v63 = vpack.c.bf16 %v380_v62, %v380_v62  ;;  %580 = vrot.lane.b32.xlu1 %v232_v61, %s3880_s4 }
 0x1cf   :  { %v405_v0 = vsel %vm149_vm2, %v389_v63, 0  ;;  %441 = vrot.lane.b32.xlu2 %v389_v63, %s3880_s4 }
 0x1d0   :  { %413 = vmatpush.bf16.msra.mxu2 %v405_v0 }
 0x1d2   :  { %v225_v2 = vpop.f32.mrf.mxu2 }
 0x1d3   :  { %v233_v3 = vpack.c.bf16 %v225_v2, %v225_v2 }
 0x1d4   :  { %v382_v5 = vpop.f32.mrf.mxu1  ;;  %414 = vmatpush.bf16.msra.mxu2 %v388_v1 }
 0x1d5   :  { %582 = vrot.lane.b32.xlu0 %v233_v3, %s3880_s4  ;;  %v486_v6 = vsel %vm149_vm2, %v233_v3, 0 }
 0x1d6   :  { %494 = vmatpush.bf16.msra.mxu0 %v486_v6 }
 0x1d7   :  { %439 = vrot.lane.b32.xlu2 %v388_v1, %s3880_s4  ;;  %3215 = vmatmul.msk.bf16.vlgmr.msra.gmra.mxu2 %vm142_vm3, %v3626_v4 }
 0x1d8   :  { %666 = vmatpush.bf16.msrb.mxu2 %v3629_v46 }
 0x1da   :  { %v227_v8 = vpop.f32.mrf.mxu2  ;;  %495 = vmatpush.bf16.msra.mxu0 %v232_v61 }
 0x1dc   :  { %667 = vmatpush.bf16.msrb.mxu2 %v3628_v54 }
 0x1dd   :  { %3230 = vmatmul.msk.bf16.vlgmr.msra.gmra.mxu0 %vm142_vm3, %v3614_v7 }
 0x1e7   :  { %3216 = vmatmul.msk.bf16.gmra.mxu2 %vm142_vm3, %v397_v12 }
 0x1ed   :  { %3231 = vmatmul.msk.bf16.gmra.mxu0 %vm142_vm3, %v478_v14 }
 0x229   :  { %v442_v15 = vpop.permute.xlu2 %441 }
 0x22a   :  { %v451_v16 = vsel %vm149_vm2, %v442_v15, 0 }
 0x22b   :  { %459 = vmatpush.bf16.msrb.mxu3 %v451_v16 }
 0x22e   :  { %v4098_v17 = vpop.f32.mrf.mxu0 }
 0x231   :  { %v440_v18 = vpop.permute.xlu2 %439 }
 0x232   :  { %460 = vmatpush.bf16.msrb.mxu3 %v440_v18 }
 0x234   :  { %v276_v21 = vpop.f32.mrf.mxu3 }
 0x235   :  { %3224 = vmatmul.msk.bf16.vlgmr.msrb.gmra.mxu3 %vm142_vm3, %v3627_v20 }
 0x236   :  { %v4104_v22 = vpop.f32.mrf.mxu0 }
 0x23c   :  { %v278_v24 = vpop.f32.mrf.mxu3 }
 0x23d   :  { %v289_v25 = vpack.c.bf16 %v278_v24, %v276_v21 }
 0x23e   :  { %v336_v27 = vpop.f32.mrf.mxu0 }
 0x23f   :  { %875 = vrot.lane.b32.xlu0 %v289_v25, %s3880_s4  ;;  %v4110_v30 = vpack.c.bf16 %v336_v27, %v336_v27  ;;  %v581_v35 = vpop.permute.xlu1 %580 }
 0x244   :  { %v281_v29 = vpop.f32.mrf.mxu3 }
 0x245   :  { %v290_v31 = vpack.c.bf16 %v281_v29, %v281_v29  ;;  %3225 = vmatmul.msk.bf16.gmra.mxu3 %vm142_vm3, %v436_v28 }
 0x246   :  { %v338_v32 = vpop.f32.mrf.mxu0 }
 0x247   :  { %v583_v33 = vpop.permute.xlu0 %582  ;;  %877 = vrot.lane.b32.xlu2 %v290_v31, %s3880_s4  ;;  %1172 = vrot.lane.b32.xlu0 %v4110_v30, %s3880_s4  ;;  %v780_v38 = vsel %vm149_vm2, %v290_v31, 0 }
 0x248   :  { %v592_v34 = vsel %vm149_vm2, %v583_v33, 0 }
 0x249   :  { %600 = vmatpush.bf16.msra.mxu1 %v592_v34 }
 0x24c   :  { %v283_v36 = vpop.f32.mrf.mxu3 }
 0x24d   :  { %601 = vmatpush.bf16.msra.mxu1 %v581_v35  ;;  %v3177_v36 = vld [vmem:[%s4975_s10 + $0x44] sm:$0x7] }
 0x250   :  { %3239 = vmatmul.msk.bf16.vlgmr.msra.gmra.mxu1 %vm142_vm3, %v3615_v37 }
 0x251   :  { %788 = vmatpush.bf16.msrb.mxu1 %v780_v38 }
 0x255   :  { %789 = vmatpush.bf16.msrb.mxu1 %v289_v25 }
 0x25a   :  { %v416_v41 = vpop.f32.mrf.mxu2  ;;  %v497_v42 = vpop.f32.mrf.mxu0 }
 0x25b   :  { %v498_v57 = vadd.f32 %v497_v42, %v416_v41 }
 0x25d   :  { %v510_v60 = vadd.f32 %v3685_v58, %v498_v57 }
 0x25f   :  { %v3232_v62 = vmul.f32 -1.442695, %v510_v60 }
 0x260   :  { %3240 = vmatmul.msk.bf16.gmra.mxu1 %vm142_vm3, %v577_v43 }
 0x261   :  { %3699 = vpow2.f32 %v3232_v62 }
 0x262   :  { %v418_v44 = vpop.f32.mrf.mxu2  ;;  %v499_v45 = vpop.f32.mrf.mxu0 }
 0x263   :  { %v500_v59 = vadd.f32 %v499_v45, %v418_v44 }
 0x265   :  { %v511_v61 = vadd.f32 %v3685_v58, %v500_v59 }
 0x267   :  { %v3233_v63 = vmul.f32 -1.442695, %v511_v61  ;;  %v3700_v3 = vpop.eup %3699 }
 0x268   :  { %v522_v6 = vadd.f32 1.0, %v3700_v3 }
 0x269   :  { %3701 = vpow2.f32 %v3233_v63 }
 0x26a   :  { %v421_v49 = vpop.f32.mrf.mxu2  ;;  %v502_v50 = vpop.f32.mrf.mxu0  ;;  %3703 = vrcp.f32 %v522_v6  ;;  %vm530_vm8 = vweird.f32 %v522_v6  ;;  %v536_v31 = vand.u32 2147483648, %v522_v6  ;;  %v534_v33 = vand.u32 2147483647, %v522_v6 }
 0x26b   :  { %v503_v1 = vadd.f32 %v502_v50, %v421_v49 }
 0x26c   :  { %v537_v41 = vor.u32 1.1754944e-38, %v536_v31  ;;  %vm535_vm14 = vcmp.eq.f32.partialorder %v534_v33, 8.507059e+37 }
 0x26d   :  { %v512_v4 = vadd.f32 %v3685_v58, %v503_v1 }
 0x26f   :  { %v3702_v5 = vpop.eup %3701  ;;  %v3234_v7 = vmul.f32 -1.442695, %v512_v4 }
 0x270   :  { %v523_v8 = vadd.f32 1.0, %v3702_v5  ;;  %v3704_v10 = vpop.eup %3703 }
 0x271   :  { %3705 = vpow2.f32 %v3234_v7  ;;  %v526_v14 = vmul.f32 %v3704_v10, %v522_v6  ;;  %vm531_vm9 = vweird.f32 %v3704_v10 }
 0x272   :  { %v423_v52 = vpop.f32.mrf.mxu2  ;;  %v504_v53 = vpop.f32.mrf.mxu0  ;;  %3707 = vrcp.f32 %v523_v8  ;;  %vm545_vm10 = vweird.f32 %v523_v8  ;;  %v551_v35 = vand.u32 2147483648, %v523_v8  ;;  %vm4142_vm12 = vmor %vm530_vm8, %vm531_vm9  ;;  %v549_v40 = vand.u32 2147483647, %v523_v8 }
 0x273   :  { %v527_v18 = vsub.f32 1.0, %v526_v14 }
 0x274   :  { %v552_v44 = vor.u32 1.1754944e-38, %v551_v35  ;;  %vm550_vm15 = vcmp.eq.f32.partialorder %v549_v40, 8.507059e+37  ;;  %v3619_v35 = vld [vmem:[%s4975_s10 + $0x3c] sm:$0xff] }
 0x275   :  { %v528_v26 = vmul.f32 %v3704_v10, %v527_v18 }
 0x277   :  { %v3706_v11 = vpop.eup %3705  ;;  %v529_v32 = vadd.f32 %v3704_v10, %v528_v26  ;;  %v3630_v26 = vld [vmem:[%s4975_s10 + $0x48] sm:$0xff] }
 0x278   :  { %v3708_v12 = vpop.eup %3707  ;;  %v4136_v15 = vadd.f32 1.0, %v3706_v11 }
 0x279   :  { %v541_v16 = vmul.f32 %v3708_v12, %v523_v8  ;;  %vm546_vm11 = vweird.f32 %v3708_v12  ;;  %v533_v43 = vsel %vm4142_vm12, %v3704_v10, %v529_v32  ;;  %v3258_v32 = vld [vmem:[%s4975_s10 + $0x50] sm:$0x7] }
 0x27a   :  { %3709 = vrcp.f32 %v4136_v15  ;;  %vm547_vm13 = vmor %vm545_vm10, %vm546_vm11  ;;  %v538_v50 = vsel %vm535_vm14, %v537_v41, %v533_v43  ;;  %vm560_vm0 = vweird.f32 %v4136_v15  ;;  %v564_v4 = vand.u32 2147483647, %v4136_v15 }
 0x27b   :  { %v542_v24 = vsub.f32 1.0, %v541_v16  ;;  %v623_v52 = vsub.f32 1.0, %v538_v50  ;;  %v629_v61 = vmul.f32 %v538_v50, %v4055_v47  ;;  %v689_v33 = vunpack.c.l.b16 %v3258_v32 }
 0x27c   :  { %vm565_vm6 = vcmp.eq.f32.partialorder %v564_v4, 8.507059e+37 }
 0x27d   :  { %v543_v28 = vmul.f32 %v3708_v12, %v542_v24 }
 0x27f   :  { %v544_v39 = vadd.f32 %v3708_v12, %v543_v28  ;;  %v3632_v28 = vld [vmem:[%s4974_s9 + $0x20] sm:$0xff] }
 0x280   :  { %v3710_v29 = vpop.eup %3709 }
 0x281   :  { %v556_v38 = vmul.f32 %v3710_v29, %v4136_v15  ;;  %v548_v46 = vsel %vm547_vm13, %v3708_v12, %v544_v39  ;;  %vm561_vm4 = vweird.f32 %v3710_v29 }
 0x282   :  { %v553_v54 = vsel %vm550_vm15, %v552_v44, %v548_v46  ;;  %vm562_vm5 = vmor %vm560_vm0, %vm561_vm4  ;;  %v3631_v44 = vld [vmem:[%s4975_s10 + $0x54] sm:$0xff] }
 0x283   :  { %v557_v45 = vsub.f32 1.0, %v556_v38  ;;  %v624_v57 = vsub.f32 1.0, %v553_v54  ;;  %v630_v63 = vmul.f32 %v553_v54, %v4057_v48  ;;  %v1075_v48 = vsel %vm149_vm2, %v4110_v30, 0 }
 0x285   :  { %v558_v58 = vmul.f32 %v3710_v29, %v557_v45 }
 0x287   :  { %v559_v3 = vadd.f32 %v3710_v29, %v558_v58 }
 0x289   :  { %v563_v7 = vsel %vm562_vm5, %v3710_v29, %v559_v3 }
 0x2a1   :  { %v878_v55 = vpop.permute.xlu2 %877 }
 0x2a2   :  { %v887_v56 = vsel %vm149_vm2, %v878_v55, 0 }
 0x2a3   :  { %895 = vmatpush.bf16.msra.mxu2 %v887_v56 }
 0x2b1   :  { %v876_v0 = vpop.permute.xlu0 %875 }
 0x2b2   :  { %896 = vmatpush.bf16.msra.mxu2 %v876_v0  ;;  %v566_v0 = vand.u32 2147483648, %v4136_v15  ;;  %v3618_v15 = vld [vmem:[%s4975_s10 + $0x30] sm:$0xff] }
 0x2b3   :  { %3278 = vmatmul.msk.bf16.vlgmr.msrb.gmra.mxu1 %vm142_vm3, %v3618_v15 }
 0x2b4   :  { %v567_v47 = vor.u32 1.1754944e-38, %v566_v0 }
 0x2b6   :  { %v568_v10 = vsel %vm565_vm6, %v567_v47, %v563_v7 }
 0x2b7   :  { %v625_v11 = vsub.f32 1.0, %v568_v10 }
 0x2b8   :  { %v462_v2 = vpop.f32.mrf.mxu3 }
 0x2b9   :  { %v1173_v29 = vpop.permute.xlu0 %1172 }
 0x2ba   :  { %v1182_v31 = vsel %vm149_vm2, %v1173_v29, 0 }
 0x2c0   :  { %v464_v9 = vpop.f32.mrf.mxu3 }
 0x2c8   :  { %v467_v13 = vpop.f32.mrf.mxu3 }
 0x2cd   :  { %v603_v20 = vpop.f32.mrf.mxu1 }
 0x2ce   :  { %v604_v21 = vadd.f32 %v603_v20, %v462_v2 }
 0x2d0   :  { %v469_v25 = vpop.f32.mrf.mxu3  ;;  %v617_v27 = vadd.f32 %v3686_v23, %v604_v21 }
 0x2d1   :  { %v3633_v25 = vld [vmem:[%s4974_s9 + $0x28] sm:$0xff] }
 0x2d2   :  { %3711 = vtanh.f32 %v617_v27 }
 0x2d5   :  { %v605_v34 = vpop.f32.mrf.mxu1 }
 0x2d6   :  { %v606_v37 = vadd.f32 %v605_v34, %v464_v9  ;;  %v344_v9 = vpack.c.bf16 %v4104_v22, %v4098_v17  ;;  %v691_v34 = vpack.c.b16 %v689_v33, %v689_v33 }
 0x2d8   :  { %v618_v42 = vadd.f32 %v3686_v23, %v606_v37  ;;  %v3712_v49 = vpop.eup %3711  ;;  %v870_v37 = vunpack.c.l.b16 %v3177_v36 }
 0x2d9   :  { %v626_v56 = vmul.f32 %v3712_v49, %v623_v52  ;;  %v3267_v49 = vld [vmem:[%s4975_s10 + $0x5c] sm:$0x7] }
 0x2da   :  { %3713 = vtanh.f32 %v618_v42  ;;  %v872_v38 = vpack.c.b16 %v870_v37, %v870_v37  ;;  %v728_v50 = vunpack.c.l.b16 %v3267_v49 }
 0x2db   :  { %v4153_v1 = vadd.f32 %v629_v61, %v626_v56 }
 0x2dd   :  { %v608_v53 = vpop.f32.mrf.mxu1 }
 0x2de   :  { %v609_v55 = vadd.f32 %v608_v53, %v467_v13  ;;  %v631_v13 = vmul.f32 %v568_v10, %v4062_v51  ;;  %v3174_v51 = vld [vmem:[%s4975_s10 + $0x38] sm:$0x7]  ;;  %v730_v53 = vpack.c.b16 %v728_v50, %v728_v50 }
 0x2df   :  { %v770_v18 = vunpack.c.l.b16 %v3174_v51 }
 0x2e0   :  { %v3714_v59 = vpop.eup %3713  ;;  %v619_v60 = vadd.f32 %v3686_v23, %v609_v55 }
 0x2e1   :  { %v627_v62 = vmul.f32 %v3714_v59, %v624_v57  ;;  %v772_v20 = vpack.c.b16 %v770_v18, %v770_v18  ;;  %v3687_v59 = vld [vmem:[%s4976_s11 + $0x2] ss:$0 sm:$0xff] }
 0x2e2   :  { %3715 = vtanh.f32 %v619_v60 }
 0x2e3   :  { %v4155_v2 = vadd.f32 %v630_v63, %v627_v62  ;;  %3279 = vmatmul.msk.bf16.gmra.mxu1 %vm142_vm3, %v772_v20  ;;  %v3688_v20 = vld [vmem:[%s4976_s11 + $0x3] ss:$0 sm:$0xff] }
 0x2e5   :  { %v610_v5 = vpop.f32.mrf.mxu1  ;;  %v640_v6 = vpack.c.bf16 %v4155_v2, %v4153_v1 }
 0x2e7   :  { %3254 = vmatmul.msk.bf16.vlgmr.msrb.gmra.mxu2 %vm204_vm7, %v640_v6 }
 0x2e8   :  { %1083 = vmatpush.bf16.msrb.mxu2 %v1075_v48  ;;  %v3716_v8 = vpop.eup %3715 }
 0x2e9   :  { %v628_v12 = vmul.f32 %v3716_v8, %v625_v11 }
 0x2eb   :  { %v4166_v14 = vadd.f32 %v631_v13, %v628_v12 }
 0x2ec   :  { %1084 = vmatpush.bf16.msrb.mxu2 %v344_v9 }
 0x2ed   :  { %v641_v30 = vpack.c.bf16 %v4166_v14, %v4166_v14 }
 0x2f7   :  { %3255 = vmatmul.msk.bf16.gmra.mxu2 %vm204_vm7, %v641_v30 }
 0x307   :  { %3288 = vmatmul.msk.bf16.vlgmr.msra.gmra.mxu2 %vm142_vm3, %v3619_v35 }
 0x317   :  { %3289 = vmatmul.msk.bf16.gmra.mxu2 %vm142_vm3, %v872_v38 }
 0x330   :  { %v791_v39 = vpop.f32.mrf.mxu1 }
 0x338   :  { %v793_v42 = vpop.f32.mrf.mxu1 }
 0x360   :  { %v796_v46 = vpop.f32.mrf.mxu1 }
 0x368   :  { %v798_v52 = vpop.f32.mrf.mxu1 }
 0x36a   :  { %v669_v16 = vpop.f32.mrf.mxu2 }
 0x372   :  { %v671_v17 = vpop.f32.mrf.mxu2 }
 0x373   :  { %v682_v22 = vpack.c.bf16 %v671_v17, %v669_v16 }
 0x375   :  { %733 = vrot.lane.b32.xlu2 %v682_v22, %s3880_s4 }
 0x37a   :  { %v674_v21 = vpop.f32.mrf.mxu2 }
 0x37b   :  { %v683_v23 = vpack.c.bf16 %v674_v21, %v674_v21 }
 0x37d   :  { %735 = vrot.lane.b32.xlu1 %v683_v23, %s3880_s4  ;;  %v699_v24 = vsel %vm149_vm2, %v683_v23, 0 }
 0x37e   :  { %707 = vmatpush.bf16.msra.mxu3 %v699_v24 }
 0x382   :  { %v676_v27 = vpop.f32.mrf.mxu2  ;;  %708 = vmatpush.bf16.msra.mxu3 %v682_v22 }
 0x385   :  { %1170 = vrot.lane.b32.xlu1 %v344_v9, %s3880_s4  ;;  %3263 = vmatmul.msk.bf16.vlgmr.msra.gmra.mxu3 %vm142_vm3, %v3630_v26 }
 0x386   :  { %961 = vmatpush.bf16.msrb.mxu3 %v3633_v25 }
 0x38a   :  { %962 = vmatpush.bf16.msrb.mxu3 %v3632_v28  ;;  %v898_v62 = vpop.f32.mrf.mxu2 }
 0x38e   :  { %1190 = vmatpush.bf16.msra.mxu3 %v1182_v31 }
 0x392   :  { %v900_v5 = vpop.f32.mrf.mxu2 }
 0x395   :  { %3264 = vmatmul.msk.bf16.gmra.mxu3 %vm142_vm3, %v691_v34  ;;  %v3635_v34 = vld [vmem:[%s4975_s10 + $0x84] sm:$0xff] }
 0x39a   :  { %v903_v10 = vpop.f32.mrf.mxu2 }
 0x3a2   :  { %v905_v13 = vpop.f32.mrf.mxu2 }
 0x3cf   :  { %v734_v43 = vpop.permute.xlu2 %733 }
 0x3ef   :  { %v736_v40 = vpop.permute.xlu1 %735 }
 0x3f0   :  { %v745_v41 = vsel %vm149_vm2, %v736_v40, 0 }
 0x3f1   :  { %753 = vmatpush.bf16.msrb.mxu0 %v745_v41 }
 0x3f5   :  { %754 = vmatpush.bf16.msrb.mxu0 %v734_v43 }
 0x3f7   :  { %v1171_v45 = vpop.permute.xlu1 %1170 }
 0x3f8   :  { %3272 = vmatmul.msk.bf16.vlgmr.msrb.gmra.mxu0 %vm142_vm3, %v3631_v44  ;;  %1191 = vmatpush.bf16.msra.mxu3 %v1171_v45 }
 0x408   :  { %v710_v54 = vpop.f32.mrf.mxu3  ;;  %3273 = vmatmul.msk.bf16.gmra.mxu0 %vm142_vm3, %v730_v53 }
 0x409   :  { %v792_v58 = vadd.f32 %v791_v39, %v710_v54 }
 0x40b   :  { %v805_v61 = vadd.f32 %v3687_v59, %v792_v58 }
 0x40d   :  { %v3281_v0 = vmul.f32 -1.442695, %v805_v61 }
 0x40f   :  { %3717 = vpow2.f32 %v3281_v0 }
 0x410   :  { %v712_v55 = vpop.f32.mrf.mxu3 }
 0x411   :  { %v794_v60 = vadd.f32 %v793_v42, %v712_v55 }
 0x413   :  { %v806_v63 = vadd.f32 %v3687_v59, %v794_v60 }
 0x415   :  { %v3282_v3 = vmul.f32 -1.442695, %v806_v63  ;;  %v3718_v47 = vpop.eup %3717 }
 0x416   :  { %v817_v8 = vadd.f32 1.0, %v3718_v47 }
 0x417   :  { %3719 = vpow2.f32 %v3282_v3 }
 0x418   :  { %v715_v56 = vpop.f32.mrf.mxu3  ;;  %vm825_vm8 = vweird.f32 %v817_v8  ;;  %v831_v27 = vand.u32 2147483648, %v817_v8  ;;  %v829_v28 = vand.u32 2147483647, %v817_v8 }
 0x419   :  { %v797_v4 = vadd.f32 %v796_v46, %v715_v56 }
 0x41a   :  { %v832_v38 = vor.u32 1.1754944e-38, %v831_v27  ;;  %vm830_vm14 = vcmp.eq.f32.partialorder %v829_v28, 8.507059e+37 }
 0x41b   :  { %v807_v6 = vadd.f32 %v3687_v59, %v797_v4 }
 0x41d   :  { %v3720_v48 = vpop.eup %3719  ;;  %v3283_v7 = vmul.f32 -1.442695, %v807_v6 }
 0x41e   :  { %v818_v9 = vadd.f32 1.0, %v3720_v48 }
 0x41f   :  { %3721 = vpow2.f32 %v3283_v7 }
 0x420   :  { %v717_v57 = vpop.f32.mrf.mxu3  ;;  %3723 = vrcp.f32 %v817_v8  ;;  %vm840_vm10 = vweird.f32 %v818_v9  ;;  %v846_v33 = vand.u32 2147483648, %v818_v9  ;;  %v844_v37 = vand.u32 2147483647, %v818_v9 }
 0x421   :  { %3725 = vrcp.f32 %v818_v9 }
 0x422   :  { %v847_v42 = vor.u32 1.1754944e-38, %v846_v33  ;;  %vm845_vm15 = vcmp.eq.f32.partialorder %v844_v37, 8.507059e+37 }
 0x425   :  { %v3722_v11 = vpop.eup %3721 }
 0x426   :  { %v3724_v12 = vpop.eup %3723  ;;  %v4218_v15 = vadd.f32 1.0, %v3722_v11  ;;  %v3622_v11 = vld [vmem:[%s4975_s10 + $0x60] sm:$0xff] }
 0x427   :  { %v3726_v30 = vpop.eup %3725  ;;  %v821_v16 = vmul.f32 %v3724_v12, %v817_v8  ;;  %vm826_vm9 = vweird.f32 %v3724_v12  ;;  %3327 = vmatmul.msk.bf16.vlgmr.msrb.gmra.mxu2 %vm142_vm3, %v3622_v11 }
 0x428   :  { %v836_v17 = vmul.f32 %v3726_v30, %v818_v9  ;;  %3727 = vrcp.f32 %v4218_v15  ;;  %vm841_vm11 = vweird.f32 %v3726_v30  ;;  %vm4225_vm12 = vmor %vm825_vm8, %vm826_vm9  ;;  %vm855_vm0 = vweird.f32 %v4218_v15 }
 0x429   :  { %v822_v22 = vsub.f32 1.0, %v821_v16  ;;  %vm842_vm13 = vmor %vm840_vm10, %vm841_vm11  ;;  %v859_v58 = vand.u32 2147483647, %v4218_v15  ;;  %v861_v59 = vand.u32 2147483648, %v4218_v15 }
 0x42a   :  { %v837_v21 = vsub.f32 1.0, %v836_v17 }
 0x42b   :  { %v823_v23 = vmul.f32 %v3724_v12, %v822_v22  ;;  %v862_v4 = vor.u32 1.1754944e-38, %v861_v59  ;;  %vm860_vm6 = vcmp.eq.f32.partialorder %v859_v58, 8.507059e+37 }
 0x42c   :  { %v838_v26 = vmul.f32 %v3726_v30, %v837_v21  ;;  %v3307_v21 = vld [vmem:[%s4975_s10 + $0x80] sm:$0x7] }
 0x42d   :  { %v824_v31 = vadd.f32 %v3724_v12, %v823_v23  ;;  %v984_v23 = vunpack.c.l.b16 %v3307_v21 }
 0x42e   :  { %v3728_v24 = vpop.eup %3727  ;;  %v839_v36 = vadd.f32 %v3726_v30, %v838_v26  ;;  %v3197_v26 = vld [vmem:[%s4975_s10 + $0x74] sm:$0x7] }
 0x42f   :  { %v851_v29 = vmul.f32 %v3728_v24, %v4218_v15  ;;  %v828_v41 = vsel %vm4225_vm12, %v3724_v12, %v824_v31  ;;  %vm856_vm4 = vweird.f32 %v3728_v24  ;;  %v3194_v12 = vld [vmem:[%s4975_s10 + $0x68] sm:$0x7]  ;;  %v1165_v27 = vunpack.c.l.b16 %v3197_v26 }
 0x430   :  { %v843_v43 = vsel %vm842_vm13, %v3726_v30, %v839_v36  ;;  %v833_v45 = vsel %vm830_vm14, %v832_v38, %v828_v41  ;;  %vm857_vm5 = vmor %vm855_vm0, %vm856_vm4  ;;  %v1065_v13 = vunpack.c.l.b16 %v3194_v12  ;;  %v3316_v36 = vld [vmem:[%s4975_s10 + $0x8c] sm:$0x7] }
 0x431   :  { %v852_v40 = vsub.f32 1.0, %v851_v29  ;;  %v918_v46 = vsub.f32 1.0, %v833_v45  ;;  %v848_v52 = vsel %vm845_vm15, %v847_v42, %v843_v43  ;;  %v924_v60 = vmul.f32 %v833_v45, %v4153_v1 }
 0x432   :  { %v919_v55 = vsub.f32 1.0, %v848_v52  ;;  %v1167_v28 = vpack.c.b16 %v1165_v27, %v1165_v27  ;;  %v1023_v37 = vunpack.c.l.b16 %v3316_v36 }
 0x433   :  { %v853_v50 = vmul.f32 %v3728_v24, %v852_v40 }
 0x435   :  { %v854_v63 = vadd.f32 %v3728_v24, %v853_v50 }
 0x437   :  { %v858_v47 = vsel %vm857_vm5, %v3728_v24, %v854_v63  ;;  %v986_v24 = vpack.c.b16 %v984_v23, %v984_v23 }
 0x438   :  { %v863_v1 = vsel %vm860_vm6, %v862_v4, %v858_v47 }
 0x439   :  { %v920_v48 = vsub.f32 1.0, %v863_v1  ;;  %v926_v8 = vmul.f32 %v863_v1, %v4166_v14  ;;  %v1067_v14 = vpack.c.b16 %v1065_v13, %v1065_v13 }
 0x43b   :  { %3328 = vmatmul.msk.bf16.gmra.mxu2 %vm142_vm3, %v1067_v14 }
 0x475   :  { %v756_v51 = vpop.f32.mrf.mxu0 }
 0x476   :  { %v899_v18 = vadd.f32 %v898_v62, %v756_v51  ;;  %v925_v62 = vmul.f32 %v848_v52, %v4155_v2 }
 0x478   :  { %v912_v25 = vadd.f32 %v3688_v20, %v899_v18  ;;  %v3634_v18 = vld [vmem:[%s4975_s10 + $0x78] sm:$0xff] }
 0x47a   :  { %3729 = vtanh.f32 %v912_v25  ;;  %v3623_v25 = vld [vmem:[%s4975_s10 + $0x6c] sm:$0xff] }
 0x47d   :  { %v758_v32 = vpop.f32.mrf.mxu0 }
 0x47e   :  { %v901_v35 = vadd.f32 %v900_v5, %v758_v32 }
 0x480   :  { %v913_v39 = vadd.f32 %v3688_v20, %v901_v35  ;;  %v3730_v44 = vpop.eup %3729 }
 0x481   :  { %v921_v54 = vmul.f32 %v3730_v44, %v918_v46 }
 0x482   :  { %3731 = vtanh.f32 %v913_v39  ;;  %v1025_v39 = vpack.c.b16 %v1023_v37, %v1023_v37 }
 0x483   :  { %v4236_v0 = vadd.f32 %v924_v60, %v921_v54 }
 0x485   :  { %v761_v49 = vpop.f32.mrf.mxu0 }
 0x486   :  { %v904_v53 = vadd.f32 %v903_v10, %v761_v49  ;;  %v3689_v49 = vld [vmem:[%s4976_s11 + $0x4] ss:$0 sm:$0xff] }
 0x488   :  { %v3732_v56 = vpop.eup %3731  ;;  %v914_v57 = vadd.f32 %v3688_v20, %v904_v53 }
 0x489   :  { %v922_v61 = vmul.f32 %v3732_v56, %v919_v55 }
 0x48a   :  { %3733 = vtanh.f32 %v914_v57 }
 0x48b   :  { %v4238_v3 = vadd.f32 %v925_v62, %v922_v61 }
 0x48d   :  { %v935_v5 = vpack.c.bf16 %v4238_v3, %v4236_v0  ;;  %v763_v6 = vpop.f32.mrf.mxu0 }
 0x48e   :  { %v3637_v6 = vld [vmem:[%s4977_s12] sm:$0xff] }
 0x48f   :  { %3303 = vmatmul.msk.bf16.vlgmr.msrb.gmra.mxu3 %vm204_vm7, %v935_v5  ;;  %v3638_v5 = vld [vmem:[%s4977_s12 + $0x8] sm:$0xff] }
 0x490   :  { %v3734_v7 = vpop.eup %3733 }
 0x491   :  { %v923_v2 = vmul.f32 %v3734_v7, %v920_v48 }
 0x493   :  { %v4244_v9 = vadd.f32 %v926_v8, %v923_v2 }
 0x495   :  { %v936_v10 = vpack.c.bf16 %v4244_v9, %v4244_v9 }
 0x49f   :  { %3304 = vmatmul.msk.bf16.gmra.mxu3 %vm204_vm7, %v936_v10 }
 0x4aa   :  { %v1086_v32 = vpop.f32.mrf.mxu2 }
 0x4af   :  { %3337 = vmatmul.msk.bf16.vlgmr.msra.gmra.mxu3 %vm142_vm3, %v3623_v25 }
 0x4b2   :  { %v1088_v35 = vpop.f32.mrf.mxu2 }
 0x4be   :  { %v1091_v38 = vpop.f32.mrf.mxu2 }
 0x4bf   :  { %3338 = vmatmul.msk.bf16.gmra.mxu3 %vm142_vm3, %v1167_v28 }
 0x4c6   :  { %v1093_v40 = vpop.f32.mrf.mxu2 }
 0x512   :  { %v964_v30 = vpop.f32.mrf.mxu3 }
 0x51a   :  { %v966_v15 = vpop.f32.mrf.mxu3 }
 0x51b   :  { %v977_v16 = vpack.c.bf16 %v966_v15, %v964_v30  ;;  %v3690_v30 = vld [vmem:[%s4976_s11 + $0x5] ss:$0 sm:$0xff] }
 0x51d   :  { %1028 = vrot.lane.b32.xlu0 %v977_v16, %s3880_s4 }
 0x522   :  { %v969_v17 = vpop.f32.mrf.mxu3 }
 0x523   :  { %v978_v22 = vpack.c.bf16 %v969_v17, %v969_v17 }
 0x525   :  { %1030 = vrot.lane.b32.xlu2 %v978_v22, %s3880_s4  ;;  %v994_v51 = vsel %vm149_vm2, %v978_v22, 0 }
 0x526   :  { %1002 = vmatpush.bf16.msra.mxu0 %v994_v51 }
 0x52a   :  { %v971_v20 = vpop.f32.mrf.mxu3  ;;  %1003 = vmatpush.bf16.msra.mxu0 %v977_v16 }
 0x52d   :  { %3312 = vmatmul.msk.bf16.vlgmr.msra.gmra.mxu0 %vm142_vm3, %v3634_v18 }
 0x52e   :  { %1258 = vmatpush.bf16.msrb.mxu0 %v3638_v5 }
 0x532   :  { %v1193_v52 = vpop.f32.mrf.mxu3  ;;  %1259 = vmatpush.bf16.msrb.mxu0 %v3637_v6 }
 0x53a   :  { %v1195_v57 = vpop.f32.mrf.mxu3 }
 0x53d   :  { %3313 = vmatmul.msk.bf16.gmra.mxu0 %vm142_vm3, %v986_v24 }
 0x542   :  { %v1198_v4 = vpop.f32.mrf.mxu3 }
 0x54a   :  { %v1200_v1 = vpop.f32.mrf.mxu3 }
 0x57f   :  { %v1031_v29 = vpop.permute.xlu2 %1030 }
 0x580   :  { %v1040_v31 = vsel %vm149_vm2, %v1031_v29, 0 }
 0x581   :  { %1048 = vmatpush.bf16.msra.mxu1 %v1040_v31 }
 0x58f   :  { %v1029_v33 = vpop.permute.xlu0 %1028 }
 0x590   :  { %1049 = vmatpush.bf16.msra.mxu1 %v1029_v33 }
 0x593   :  { %3321 = vmatmul.msk.bf16.vlgmr.msra.gmra.mxu1 %vm142_vm3, %v3635_v34 }
 0x5a3   :  { %3322 = vmatmul.msk.bf16.gmra.mxu1 %vm142_vm3, %v1025_v39 }
 0x5aa   :  { %v1005_v41 = vpop.f32.mrf.mxu0 }
 0x5ab   :  { %v1087_v46 = vadd.f32 %v1086_v32, %v1005_v41 }
 0x5ad   :  { %v1100_v50 = vadd.f32 %v3689_v49, %v1087_v46 }
 0x5af   :  { %v3330_v54 = vmul.f32 -1.442695, %v1100_v50 }
 0x5b1   :  { %3735 = vpow2.f32 %v3330_v54 }
 0x5b2   :  { %v1007_v42 = vpop.f32.mrf.mxu0 }
 0x5b3   :  { %v1089_v43 = vadd.f32 %v1088_v35, %v1007_v42 }
 0x5b5   :  { %v1101_v53 = vadd.f32 %v3689_v49, %v1089_v43 }
 0x5b7   :  { %v3331_v55 = vmul.f32 -1.442695, %v1101_v53  ;;  %v3736_v58 = vpop.eup %3735 }
 0x5b8   :  { %v1112_v61 = vadd.f32 1.0, %v3736_v58 }
 0x5b9   :  { %3737 = vpow2.f32 %v3331_v55 }
 0x5ba   :  { %v1010_v44 = vpop.f32.mrf.mxu0  ;;  %3739 = vrcp.f32 %v1112_v61  ;;  %vm1120_vm8 = vweird.f32 %v1112_v61  ;;  %v1126_v51 = vand.u32 2147483648, %v1112_v61  ;;  %v1124_v20 = vand.u32 2147483647, %v1112_v61 }
 0x5bb   :  { %v1092_v56 = vadd.f32 %v1091_v38, %v1010_v44 }
 0x5bc   :  { %v1127_v29 = vor.u32 1.1754944e-38, %v1126_v51  ;;  %vm1125_vm14 = vcmp.eq.f32.partialorder %v1124_v20, 8.507059e+37 }
 0x5bd   :  { %v1102_v59 = vadd.f32 %v3689_v49, %v1092_v56 }
 0x5bf   :  { %v3738_v60 = vpop.eup %3737  ;;  %v3332_v62 = vmul.f32 -1.442695, %v1102_v59 }
 0x5c0   :  { %v1113_v63 = vadd.f32 1.0, %v3738_v60  ;;  %v3740_v47 = vpop.eup %3739 }
 0x5c1   :  { %3741 = vpow2.f32 %v3332_v62  ;;  %v1116_v2 = vmul.f32 %v3740_v47, %v1112_v61  ;;  %vm1121_vm9 = vweird.f32 %v3740_v47 }
 0x5c2   :  { %v1012_v45 = vpop.f32.mrf.mxu0  ;;  %3743 = vrcp.f32 %v1113_v63  ;;  %vm1135_vm10 = vweird.f32 %v1113_v63  ;;  %v1141_v23 = vand.u32 2147483648, %v1113_v63  ;;  %vm4300_vm12 = vmor %vm1120_vm8, %vm1121_vm9  ;;  %v1139_v28 = vand.u32 2147483647, %v1113_v63 }
 0x5c3   :  { %v1117_v11 = vsub.f32 1.0, %v1116_v2  ;;  %vm1313_vm8 = vcmask 48128  }
 0x5c4   :  { %v1142_v33 = vor.u32 1.1754944e-38, %v1141_v23  ;;  %vm1140_vm15 = vcmp.eq.f32.partialorder %v1139_v28, 8.507059e+37 }
 0x5c5   :  { %v1118_v15 = vmul.f32 %v3740_v47, %v1117_v11  ;;  %v1227_v11 = vld [vmem:[%s4978_s13 + $0x8] sm:$0x7] }
 0x5c7   :  { %v3742_v48 = vpop.eup %3741  ;;  %v1119_v18 = vadd.f32 %v3740_v47, %v1118_v15 }
 0x5c8   :  { %v3744_v7 = vpop.eup %3743  ;;  %v4294_v8 = vadd.f32 1.0, %v3742_v48 }
 0x5c9   :  { %v1131_v10 = vmul.f32 %v3744_v7, %v1113_v63  ;;  %vm1136_vm11 = vweird.f32 %v3744_v7  ;;  %v1123_v32 = vsel %vm4300_vm12, %v3740_v47, %v1119_v18  ;;  %vm1379_vm12 = vcmask 130048  }
 0x5ca   :  { %3745 = vrcp.f32 %v4294_v8  ;;  %vm1137_vm13 = vmor %vm1135_vm10, %vm1136_vm11  ;;  %v1128_v37 = vsel %vm1125_vm14, %v1127_v29, %v1123_v32  ;;  %vm1150_vm0 = vweird.f32 %v4294_v8  ;;  %v1156_v53 = vand.u32 2147483648, %v4294_v8 }
 0x5cb   :  { %v1132_v14 = vsub.f32 1.0, %v1131_v10  ;;  %v1213_v38 = vsub.f32 1.0, %v1128_v37  ;;  %v1219_v49 = vmul.f32 %v1128_v37, %v4236_v0 }
 0x5cc   :  { %v1157_v0 = vor.u32 1.1754944e-38, %v1156_v53 }
 0x5cd   :  { %v1133_v17 = vmul.f32 %v3744_v7, %v1132_v14 }
 0x5cf   :  { %v1134_v27 = vadd.f32 %v3744_v7, %v1133_v17 }
 0x5d0   :  { %v3746_v22 = vpop.eup %3745 }
 0x5d1   :  { %v1146_v26 = vmul.f32 %v3746_v22, %v4294_v8  ;;  %v1138_v35 = vsel %vm1137_vm13, %v3744_v7, %v1134_v27  ;;  %vm1151_vm4 = vweird.f32 %v3746_v22  ;;  %vm1430_vm13 = vcmask 177152  }
 0x5d2   :  { %v1143_v40 = vsel %vm1140_vm15, %v1142_v33, %v1138_v35  ;;  %vm1152_vm5 = vmor %vm1150_vm0, %vm1151_vm4  ;;  %v3849_v33 = vld [vmem:[%s4968_s3] sm:$0xff] }
 0x5d3   :  { %v1147_v34 = vsub.f32 1.0, %v1146_v26  ;;  %v1214_v43 = vsub.f32 1.0, %v1143_v40  ;;  %v74_v35 = vld [vmem:[%s4972_s7] sm:$0xff] }
 0x5d5   :  { %v1148_v44 = vmul.f32 %v3746_v22, %v1147_v34  ;;  %v71_v34 = vld [vmem:[%s4971_s6] sm:$0xff] }
 0x5d7   :  { %v1149_v56 = vadd.f32 %v3746_v22, %v1148_v44 }
 0x610   :  { %v1051_v12 = vpop.f32.mrf.mxu1 }
 0x611   :  { %v1194_v13 = vadd.f32 %v1193_v52, %v1051_v12  ;;  %v1220_v52 = vmul.f32 %v1143_v40, %v4238_v3  ;;  %v1153_v3 = vsel %vm1152_vm5, %v3746_v22, %v1149_v56  ;;  %v1281_v12 = vunpack.c.l.b16 %v1227_v11  ;;  %v4378_v40 = vld [vmem:[%s4971_s6 + $0x8] sm:$0xff] }
 0x613   :  { %v1207_v16 = vadd.f32 %v3690_v30, %v1194_v13  ;;  %v1283_v13 = vpack.c.b16 %v1281_v12, %v1281_v12 }
 0x615   :  { %3747 = vtanh.f32 %v1207_v16  ;;  %v3691_v16 = vld [vmem:[%s4979_s14] ss:$0 sm:$0xff] }
 0x618   :  { %v1053_v21 = vpop.f32.mrf.mxu1 }
 0x619   :  { %v1196_v25 = vadd.f32 %v1195_v57, %v1053_v21  ;;  %v1154_v57 = vand.u32 2147483647, %v4294_v8 }
 0x61b   :  { %v1208_v31 = vadd.f32 %v3690_v30, %v1196_v25  ;;  %v3748_v36 = vpop.eup %3747  ;;  %vm1155_vm6 = vcmp.eq.f32.partialorder %v1154_v57, 8.507059e+37 }
 0x61c   :  { %v1216_v42 = vmul.f32 %v3748_v36, %v1213_v38  ;;  %v1158_v61 = vsel %vm1155_vm6, %v1157_v0, %v1153_v3 }
 0x61d   :  { %3749 = vtanh.f32 %v1208_v31  ;;  %v1215_v62 = vsub.f32 1.0, %v1158_v61 }
 0x61e   :  { %v4311_v54 = vadd.f32 %v1219_v49, %v1216_v42  ;;  %v4384_v42 = vld [vmem:[%s4972_s7 + $0x8] sm:$0xff]  ;;  %v4391_v49 = vld [vmem:[%s4971_s6 + $0x10] sm:$0x3f] }
 0x620   :  { %v1056_v39 = vpop.f32.mrf.mxu1 }
 0x621   :  { %v1199_v41 = vadd.f32 %v1198_v4, %v1056_v39  ;;  %v1221_v4 = vmul.f32 %v1158_v61, %v4244_v9  ;;  %v3636_v9 = vld [vmem:[%s4978_s13] sm:$0xff] }
 0x623   :  { %v3750_v45 = vpop.eup %3749  ;;  %v1209_v46 = vadd.f32 %v3690_v30, %v1199_v41  ;;  %v64_v30 = vld [vmem:[%s4997_s25] sm:$0x7]  ;;  %s3121_s25 = sshll.u32 %s4983_s18, 4  ;;  %s3122_s25 = int_to_ptr.hbm [resolvable:$true] %s3121_s25 }
 0x624   :  { %v1217_v50 = vmul.f32 %v3750_v45, %v1214_v43  ;;  %v4344_v14 = vsel %vm149_vm2, %v64_v30, 0 }
 0x625   :  { %3751 = vtanh.f32 %v1209_v46  ;;  %1330 = vmatpush.bf16.msra.mxu2 %v4344_v14 }
 0x626   :  { %v4313_v55 = vadd.f32 %v1220_v52, %v1217_v50  ;;  %v4399_v52 = vld [vmem:[%s4972_s7 + $0x10] sm:$0x3f] }
 0x628   :  { %v1058_v58 = vpop.f32.mrf.mxu1  ;;  %v4318_v59 = vpack.c.bf16 %v4313_v55, %v4311_v54 }
 0x62a   :  { %3348 = vmatmul.msk.bf16.vlgmr.msrb.gmra.mxu0 %vm204_vm7, %v4318_v59 }
 0x62b   :  { %v3752_v60 = vpop.eup %3751 }
 0x62c   :  { %v1218_v63 = vmul.f32 %v3752_v60, %v1215_v62 }
 0x62e   :  { %v4323_v5 = vadd.f32 %v1221_v4, %v1218_v63  ;;  %v4419_v63 = vld [vmem:[%s4981_s16 + $0x8] sm:$0xff]  ;;  %v4430_v4 = vld [vmem:[%s4981_s16] sm:$0xff] }
 0x630   :  { %v4327_v6 = vpack.c.bf16 %v4323_v5, %v4323_v5 }
 0x63a   :  { %3349 = vmatmul.msk.bf16.gmra.mxu0 %vm204_vm7, %v4327_v6 }
 0x6a7   :  { %v1261_v47 = vpop.f32.mrf.mxu0 }
 0x6af   :  { %v1263_v1 = vpop.f32.mrf.mxu0 }
 0x6b0   :  { %v1270_v8 = vpack.c.bf16 %v1263_v1, %v1261_v47 }
 0x6b7   :  { %v1266_v48 = vpop.f32.mrf.mxu0 }
 0x6b8   :  { %v1271_v7 = vpack.c.bf16 %v1266_v48, %v1266_v48 }
 0x6ba   :  { %v1291_v2 = vsel %vm149_vm2, %v1271_v7, 0 }
 0x6bb   :  { %1299 = vmatpush.bf16.msrb.mxu1 %v1291_v2 }
 0x6bf   :  { %v1268_v10 = vpop.f32.mrf.mxu0  ;;  %1300 = vmatpush.bf16.msrb.mxu1 %v1270_v8 }
 0x6c2   :  { %3354 = vmatmul.msk.bf16.vlgmr.msrb.gmra.mxu1 %vm142_vm3, %v3636_v9 }
 0x6d2   :  { %3355 = vmatmul.msk.bf16.gmra.mxu1 %vm142_vm3, %v1283_v13 }
 0x73f   :  { %v1302_v15 = vpop.f32.mrf.mxu1 }
 0x740   :  { %v4350_v22 = vadd.f32 %v3691_v16, %v1302_v15 }
 0x747   :  { %v1304_v17 = vpop.f32.mrf.mxu1 }
 0x748   :  { %v4352_v51 = vadd.f32 %v3691_v16, %v1304_v17 }
 0x74a   :  { %v1311_v18 = vpack.c.bf16 %v4352_v51, %v4350_v22 }
 0x74c   :  { %3356 = vmatmul.msk.bf16.vlgmr.msra.gmra.mxu2 %vm1313_vm8, %v1311_v18 }
 0x74f   :  { %v1307_v20 = vpop.f32.mrf.mxu1 }
 0x750   :  { %v4357_v21 = vadd.f32 %v3691_v16, %v1307_v20 }
 0x752   :  { %v1312_v24 = vpack.c.bf16 %v4357_v21, %v4357_v21 }
 0x757   :  { %v1309_v23 = vpop.f32.mrf.mxu1 }
 0x75c   :  { %3357 = vmatmul.msk.bf16.gmra.mxu2 %vm1313_vm8, %v1312_v24 }
 0x7cf   :  { %v1332_v25 = vpop.f32.mrf.mxu2 }
 0x7d7   :  { %v1334_v26 = vpop.f32.mrf.mxu2 }
 0x7d8   :  { %v1341_v31 = vpack.c.bf16 %v1334_v26, %v1332_v25 }
 0x7df   :  { %v1337_v27 = vpop.f32.mrf.mxu2 }
 0x7e0   :  { %v1342_v28 = vpack.c.bf16 %v1337_v27, %v1337_v27 }
 0x7e2   :  { %v1344_v29 = vsel %vm149_vm2, %v1342_v28, 0 }
 0x7e3   :  { %1352 = vmatpush.bf16.msrb.mxu3 %v1344_v29 }
 0x7e7   :  { %v1339_v32 = vpop.f32.mrf.mxu2  ;;  %1353 = vmatpush.bf16.msrb.mxu3 %v1341_v31 }
 0x7ea   :  { %3358 = vmatmul.msk.bf16.vlgmr.msrb.gmra.mxu3 %vm142_vm3, %v3849_v33 }
 0x7fa   :  { %3359 = vmatmul.msk.bf16.gmra.mxu3 %vm142_vm3, %v4008_v19 }
 0x86d   :  { %v1355_v36 = vpop.f32.mrf.mxu3 }
 0x86e   :  { %v1364_v37 = vmul.f32 %v1355_v36, %v71_v34 }
 0x870   :  { %v1367_v38 = vadd.f32 %v1364_v37, %v74_v35 }
 0x872   :  { %vm1370_vm9 = vcmp.ge.f32.partialorder %v1367_v38, 0.0  ;;  %v1373_v39 = vmul.f32 0.01, %v1367_v38 }
 0x874   :  { %v1376_v41 = vsel %vm1370_vm9, %v1367_v38, %v1373_v39 }
 0x875   :  { %1534 = vrot.lane.b32.xlu0 %v1376_v41, %s3882_s21  ;;  %v1357_v43 = vpop.f32.mrf.mxu3 }
 0x876   :  { %v1365_v44 = vmul.f32 %v1357_v43, %v4378_v40 }
 0x878   :  { %v1368_v45 = vadd.f32 %v1365_v44, %v4384_v42 }
 0x87a   :  { %v1374_v46 = vmul.f32 0.01, %v1368_v45  ;;  %vm1371_vm10 = vcmp.ge.f32.partialorder %v1368_v45, 0.0 }
 0x87c   :  { %v1377_v50 = vsel %vm1371_vm10, %v1368_v45, %v1374_v46 }
 0x87d   :  { %1532 = vrot.lane.b32.xlu0 %v4323_v5, %s3882_s21  ;;  %1536 = vrot.lane.b32.xlu2 %v1377_v50, %s3882_s21  ;;  %v1360_v53 = vpop.f32.mrf.mxu3  ;;  %v4414_v62 = vpack.c.bf16 %v1377_v50, %v1376_v41 }
 0x87e   :  { %v1366_v56 = vmul.f32 %v1360_v53, %v4391_v49 }
 0x880   :  { %v1369_v57 = vadd.f32 %v1366_v56, %v4399_v52 }
 0x882   :  { %vm1372_vm11 = vcmp.ge.f32.partialorder %v1369_v57, 0.0  ;;  %v1375_v58 = vmul.f32 0.01, %v1369_v57 }
 0x884   :  { %v1378_v0 = vsel %vm1372_vm11, %v1369_v57, %v1375_v58 }
 0x885   :  { %1530 = vrot.lane.b32.xlu2 %v4313_v55, %s3882_s21  ;;  %1538 = vrot.lane.b32.xlu1 %v1378_v0, %s3882_s21  ;;  %v4406_v3 = vpack.c.bf16 %v1378_v0, %v1378_v0  ;;  %v1362_v60 = vpop.f32.mrf.mxu3 }
 0x886   :  { %3360 = vmatpush.xpose.msk.msra.mxu0 %vm1379_vm12, %v1378_v0  ;;  %3663 = vmatpush.xpose.msk.msra.mxu3 %vm1379_vm12, %v1378_v0 }
 0x887   :  { %v1508_v61 = vsel %vm149_vm2, %v4406_v3, 0 }
 0x888   :  { %1516 = vmatpush.bf16.msra.mxu1 %v1508_v61 }
 0x88a   :  { %3361 = vmatpush.xpose.msk.msra.mxu0 %vm1379_vm12, %v1377_v50  ;;  %3664 = vmatpush.xpose.msk.msra.mxu3 %vm1379_vm12, %v1377_v50 }
 0x88c   :  { %1517 = vmatpush.bf16.msra.mxu1 %v4414_v62 }
 0x88d   :  { %1528 = vrot.lane.b32.xlu1 %v4311_v54, %s3882_s21 }
 0x88e   :  { %3362 = vmatpush.xpose.msk.msra.mxu0 %vm1379_vm12, %v1376_v41  ;;  %3665 = vmatpush.xpose.msk.msra.mxu3 %vm1379_vm12, %v1376_v41 }
 0x891   :  { %3363 = vmatmul.msk.f32.vlgmr.msra.gmra.mxu0 %vm1379_vm12, %v4311_v54  ;;  %3365 = vmatmul.msk.f32.vlgmr.msra.gmra.mxu3 %vm1379_vm12, %v4323_v5 }
 0x892   :  { %1721 = vmatpush.bf16.msrb.mxu0 %v4419_v63 }
 0x896   :  { %1722 = vmatpush.bf16.msrb.mxu0 %v4430_v4 }
 0x899   :  { %3364 = vmatmul.msk.f32.gmra.mxu0 %vm1379_vm12, %v4313_v55 }
 0x8a1   :  { %3384 = vmatmul.msk.bf16.vlgmr.msrb.gmra.mxu0 %vm204_vm7, %v4318_v59 }
 0x8b1   :  { %3385 = vmatmul.msk.bf16.gmra.mxu0 %vm204_vm7, %v4327_v6 }
 0x8d7   :  { %v1537_v1 = vpop.permute.xlu2 %1536 }
 0x8df   :  { %v1531_v48 = vpop.permute.xlu2 %1530 }
 0x8e7   :  { %v1535_v54 = vpop.permute.xlu0 %1534 }
 0x8ef   :  { %v1533_v59 = vpop.permute.xlu0 %1532 }
 0x8f7   :  { %v1539_v47 = vpop.permute.xlu1 %1538 }
 0x8f8   :  { %3368 = vmatpush.xpose.msk.msrb.mxu2 %vm1379_vm12, %v1539_v47 }
 0x8fc   :  { %3369 = vmatpush.xpose.msk.msrb.mxu2 %vm1379_vm12, %v1537_v1 }
 0x8ff   :  { %v1529_v5 = vpop.permute.xlu1 %1528 }
 0x900   :  { %3370 = vmatpush.xpose.msk.msrb.mxu2 %vm1379_vm12, %v1535_v54 }
 0x903   :  { %3371 = vmatmul.msk.f32.vlgmr.msrb.gmra.mxu2 %vm1379_vm12, %v1529_v5 }
 0x90b   :  { %3372 = vmatmul.msk.f32.gmra.mxu2 %vm1379_vm12, %v1531_v48 }
 0x90e   :  { %v1415_v55 = vpop.f32.mrf.mxu0 }
 0x90f   :  { %v1424_v17 = vsel %vm142_vm3, %v1415_v55, -inf }
 0x913   :  { %3373 = vmatmul.msk.f32.gmra.mxu2 %vm1379_vm12, %v1533_v59 }
 0x914   :  { %v1421_v43 = vpop.f32.mrf.mxu3 }
 0x915   :  { %v1431_v45 = vsel %vm1430_vm13, %v1421_v43, -inf }
 0x916   :  { %v1418_v6 = vpop.f32.mrf.mxu0 }
 0x917   :  { %v1427_v30 = vsel %vm142_vm3, %v1418_v6, -inf }
 0x91e   :  { %v4449_v7 = vpop.f32.mrf.mxu0 }
 0x926   :  { %v4451_v2 = vpop.f32.mrf.mxu0 }
 0x92e   :  { %v4453_v8 = vpop.f32.mrf.mxu0 }
 0x936   :  { %v1731_v9 = vpop.f32.mrf.mxu0 }
 0x986   :  { %v1569_v10 = vpop.f32.mrf.mxu2 }
 0x987   :  { %v1578_v11 = vsel %vm142_vm3, %v1569_v10, -inf }
 0x988   :  { %1579 = vmax.xlane.f32.xlu1 %v1578_v11 }
 0x98e   :  { %v1572_v12 = vpop.f32.mrf.mxu2 }
 0x98f   :  { %v1581_v13 = vsel %vm142_vm3, %v1572_v12, -inf }
 0x990   :  { %1582 = vmax.xlane.f32.xlu2 %v1581_v13  ;;  %1428 = vmax.xlane.f32.xlu1 %v1427_v30 }
 0x996   :  { %v1575_v15 = vpop.f32.mrf.mxu2 }
 0x997   :  { %v1584_v16 = vsel %vm1430_vm13, %v1575_v15, -inf }
 0x998   :  { %1585 = vmax.xlane.f32.xlu0 %v1584_v16  ;;  %1425 = vmax.xlane.f32.xlu2 %v1424_v17 }
 0x9a9   :  { %1656 = vrot.lane.b32.xlu1 %v4406_v3, %s3882_s21 }
 0x9fb   :  { %v1580_v18 = vpop.xlane.xlu1 %1579 }
 0x9fc   :  { %v1587_v20 = vsub.f32 %v1569_v10, %v1580_v18 }
 0x9fe   :  { %v1590_v23 = vmul.f32 1.442695, %v1587_v20 }
 0xa00   :  { %3753 = vpow2.f32 %v1590_v23 }
 0xa03   :  { %v1583_v24 = vpop.xlane.xlu2 %1582  ;;  %v1429_v25 = vpop.xlane.xlu1 %1428 }
 0xa04   :  { %v1588_v26 = vsub.f32 %v1572_v12, %v1583_v24  ;;  %v1435_v27 = vsub.f32 %v1418_v6, %v1429_v25 }
 0xa06   :  { %v4462_v28 = vpop.eup %3753  ;;  %v1592_v29 = vmul.f32 1.442695, %v1588_v26  ;;  %v1439_v31 = vmul.f32 1.442695, %v1435_v27 }
 0xa07   :  { %v1596_v32 = vsel %vm142_vm3, %v4462_v28, 0.0 }
 0xa08   :  { %3755 = vpow2.f32 %v1592_v29  ;;  %1597 = vadd.xlane.f32.xlu2 %v1596_v32 }
 0xa09   :  { %3757 = vpow2.f32 %v1439_v31 }
 0xa0b   :  { %v1586_v33 = vpop.xlane.xlu0 %1585  ;;  %v1426_v41 = vpop.xlane.xlu2 %1425 }
 0xa0c   :  { %v1589_v35 = vsub.f32 %v1575_v15, %v1586_v33  ;;  %v1434_v44 = vsub.f32 %v1415_v55, %v1426_v41 }
 0xa0e   :  { %v4466_v34 = vpop.eup %3755  ;;  %v1594_v39 = vmul.f32 1.442695, %v1589_v35  ;;  %v1437_v46 = vmul.f32 1.442695, %v1434_v44 }
 0xa0f   :  { %v4468_v36 = vpop.eup %3757  ;;  %v1599_v37 = vsel %vm142_vm3, %v4466_v34, 0.0 }
 0xa10   :  { %1600 = vadd.xlane.f32.xlu0 %v1599_v37  ;;  %v1446_v38 = vsel %vm142_vm3, %v4468_v36, 0.0  ;;  %3759 = vpow2.f32 %v1594_v39 }
 0xa11   :  { %1447 = vadd.xlane.f32.xlu1 %v1446_v38  ;;  %3761 = vpow2.f32 %v1437_v46 }
 0xa16   :  { %v4475_v53 = vpop.eup %3759 }
 0xa17   :  { %v1602_v57 = vsel %vm1430_vm13, %v4475_v53, 0.0  ;;  %v4482_v58 = vpop.eup %3761 }
 0xa18   :  { %1432 = vmax.xlane.f32.xlu0 %v1431_v45  ;;  %v1443_v0 = vsel %vm142_vm3, %v4482_v58, 0.0 }
 0xa1b   :  { %v1657_v50 = vpop.permute.xlu1 %1656 }
 0xa1c   :  { %v1666_v56 = vsel %vm149_vm2, %v1657_v50, 0 }
 0xa1d   :  { %1674 = vmatpush.bf16.msrb.mxu3 %v1666_v56 }
 0xa20   :  { %1603 = vadd.xlane.f32.xlu0 %v1602_v57  ;;  %1654 = vrot.lane.b32.xlu2 %v4414_v62, %s3882_s21 }
 0xa28   :  { %1444 = vadd.xlane.f32.xlu0 %v1443_v0 }
 0xa7b   :  { %v1598_v60 = vpop.xlane.xlu2 %1597 }
 0xa7c   :  { %3763 = vrcp.f32 %v1598_v60  ;;  %v1616_v11 = vand.u32 2147483648, %v1598_v60  ;;  %vm1610_vm15 = vweird.f32 %v1598_v60  ;;  %v1614_v13 = vand.u32 2147483647, %v1598_v60 }
 0xa7e   :  { %v1617_v23 = vor.u32 1.1754944e-38, %v1616_v11  ;;  %vm1615_vm5 = vcmp.eq.f32.partialorder %v1614_v13, 8.507059e+37 }
 0xa82   :  { %v3764_v61 = vpop.eup %3763 }
 0xa83   :  { %v1606_v47 = vmul.f32 %v3764_v61, %v1598_v60  ;;  %v1601_v1 = vpop.xlane.xlu0 %1600  ;;  %v1655_v54 = vpop.permute.xlu2 %1654  ;;  %vm1611_vm14 = vweird.f32 %v3764_v61 }
 0xa84   :  { %3765 = vrcp.f32 %v1601_v1  ;;  %1675 = vmatpush.bf16.msrb.mxu3 %v1655_v54  ;;  %v4486_v59 = vpop.xlane.xlu1 %1447  ;;  %vm1612_vm0 = vmor %vm1610_vm15, %vm1611_vm14  ;;  %v1631_v15 = vand.u32 2147483648, %v1601_v1  ;;  %v1629_v20 = vand.u32 2147483647, %v1601_v1  ;;  %vm1625_vm6 = vweird.f32 %v1601_v1 }
 0xa85   :  { %v1607_v5 = vsub.f32 1.0, %v1606_v47  ;;  %3767 = vrcp.f32 %v4486_v59 }
 0xa86   :  { %v1632_v26 = vor.u32 1.1754944e-38, %v1631_v15  ;;  %vm1630_vm10 = vcmp.eq.f32.partialorder %v1629_v20, 8.507059e+37 }
 0xa87   :  { %v1608_v48 = vmul.f32 %v3764_v61, %v1607_v5  ;;  %v1478_v5 = vand.u32 2147483648, %v4486_v59 }
 0xa89   :  { %v1609_v6 = vadd.f32 %v3764_v61, %v1608_v48 }
 0xa8a   :  { %v3766_v55 = vpop.eup %3765 }
 0xa8b   :  { %v1621_v9 = vmul.f32 %v3766_v55, %v1601_v1  ;;  %v1433_v10 = vpop.xlane.xlu0 %1432  ;;  %v1613_v17 = vsel %vm1612_vm0, %v3764_v61, %v1609_v6  ;;  %vm1626_vm4 = vweird.f32 %v3766_v55  ;;  %v3768_v27 = vpop.eup %3767  ;;  %v1476_v6 = vand.u32 2147483647, %v4486_v59 }
 0xa8c   :  { %v1436_v12 = vsub.f32 %v1421_v43, %v1433_v10  ;;  %v1618_v25 = vsel %vm1615_vm5, %v1617_v23, %v1613_v17  ;;  %vm1627_vm9 = vmor %vm1625_vm6, %vm1626_vm4  ;;  %v1468_v38 = vmul.f32 %v3768_v27, %v4486_v59  ;;  %vm1473_vm15 = vweird.f32 %v3768_v27 }
 0xa8d   :  { %v1622_v30 = vsub.f32 1.0, %v1621_v9  ;;  %v1619_v33 = vmul.f32 %v4462_v28, %v1618_v25  ;;  %vm1472_vm5 = vweird.f32 %v4486_v59 }
 0xa8e   :  { %v1441_v16 = vmul.f32 1.442695, %v1436_v12  ;;  %v1469_v44 = vsub.f32 1.0, %v1468_v38  ;;  %vm4499_vm6 = vmor %vm1472_vm5, %vm1473_vm15 }
 0xa8f   :  { %v1623_v18 = vmul.f32 %v3766_v55, %v1622_v30 }
 0xa90   :  { %3769 = vpow2.f32 %v1441_v16  ;;  %v1470_v28 = vmul.f32 %v3768_v27, %v1469_v44  ;;  %v1479_v16 = vor.u32 1.1754944e-38, %v1478_v5 }
 0xa91   :  { %v1624_v24 = vadd.f32 %v3766_v55, %v1623_v18 }
 0xa92   :  { %v1471_v61 = vadd.f32 %v3768_v27, %v1470_v28 }
 0xa93   :  { %v1628_v29 = vsel %vm1627_vm9, %v3766_v55, %v1624_v24  ;;  %v1604_v31 = vpop.xlane.xlu0 %1603 }
 0xa94   :  { %v1633_v32 = vsel %vm1630_vm10, %v1632_v26, %v1628_v29  ;;  %3771 = vrcp.f32 %v1604_v31  ;;  %v1646_v56 = vand.u32 2147483648, %v1604_v31  ;;  %v1644_v57 = vand.u32 2147483647, %v1604_v31  ;;  %v3640_v26 = vld [vmem:[%s4973_s8 + $0x38] sm:$0xff]  ;;  %v3639_v29 = vld [vmem:[%s4973_s8 + $0x30] sm:$0xff] }
 0xa95   :  { %v1634_v35 = vmul.f32 %v4466_v34, %v1633_v32  ;;  %vm1640_vm14 = vweird.f32 %v1604_v31  ;;  %v1475_v11 = vsel %vm4499_vm6, %v3768_v27, %v1471_v61  ;;  %vm1477_vm10 = vcmp.eq.f32.partialorder %v1476_v6, 8.507059e+37  ;;  %1806 = vmatpush.bf16.msrb.mxu1 %v3640_v26 }
 0xa96   :  { %v4491_v37 = vpop.eup %3769  ;;  %v1647_v47 = vor.u32 1.1754944e-38, %v1646_v56  ;;  %vm1645_vm4 = vcmp.eq.f32.partialorder %v1644_v57, 8.507059e+37  ;;  %v1480_v18 = vsel %vm1477_vm10, %v1479_v16, %v1475_v11  ;;  %v4534_v57 = vld [vmem:[%s4980_s15] sm:$0xff] }
 0xa97   :  { %v1650_v39 = vpack.c.bf16 %v1634_v35, %v1619_v33  ;;  %v1449_v41 = vsel %vm1430_vm13, %v4491_v37, 0.0  ;;  %v1481_v23 = vmul.f32 %v4468_v36, %v1480_v18  ;;  %v3643_v18 = vld [vmem:[%s4974_s9 + $0x30] sm:$0xff] }
 0xa98   :  { %1450 = vadd.xlane.f32.xlu2 %v1449_v41 }
 0xa99   :  { %3374 = vmatmul.msk.bf16.vlgmr.msrb.gmra.mxu3 %vm142_vm3, %v1650_v39  ;;  %1807 = vmatpush.bf16.msrb.mxu1 %v3639_v29 }
 0xa9a   :  { %v3772_v43 = vpop.eup %3771 }
 0xa9b   :  { %v1636_v45 = vmul.f32 %v3772_v43, %v1604_v31  ;;  %v1445_v46 = vpop.xlane.xlu0 %1444  ;;  %vm1641_vm11 = vweird.f32 %v3772_v43 }
 0xa9c   :  { %3773 = vrcp.f32 %v1445_v46  ;;  %vm1642_vm0 = vmor %vm1640_vm14, %vm1641_vm11  ;;  %v1463_v12 = vand.u32 2147483648, %v1445_v46  ;;  %v1461_v30 = vand.u32 2147483647, %v1445_v46  ;;  %vm1457_vm11 = vweird.f32 %v1445_v46 }
 0xa9d   :  { %v1637_v50 = vsub.f32 1.0, %v1636_v45 }
 0xa9e   :  { %v1464_v59 = vor.u32 1.1754944e-38, %v1463_v12  ;;  %vm1462_vm15 = vcmp.eq.f32.partialorder %v1461_v30, 8.507059e+37 }
 0xa9f   :  { %v1638_v34 = vmul.f32 %v3772_v43, %v1637_v50  ;;  %v4522_v50 = vld [vmem:[%s4980_s15 + $0x8] sm:$0xff]  ;;  %s3885_s15 = smov 12  }
 0xaa0   :  { %1757 = vmatpush.bf16.msra.mxu2 %v4522_v50 }
 0xaa1   :  { %v1639_v0 = vadd.f32 %v3772_v43, %v1638_v34 }
 0xaa2   :  { %v3774_v60 = vpop.eup %3773 }
 0xaa3   :  { %v1453_v1 = vmul.f32 %v3774_v60, %v1445_v46  ;;  %v1643_v54 = vsel %vm1642_vm0, %v3772_v43, %v1639_v0  ;;  %vm1458_vm9 = vweird.f32 %v3774_v60 }
 0xaa4   :  { %v1648_v48 = vsel %vm1645_vm4, %v1647_v47, %v1643_v54  ;;  %vm1459_vm14 = vmor %vm1457_vm11, %vm1458_vm9  ;;  %1758 = vmatpush.bf16.msra.mxu2 %v4534_v57 }
 0xaa5   :  { %v1454_v9 = vsub.f32 1.0, %v1453_v1  ;;  %v1649_v10 = vmul.f32 %v4475_v53, %v1648_v48 }
 0xaa7   :  { %v1455_v13 = vmul.f32 %v3774_v60, %v1454_v9  ;;  %v1651_v15 = vpack.c.bf16 %v1649_v10, %v1649_v10 }
 0xaa9   :  { %v1456_v17 = vadd.f32 %v3774_v60, %v1455_v13  ;;  %3375 = vmatmul.msk.bf16.gmra.mxu3 %vm142_vm3, %v1651_v15 }
 0xaab   :  { %v1460_v20 = vsel %vm1459_vm14, %v3774_v60, %v1456_v17  ;;  %v3644_v17 = vld [vmem:[%s4974_s9 + $0x38] sm:$0xff] }
 0xaac   :  { %v1465_v53 = vsel %vm1462_vm15, %v1464_v59, %v1460_v20  ;;  %1859 = vmatpush.bf16.msra.mxu3 %v3644_v17 }
 0xaad   :  { %v1466_v24 = vmul.f32 %v4482_v58, %v1465_v53  ;;  %v4556_v53 = vld [vmem:[%s4982_s17] ss:$0 sm:$0xff] }
 0xaaf   :  { %v1497_v25 = vpack.c.bf16 %v1481_v23, %v1466_v24 }
 0xab0   :  { %1860 = vmatpush.bf16.msra.mxu3 %v3643_v18 }
 0xab1   :  { %3366 = vmatmul.msk.bf16.vlgmr.msra.gmra.mxu1 %vm142_vm3, %v1497_v25 }
 0xb0b   :  { %v1451_v27 = vpop.xlane.xlu2 %1450 }
 0xb0c   :  { %3775 = vrcp.f32 %v1451_v27  ;;  %v1493_v33 = vand.u32 2147483648, %v1451_v27  ;;  %v1491_v35 = vand.u32 2147483647, %v1451_v27  ;;  %vm1487_vm4 = vweird.f32 %v1451_v27 }
 0xb0e   :  { %v1494_v39 = vor.u32 1.1754944e-38, %v1493_v33  ;;  %vm1492_vm6 = vcmp.eq.f32.partialorder %v1491_v35, 8.507059e+37 }
 0xb12   :  { %v3776_v31 = vpop.eup %3775 }
 0xb13   :  { %v1483_v32 = vmul.f32 %v3776_v31, %v1451_v27  ;;  %vm1488_vm0 = vweird.f32 %v3776_v31 }
 0xb14   :  { %vm1489_vm5 = vmor %vm1487_vm4, %vm1488_vm0 }
 0xb15   :  { %v1484_v36 = vsub.f32 1.0, %v1483_v32 }
 0xb17   :  { %v1485_v58 = vmul.f32 %v3776_v31, %v1484_v36 }
 0xb19   :  { %v1486_v38 = vadd.f32 %v3776_v31, %v1485_v58 }
 0xb1b   :  { %v1490_v41 = vsel %vm1489_vm5, %v3776_v31, %v1486_v38 }
 0xb1c   :  { %v1677_v43 = vpop.f32.mrf.mxu3  ;;  %v1495_v44 = vsel %vm1492_vm6, %v1494_v39, %v1490_v41 }
 0xb1d   :  { %v1496_v45 = vmul.f32 %v4491_v37, %v1495_v44 }
 0xb1f   :  { %v1498_v46 = vpack.c.bf16 %v1496_v45, %v1496_v45 }
 0xb21   :  { %3367 = vmatmul.msk.bf16.gmra.mxu1 %vm142_vm3, %v1498_v46 }
 0xb24   :  { %v1679_v28 = vpop.f32.mrf.mxu3 }
 0xb25   :  { %v3675_v56 = vpack.i.bf16 %v1679_v28, %v1677_v43  ;;  %v3412_v43 = vld [vmem:[%s4975_s10 + $0x98] sm:$0x7] }
 0xb26   :  { %v1963_v44 = vunpack.c.l.b16 %v3412_v43 }
 0xb27   :  { %3676 = vrot.lane.b32.xlu0 %v3675_v56, %s3883_s22 }
 0xb28   :  { %v1965_v45 = vpack.c.b16 %v1963_v44, %v1963_v44  ;;  %v3649_v44 = vld [vmem:[%s4977_s12 + $0x18] sm:$0xff] }
 0xb2c   :  { %v1682_v34 = vpop.f32.mrf.mxu3 }
 0xb2e   :  { %v1519_v0 = vpop.f32.mrf.mxu1 }
 0xb2f   :  { %1693 = vrot.lane.b32.xlu0 %v1682_v34, %s3883_s22 }
 0xb31   :  { %3408 = vmatmul.msk.bf16.vlgmr.msrb.gmra.mxu1 %vm204_vm7, %v4414_v62 }
 0xb34   :  { %v1684_v37 = vpop.f32.mrf.mxu3 }
 0xb35   :  { %v3645_v37 = vld [vmem:[%s4975_s10 + $0xa8] sm:$0xff] }
 0xb36   :  { %v1521_v60 = vpop.f32.mrf.mxu1 }
 0xb41   :  { %3409 = vmatmul.msk.bf16.gmra.mxu1 %vm204_vm7, %v4406_v3 }
 0xb99   :  { %v3677_v61 = vpop.permute.xlu0 %3676 }
 0xb9a   :  { %v3679_v47 = vunpack.i.h.bf16 %v3677_v61  ;;  %v3678_v1 = vunpack.i.l.bf16 %v3677_v61 }
 0xb9c   :  { %v1698_v54 = vsel %vm1379_vm12, %v1519_v0, %v3678_v1  ;;  %v1699_v62 = vsel %vm1379_vm12, %v1521_v60, %v3679_v47  ;;  %v3432_v60 = vld [vmem:[%s4975_s10 + $0xb0] sm:$0x7]  ;;  %v3642_v1 = vld [vmem:[%s4975_s10 + $0x9c] sm:$0xff] }
 0xb9d   :  { %v1701_v5 = vpack.c.bf16 %v1699_v62, %v1698_v54  ;;  %v1882_v61 = vunpack.c.l.b16 %v3432_v60  ;;  %v3415_v62 = vld [vmem:[%s4975_s10 + $0xa4] sm:$0x7] }
 0xb9e   :  { %v1524_v48 = vpop.f32.mrf.mxu1 }
 0xb9f   :  { %3394 = vmatmul.msk.bf16.vlgmr.msra.gmra.mxu2 %vm204_vm7, %v1701_v5  ;;  %v1884_v47 = vpack.c.b16 %v1882_v61, %v1882_v61  ;;  %v2063_v5 = vunpack.c.l.b16 %v3415_v62 }
 0xba1   :  { %v1694_v55 = vpop.permute.xlu0 %1693 }
 0xba2   :  { %v1700_v6 = vsel %vm1379_vm12, %v1524_v48, %v1694_v55  ;;  %v2065_v48 = vpack.c.b16 %v2063_v5, %v2063_v5 }
 0xba3   :  { %v1702_v9 = vpack.c.bf16 %v1700_v6, %v1700_v6 }
 0xba6   :  { %v1526_v3 = vpop.f32.mrf.mxu1 }
 0xbae   :  { %v1809_v10 = vpop.f32.mrf.mxu1 }
 0xbaf   :  { %3395 = vmatmul.msk.bf16.gmra.mxu2 %vm204_vm7, %v1702_v9 }
 0xbb6   :  { %v1811_v11 = vpop.f32.mrf.mxu1 }
 0xbb7   :  { %v1822_v12 = vpack.c.bf16 %v1811_v11, %v1809_v10  ;;  %v3646_v11 = vld [vmem:[%s4975_s10 + $0xb4] sm:$0xff] }
 0xbb9   :  { %2068 = vrot.lane.b32.xlu2 %v1822_v12, %s3880_s4 }
 0xbbe   :  { %v1814_v13 = vpop.f32.mrf.mxu1 }
 0xbbf   :  { %v1823_v30 = vpack.c.bf16 %v1814_v13, %v1814_v13  ;;  %v3441_v13 = vld [vmem:[%s4975_s10 + $0xbc] sm:$0x7] }
 0xbc1   :  { %2070 = vrot.lane.b32.xlu1 %v1823_v30, %s3880_s4  ;;  %v1973_v15 = vsel %vm149_vm2, %v1823_v30, 0 }
 0xbc2   :  { %1981 = vmatpush.bf16.msra.mxu1 %v1973_v15 }
 0xbc6   :  { %v1816_v16 = vpop.f32.mrf.mxu1  ;;  %1982 = vmatpush.bf16.msra.mxu1 %v1822_v12 }
 0xbc7   :  { %v1921_v16 = vunpack.c.l.b16 %v3441_v13 }
 0xbc9   :  { %v1923_v17 = vpack.c.b16 %v1921_v16, %v1921_v16 }
 0xbca   :  { %2227 = vmatpush.bf16.msrb.mxu1 %v4344_v14 }
 0xc13   :  { %v2069_v33 = vpop.permute.xlu2 %2068 }
 0xc22   :  { %v1760_v59 = vpop.f32.mrf.mxu2 }
 0xc23   :  { %v1761_v20 = vadd.f32 %v1760_v59, %v4449_v7 }
 0xc25   :  { %v1772_v14 = vadd.f32 %v4556_v53, %v1761_v20 }
 0xc27   :  { %3777 = vtanh.f32 %v1772_v14 }
 0xc2a   :  { %v1762_v23 = vpop.f32.mrf.mxu2 }
 0xc2b   :  { %v1763_v24 = vadd.f32 %v1762_v23, %v4451_v2 }
 0xc2d   :  { %v1773_v25 = vadd.f32 %v4556_v53, %v1763_v24  ;;  %v4561_v29 = vpop.eup %3777  ;;  %v3693_v24 = vld [vmem:[%s4976_s11 + $0x6] ss:$0 sm:$0xff] }
 0xc2f   :  { %3779 = vtanh.f32 %v1773_v25 }
 0xc32   :  { %v1765_v26 = vpop.f32.mrf.mxu2 }
 0xc33   :  { %v2071_v27 = vpop.permute.xlu1 %2070  ;;  %v1766_v32 = vadd.f32 %v1765_v26, %v4453_v8  ;;  %v3641_v8 = vld [vmem:[%s4975_s10 + $0x90] sm:$0xff] }
 0xc34   :  { %v2080_v7 = vsel %vm149_vm2, %v2071_v27, 0  ;;  %3452 = vmatmul.msk.bf16.vlgmr.msra.gmra.mxu1 %vm142_vm3, %v3641_v8 }
 0xc35   :  { %v4564_v31 = vpop.eup %3779  ;;  %2088 = vmatpush.bf16.msrb.mxu3 %v2080_v7  ;;  %v1774_v2 = vadd.f32 %v4556_v53, %v1766_v32 }
 0xc36   :  { %v1833_v36 = vpack.c.bf16 %v4564_v31, %v4561_v29 }
 0xc37   :  { %3781 = vtanh.f32 %v1774_v2 }
 0xc38   :  { %3428 = vmatmul.msk.bf16.vlgmr.msra.gmra.mxu3 %vm204_vm7, %v1833_v36 }
 0xc39   :  { %2089 = vmatpush.bf16.msrb.mxu3 %v2069_v33 }
 0xc3a   :  { %v1767_v58 = vpop.f32.mrf.mxu2 }
 0xc3d   :  { %v4571_v35 = vpop.eup %3781 }
 0xc3e   :  { %v1834_v38 = vpack.c.bf16 %v4571_v35, %v4571_v35 }
 0xc44   :  { %3453 = vmatmul.msk.bf16.gmra.mxu1 %vm142_vm3, %v1965_v45 }
 0xc48   :  { %3429 = vmatmul.msk.bf16.gmra.mxu3 %vm204_vm7, %v1834_v38 }
 0xc58   :  { %3462 = vmatmul.msk.bf16.vlgmr.msrb.gmra.mxu3 %vm142_vm3, %v3642_v1 }
 0xc68   :  { %3463 = vmatmul.msk.bf16.gmra.mxu3 %vm142_vm3, %v2065_v48 }
 0xcb1   :  { %v1984_v54 = vpop.f32.mrf.mxu1 }
 0xcb9   :  { %v1986_v3 = vpop.f32.mrf.mxu1 }
 0xcbb   :  { %v1862_v39 = vpop.f32.mrf.mxu3 }
 0xcc1   :  { %v1989_v9 = vpop.f32.mrf.mxu1 }
 0xcc3   :  { %v1864_v41 = vpop.f32.mrf.mxu3 }
 0xcc4   :  { %v1875_v34 = vpack.c.bf16 %v1864_v41, %v1862_v39 }
 0xcc9   :  { %v1991_v12 = vpop.f32.mrf.mxu1 }
 0xccb   :  { %v1867_v46 = vpop.f32.mrf.mxu3 }
 0xccc   :  { %v1876_v28 = vpack.c.bf16 %v1867_v46, %v1867_v46  ;;  %v3648_v46 = vld [vmem:[%s4977_s12 + $0x10] sm:$0xff] }
 0xcce   :  { %v1892_v56 = vsel %vm149_vm2, %v1876_v28, 0  ;;  %1928 = vrot.lane.b32.xlu0 %v1876_v28, %s3880_s4 }
 0xccf   :  { %1900 = vmatpush.bf16.msra.mxu0 %v1892_v56 }
 0xcd3   :  { %v1869_v0 = vpop.f32.mrf.mxu3  ;;  %1901 = vmatpush.bf16.msra.mxu0 %v1875_v34 }
 0xcd6   :  { %1926 = vrot.lane.b32.xlu0 %v1875_v34, %s3880_s4  ;;  %3437 = vmatmul.msk.bf16.vlgmr.msra.gmra.mxu0 %vm142_vm3, %v3645_v37 }
 0xcd7   :  { %2158 = vmatpush.bf16.msrb.mxu0 %v3649_v44 }
 0xcdb   :  { %v2091_v7 = vpop.f32.mrf.mxu3  ;;  %2159 = vmatpush.bf16.msrb.mxu0 %v3648_v46 }
 0xce3   :  { %v2093_v2 = vpop.f32.mrf.mxu3 }
 0xce6   :  { %3438 = vmatmul.msk.bf16.gmra.mxu0 %vm142_vm3, %v1884_v47  ;;  %v3694_v47 = vld [vmem:[%s4976_s11 + $0x7] ss:$0 sm:$0xff] }
 0xceb   :  { %v2096_v41 = vpop.f32.mrf.mxu3 }
 0xcf3   :  { %v2098_v34 = vpop.f32.mrf.mxu3 }
 0xd40   :  { %v1929_v55 = vpop.permute.xlu0 %1928 }
 0xd41   :  { %v1938_v6 = vsel %vm149_vm2, %v1929_v55, 0 }
 0xd42   :  { %1946 = vmatpush.bf16.msrb.mxu2 %v1938_v6 }
 0xd48   :  { %v1927_v10 = vpop.permute.xlu0 %1926 }
 0xd49   :  { %1947 = vmatpush.bf16.msrb.mxu2 %v1927_v10 }
 0xd4c   :  { %3446 = vmatmul.msk.bf16.vlgmr.msrb.gmra.mxu2 %vm142_vm3, %v3646_v11 }
 0xd53   :  { %v1903_v30 = vpop.f32.mrf.mxu0 }
 0xd54   :  { %v1985_v15 = vadd.f32 %v1984_v54, %v1903_v30 }
 0xd56   :  { %v1998_v25 = vadd.f32 %v3693_v24, %v1985_v15 }
 0xd58   :  { %v3455_v26 = vmul.f32 -1.442695, %v1998_v25 }
 0xd5a   :  { %3783 = vpow2.f32 %v3455_v26 }
 0xd5b   :  { %v1905_v18 = vpop.f32.mrf.mxu0 }
 0xd5c   :  { %v1987_v59 = vadd.f32 %v1986_v3, %v1905_v18  ;;  %3447 = vmatmul.msk.bf16.gmra.mxu2 %vm142_vm3, %v1923_v17 }
 0xd5e   :  { %v1999_v27 = vadd.f32 %v3693_v24, %v1987_v59 }
 0xd60   :  { %v3456_v32 = vmul.f32 -1.442695, %v1999_v27  ;;  %v3784_v36 = vpop.eup %3783 }
 0xd61   :  { %v2010_v33 = vadd.f32 1.0, %v3784_v36 }
 0xd62   :  { %3785 = vpow2.f32 %v3456_v32 }
 0xd63   :  { %v1908_v20 = vpop.f32.mrf.mxu0  ;;  %3787 = vrcp.f32 %v2010_v33  ;;  %vm2018_vm9 = vweird.f32 %v2010_v33  ;;  %v2024_v62 = vand.u32 2147483648, %v2010_v33  ;;  %v2022_v48 = vand.u32 2147483647, %v2010_v33 }
 0xd64   :  { %v1990_v14 = vadd.f32 %v1989_v9, %v1908_v20 }
 0xd65   :  { %v2025_v6 = vor.u32 1.1754944e-38, %v2024_v62  ;;  %vm2023_vm14 = vcmp.eq.f32.partialorder %v2022_v48, 8.507059e+37 }
 0xd66   :  { %v2000_v58 = vadd.f32 %v3693_v24, %v1990_v14 }
 0xd68   :  { %v3786_v38 = vpop.eup %3785  ;;  %v3457_v8 = vmul.f32 -1.442695, %v2000_v58 }
 0xd69   :  { %v2011_v39 = vadd.f32 1.0, %v3786_v38  ;;  %v3788_v43 = vpop.eup %3787 }
 0xd6a   :  { %3789 = vpow2.f32 %v3457_v8  ;;  %v2014_v45 = vmul.f32 %v3788_v43, %v2010_v33  ;;  %vm2019_vm10 = vweird.f32 %v3788_v43 }
 0xd6b   :  { %v1910_v23 = vpop.f32.mrf.mxu0  ;;  %3791 = vrcp.f32 %v2011_v39  ;;  %vm2020_vm11 = vmor %vm2018_vm9, %vm2019_vm10  ;;  %vm2033_vm15 = vweird.f32 %v2011_v39  ;;  %v2039_v15 = vand.u32 2147483648, %v2011_v39  ;;  %v2037_v59 = vand.u32 2147483647, %v2011_v39 }
 0xd6c   :  { %v2015_v56 = vsub.f32 1.0, %v2014_v45 }
 0xd6d   :  { %v2040_v25 = vor.u32 1.1754944e-38, %v2039_v15  ;;  %vm2038_vm5 = vcmp.eq.f32.partialorder %v2037_v59, 8.507059e+37 }
 0xd6e   :  { %v2016_v61 = vmul.f32 %v3788_v43, %v2015_v56 }
 0xd70   :  { %v3790_v28 = vpop.eup %3789  ;;  %v2017_v5 = vadd.f32 %v3788_v43, %v2016_v61 }
 0xd71   :  { %v3792_v37 = vpop.eup %3791  ;;  %v4621_v0 = vadd.f32 1.0, %v3790_v28 }
 0xd72   :  { %v2029_v60 = vmul.f32 %v3792_v37, %v2011_v39  ;;  %v2021_v9 = vsel %vm2020_vm11, %v3788_v43, %v2017_v5  ;;  %vm2034_vm0 = vweird.f32 %v3792_v37 }
 0xd73   :  { %3793 = vrcp.f32 %v4621_v0  ;;  %v2026_v30 = vsel %vm2023_vm14, %v2025_v6, %v2021_v9  ;;  %vm2035_vm4 = vmor %vm2033_vm15, %vm2034_vm0  ;;  %vm2048_vm6 = vweird.f32 %v4621_v0  ;;  %v2054_v43 = vand.u32 2147483648, %v4621_v0  ;;  %v3467_v9 = vld [vmem:[%s4978_s13 + $0x14] sm:$0x7] }
 0xd74   :  { %v2030_v3 = vsub.f32 1.0, %v2029_v60  ;;  %v2111_v17 = vsub.f32 1.0, %v2026_v30  ;;  %v2117_v24 = vmul.f32 %v4561_v29, %v2026_v30  ;;  %v2052_v45 = vand.u32 2147483647, %v4621_v0 }
 0xd75   :  { %v2055_v56 = vor.u32 1.1754944e-38, %v2054_v43  ;;  %v3851_v43 = vld [vmem:[%s4971_s6] sm:$0xff]  ;;  %s3884_s6 = smov 6  }
 0xd76   :  { %v2031_v10 = vmul.f32 %v3792_v37, %v2030_v3  ;;  %vm2053_vm11 = vcmp.eq.f32.partialorder %v2052_v45, 8.507059e+37 }
 0xd78   :  { %v2032_v18 = vadd.f32 %v3792_v37, %v2031_v10  ;;  %v2182_v10 = vunpack.c.l.b16 %v3467_v9 }
 0xd79   :  { %v3794_v11 = vpop.eup %3793 }
 0xd7a   :  { %v2044_v16 = vmul.f32 %v3794_v11, %v4621_v0  ;;  %vm2049_vm9 = vweird.f32 %v3794_v11 }
 0xd7b   :  { %vm2050_vm10 = vmor %vm2048_vm6, %vm2049_vm9 }
 0xd7c   :  { %v2045_v26 = vsub.f32 1.0, %v2044_v16 }
 0xdcf   :  { %v1949_v1 = vpop.f32.mrf.mxu2 }
 0xdd0   :  { %v2092_v54 = vadd.f32 %v2091_v7, %v1949_v1  ;;  %v2036_v7 = vsel %vm2035_vm4, %v3792_v37, %v2032_v18 }
 0xdd1   :  { %v2041_v33 = vsel %vm2038_vm5, %v2040_v25, %v2036_v7 }
 0xdd2   :  { %v2105_v55 = vadd.f32 %v3694_v47, %v2092_v54  ;;  %v2112_v58 = vsub.f32 1.0, %v2041_v33  ;;  %v2118_v39 = vmul.f32 %v4564_v31, %v2041_v33  ;;  %v3850_v33 = vld [vmem:[%s4968_s3] sm:$0xff] }
 0xdd4   :  { %3795 = vtanh.f32 %v2105_v55 }
 0xdd7   :  { %v1951_v12 = vpop.f32.mrf.mxu2 }
 0xdd8   :  { %v2094_v13 = vadd.f32 %v2093_v2, %v1951_v12  ;;  %v2046_v2 = vmul.f32 %v3794_v11, %v2045_v26 }
 0xdda   :  { %v3796_v20 = vpop.eup %3795  ;;  %v2106_v14 = vadd.f32 %v3694_v47, %v2094_v13  ;;  %v2047_v44 = vadd.f32 %v3794_v11, %v2046_v2  ;;  %v3695_v13 = vld [vmem:[%s4979_s14 + $0x1] ss:$0 sm:$0xff] }
 0xddb   :  { %v2114_v23 = vmul.f32 %v3796_v20, %v2111_v17 }
 0xddc   :  { %3797 = vtanh.f32 %v2106_v14  ;;  %v2051_v34 = vsel %vm2050_vm10, %v3794_v11, %v2047_v44  ;;  %v2184_v11 = vpack.c.b16 %v2182_v10, %v2182_v10 }
 0xddd   :  { %v4629_v27 = vadd.f32 %v2117_v24, %v2114_v23  ;;  %v2056_v37 = vsel %vm2053_vm11, %v2055_v56, %v2051_v34 }
 0xdde   :  { %v2113_v0 = vsub.f32 1.0, %v2056_v37  ;;  %v2119_v61 = vmul.f32 %v4571_v35, %v2056_v37  ;;  %v3647_v35 = vld [vmem:[%s4978_s13 + $0xc] sm:$0xff] }
 0xddf   :  { %v1954_v32 = vpop.f32.mrf.mxu2  ;;  %2423 = vrot.lane.b32.xlu1 %v4629_v27, %s3882_s21 }
 0xde0   :  { %v2097_v36 = vadd.f32 %v2096_v41, %v1954_v32 }
 0xde2   :  { %v3798_v38 = vpop.eup %3797  ;;  %v2107_v8 = vadd.f32 %v3694_v47, %v2097_v36 }
 0xde3   :  { %v2115_v29 = vmul.f32 %v3798_v38, %v2112_v58 }
 0xde4   :  { %3799 = vtanh.f32 %v2107_v8 }
 0xde5   :  { %v4637_v46 = vadd.f32 %v2118_v39, %v2115_v29 }
 0xde7   :  { %v1956_v41 = vpop.f32.mrf.mxu2  ;;  %2425 = vrot.lane.b32.xlu2 %v4637_v46, %s3882_s21  ;;  %v4643_v28 = vpack.c.bf16 %v4637_v46, %v4629_v27 }
 0xde9   :  { %3480 = vmatmul.msk.bf16.vlgmr.msrb.gmra.mxu0 %vm204_vm7, %v4643_v28 }
 0xdea   :  { %v3800_v31 = vpop.eup %3799 }
 0xdeb   :  { %v2116_v60 = vmul.f32 %v3800_v31, %v2113_v0 }
 0xded   :  { %v4648_v47 = vadd.f32 %v2119_v61, %v2116_v60 }
 0xdef   :  { %v4652_v1 = vpack.c.bf16 %v4648_v47, %v4648_v47 }
 0xdf9   :  { %3481 = vmatmul.msk.bf16.gmra.mxu0 %vm204_vm7, %v4652_v1 }
 0xe66   :  { %v2161_v54 = vpop.f32.mrf.mxu0 }
 0xe6e   :  { %v2163_v62 = vpop.f32.mrf.mxu0 }
 0xe6f   :  { %v2170_v55 = vpack.c.bf16 %v2163_v62, %v2161_v54 }
 0xe76   :  { %v2166_v5 = vpop.f32.mrf.mxu0 }
 0xe77   :  { %v2171_v48 = vpack.c.bf16 %v2166_v5, %v2166_v5 }
 0xe79   :  { %v2192_v3 = vsel %vm149_vm2, %v2171_v48, 0 }
 0xe7a   :  { %2200 = vmatpush.bf16.msra.mxu2 %v2192_v3 }
 0xe7e   :  { %v2168_v6 = vpop.f32.mrf.mxu0  ;;  %2201 = vmatpush.bf16.msra.mxu2 %v2170_v55 }
 0xe81   :  { %3487 = vmatmul.msk.bf16.vlgmr.msra.gmra.mxu2 %vm142_vm3, %v3647_v35 }
 0xe91   :  { %3488 = vmatmul.msk.bf16.gmra.mxu2 %vm142_vm3, %v2184_v11 }
 0xf04   :  { %v2203_v12 = vpop.f32.mrf.mxu2 }
 0xf05   :  { %v4668_v15 = vadd.f32 %v3695_v13, %v2203_v12 }
 0xf0c   :  { %v2205_v30 = vpop.f32.mrf.mxu2 }
 0xf0d   :  { %v4670_v16 = vadd.f32 %v3695_v13, %v2205_v30 }
 0xf0f   :  { %v2212_v17 = vpack.c.bf16 %v4670_v16, %v4668_v15 }
 0xf11   :  { %3489 = vmatmul.msk.bf16.vlgmr.msrb.gmra.mxu1 %vm1313_vm8, %v2212_v17 }
 0xf14   :  { %v2208_v18 = vpop.f32.mrf.mxu2 }
 0xf15   :  { %v4675_v59 = vadd.f32 %v3695_v13, %v2208_v18 }
 0xf17   :  { %v2213_v14 = vpack.c.bf16 %v4675_v59, %v4675_v59 }
 0xf1c   :  { %v2210_v20 = vpop.f32.mrf.mxu2 }
 0xf21   :  { %3490 = vmatmul.msk.bf16.gmra.mxu1 %vm1313_vm8, %v2213_v14 }
 0xf8e   :  { %v2229_v23 = vpop.f32.mrf.mxu1 }
 0xf96   :  { %v2231_v24 = vpop.f32.mrf.mxu1 }
 0xf97   :  { %v2238_v32 = vpack.c.bf16 %v2231_v24, %v2229_v23 }
 0xf9e   :  { %v2234_v25 = vpop.f32.mrf.mxu1 }
 0xf9f   :  { %v2239_v26 = vpack.c.bf16 %v2234_v25, %v2234_v25 }
 0xfa1   :  { %v2241_v7 = vsel %vm149_vm2, %v2239_v26, 0 }
 0xfa2   :  { %2249 = vmatpush.bf16.msra.mxu3 %v2241_v7 }
 0xfa6   :  { %v2236_v36 = vpop.f32.mrf.mxu1  ;;  %2250 = vmatpush.bf16.msra.mxu3 %v2238_v32 }
 0xfa9   :  { %3491 = vmatmul.msk.bf16.vlgmr.msra.gmra.mxu3 %vm142_vm3, %v3850_v33 }
 0xfb9   :  { %3492 = vmatmul.msk.bf16.gmra.mxu3 %vm142_vm3, %v4008_v19 }
0x102c   :  { %v2252_v2 = vpop.f32.mrf.mxu3 }
0x102d   :  { %v2261_v44 = vmul.f32 %v3851_v43, %v2252_v2 }
0x1034   :  { %v2254_v58 = vpop.f32.mrf.mxu3 }
0x1035   :  { %v2262_v38 = vmul.f32 %v2254_v58, %v4378_v40  ;;  %v3852_v40 = vld [vmem:[%s4972_s7] sm:$0xff] }
0x1037   :  { %v2265_v8 = vadd.f32 %v2262_v38, %v4384_v42  ;;  %v2264_v42 = vadd.f32 %v3852_v40, %v2261_v44 }
0x1039   :  { %vm2268_vm14 = vcmp.ge.f32.partialorder %v2265_v8, 0.0  ;;  %v2271_v29 = vmul.f32 0.01, %v2265_v8  ;;  %v2270_v31 = vmul.f32 0.01, %v2264_v42  ;;  %vm2267_vm0 = vcmp.ge.f32.partialorder %v2264_v42, 0.0 }
0x103b   :  { %v2274_v39 = vsel %vm2268_vm14, %v2265_v8, %v2271_v29 }
0x103c   :  { %2431 = vrot.lane.b32.xlu0 %v2274_v39, %s3882_s21  ;;  %v2257_v45 = vpop.f32.mrf.mxu3 }
0x103d   :  { %v2263_v41 = vmul.f32 %v2257_v45, %v4391_v49 }
0x103f   :  { %v2266_v19 = vadd.f32 %v2263_v41, %v4399_v52  ;;  %v2273_v52 = vsel %vm2267_vm0, %v2264_v42, %v2270_v31 }
0x1040   :  { %v4705_v60 = vpack.c.bf16 %v2274_v39, %v2273_v52 }
0x1041   :  { %vm2269_vm15 = vcmp.ge.f32.partialorder %v2266_v19, 0.0  ;;  %v2272_v56 = vmul.f32 0.01, %v2266_v19 }
0x1043   :  { %v2275_v34 = vsel %vm2269_vm15, %v2266_v19, %v2272_v56 }
0x1044   :  { %2433 = vrot.lane.b32.xlu0 %v2275_v34, %s3882_s21  ;;  %v4699_v37 = vpack.c.bf16 %v2275_v34, %v2275_v34  ;;  %v2259_v0 = vpop.f32.mrf.mxu3  ;;  %3493 = vmatpush.xpose.msk.msra.mxu0 %vm1379_vm12, %v2275_v34 }
0x1046   :  { %v2403_v49 = vsel %vm149_vm2, %v4699_v37, 0 }
0x1047   :  { %2411 = vmatpush.bf16.msrb.mxu2 %v2403_v49 }
0x1048   :  { %3494 = vmatpush.xpose.msk.msra.mxu0 %vm1379_vm12, %v2274_v39 }
0x104b   :  { %2412 = vmatpush.bf16.msrb.mxu2 %v4705_v60 }
0x104c   :  { %2429 = vrot.lane.b32.xlu0 %v2273_v52, %s3882_s21  ;;  %3495 = vmatpush.xpose.msk.msra.mxu0 %vm1379_vm12, %v2273_v52 }
0x104f   :  { %3496 = vmatmul.msk.f32.vlgmr.msra.gmra.mxu0 %vm1379_vm12, %v4629_v27  ;;  %v2424_v27 = vpop.permute.xlu1 %2423 }
0x1050   :  { %2604 = vmatpush.bf16.msrb.mxu0 %v4419_v63 }
0x1054   :  { %2605 = vmatpush.bf16.msrb.mxu0 %v4430_v4  ;;  %2427 = vrot.lane.b32.xlu0 %v4648_v47, %s3882_s21 }
0x1057   :  { %3497 = vmatmul.msk.f32.gmra.mxu0 %vm1379_vm12, %v4637_v46  ;;  %v2426_v46 = vpop.permute.xlu2 %2425 }
0x105f   :  { %3498 = vmatmul.msk.f32.gmra.mxu0 %vm1379_vm12, %v4648_v47 }
0x1067   :  { %3509 = vmatmul.msk.bf16.vlgmr.msrb.gmra.mxu0 %vm204_vm7, %v4643_v28 }
0x1077   :  { %3510 = vmatmul.msk.bf16.gmra.mxu0 %vm204_vm7, %v4652_v1 }
0x10ae   :  { %v2432_v63 = vpop.permute.xlu0 %2431 }
0x10b6   :  { %v2434_v61 = vpop.permute.xlu0 %2433 }
0x10b7   :  { %3501 = vmatpush.xpose.msk.msra.mxu1 %vm1379_vm12, %v2434_v61 }
0x10bb   :  { %3502 = vmatpush.xpose.msk.msra.mxu1 %vm1379_vm12, %v2432_v63 }
0x10be   :  { %v2430_v4 = vpop.permute.xlu0 %2429 }
0x10bf   :  { %3503 = vmatpush.xpose.msk.msra.mxu1 %vm1379_vm12, %v2430_v4 }
0x10c2   :  { %3504 = vmatmul.msk.f32.vlgmr.msra.gmra.mxu1 %vm1379_vm12, %v2424_v27 }
0x10c3   :  { %2628 = vmatpush.bf16.msrb.mxu1 %v4522_v50 }
0x10c6   :  { %v2428_v47 = vpop.permute.xlu0 %2427 }
0x10c7   :  { %2629 = vmatpush.bf16.msrb.mxu1 %v4534_v57 }
0x10ca   :  { %3505 = vmatmul.msk.f32.gmra.mxu1 %vm1379_vm12, %v2426_v46 }
0x10cc   :  { %v2311_v28 = vpop.f32.mrf.mxu0 }
0x10cd   :  { %v2320_v6 = vsel %vm142_vm3, %v2311_v28, -inf }
0x10d2   :  { %3506 = vmatmul.msk.f32.gmra.mxu1 %vm1379_vm12, %v2428_v47 }
0x10d4   :  { %v2314_v1 = vpop.f32.mrf.mxu0 }
0x10d5   :  { %v2323_v11 = vsel %vm142_vm3, %v2314_v1, -inf }
0x10dc   :  { %v4732_v54 = vpop.f32.mrf.mxu0 }
0x10dd   :  { %v2326_v8 = vsel %vm1430_vm13, %v4732_v54, -inf }
0x10e4   :  { %v4734_v62 = vpop.f32.mrf.mxu0 }
0x10ec   :  { %v4736_v5 = vpop.f32.mrf.mxu0 }
0x10f4   :  { %v4738_v50 = vpop.f32.mrf.mxu0 }
0x10fc   :  { %v2614_v48 = vpop.f32.mrf.mxu0 }
0x113f   :  { %v2464_v3 = vpop.f32.mrf.mxu1 }
0x1140   :  { %v2473_v57 = vsel %vm142_vm3, %v2464_v3, -inf }
0x1141   :  { %2474 = vmax.xlane.f32.xlu1 %v2473_v57 }
0x1147   :  { %v2467_v55 = vpop.f32.mrf.mxu1 }
0x1148   :  { %v2476_v35 = vsel %vm142_vm3, %v2467_v55, -inf }
0x1149   :  { %2477 = vmax.xlane.f32.xlu2 %v2476_v35  ;;  %2321 = vmax.xlane.f32.xlu1 %v2320_v6 }
0x114f   :  { %v2470_v9 = vpop.f32.mrf.mxu1 }
0x1150   :  { %v2479_v10 = vsel %vm1430_vm13, %v2470_v9, -inf }
0x1151   :  { %2480 = vmax.xlane.f32.xlu0 %v2479_v10  ;;  %2324 = vmax.xlane.f32.xlu2 %v2323_v11 }
0x1169   :  { %2551 = vrot.lane.b32.xlu2 %v4699_v37, %s3882_s21 }
0x11b4   :  { %v2475_v12 = vpop.xlane.xlu1 %2474 }
0x11b5   :  { %v2482_v13 = vsub.f32 %v2464_v3, %v2475_v12 }
0x11b7   :  { %v2485_v30 = vmul.f32 1.442695, %v2482_v13 }
0x11b9   :  { %3801 = vpow2.f32 %v2485_v30 }
0x11bc   :  { %v2478_v17 = vpop.xlane.xlu2 %2477  ;;  %v2322_v24 = vpop.xlane.xlu1 %2321 }
0x11bd   :  { %v2483_v18 = vsub.f32 %v2467_v55, %v2478_v17  ;;  %v2329_v33 = vsub.f32 %v2311_v28, %v2322_v24 }
0x11bf   :  { %v4747_v20 = vpop.eup %3801  ;;  %v2487_v14 = vmul.f32 1.442695, %v2483_v18  ;;  %v2332_v29 = vmul.f32 1.442695, %v2329_v33 }
0x11c0   :  { %v2491_v23 = vsel %vm142_vm3, %v4747_v20, 0.0 }
0x11c1   :  { %3803 = vpow2.f32 %v2487_v14  ;;  %2492 = vadd.xlane.f32.xlu0 %v2491_v23 }
0x11c4   :  { %v2481_v25 = vpop.xlane.xlu0 %2480  ;;  %v2325_v26 = vpop.xlane.xlu2 %2324 }
0x11c5   :  { %v2484_v7 = vsub.f32 %v2470_v9, %v2481_v25  ;;  %v2330_v32 = vsub.f32 %v2314_v1, %v2325_v26 }
0x11c7   :  { %v4751_v36 = vpop.eup %3803  ;;  %v2489_v2 = vmul.f32 1.442695, %v2484_v7  ;;  %v2334_v58 = vmul.f32 1.442695, %v2330_v32 }
0x11c8   :  { %v2494_v38 = vsel %vm142_vm3, %v4751_v36, 0.0 }
0x11c9   :  { %3805 = vpow2.f32 %v2489_v2  ;;  %2495 = vadd.xlane.f32.xlu1 %v2494_v38  ;;  %2327 = vmax.xlane.f32.xlu0 %v2326_v8 }
0x11ca   :  { %3807 = vpow2.f32 %v2334_v58 }
0x11cb   :  { %3809 = vpow2.f32 %v2332_v29 }
0x11cc   :  { %v2552_v39 = vpop.permute.xlu2 %2551 }
0x11cd   :  { %v2561_v43 = vsel %vm149_vm2, %v2552_v39, 0 }
0x11ce   :  { %2569 = vmatpush.bf16.msrb.mxu3 %v2561_v43 }
0x11cf   :  { %v4758_v44 = vpop.eup %3805 }
0x11d0   :  { %v4760_v45 = vpop.eup %3807  ;;  %v2497_v41 = vsel %vm1430_vm13, %v4758_v44, 0.0 }
0x11d1   :  { %v2341_v19 = vsel %vm142_vm3, %v4760_v45, 0.0  ;;  %2498 = vadd.xlane.f32.xlu0 %v2497_v41  ;;  %v4766_v40 = vpop.eup %3809 }
0x11d2   :  { %2342 = vadd.xlane.f32.xlu2 %v2341_v19  ;;  %v2338_v42 = vsel %vm142_vm3, %v4766_v40, 0.0 }
0x11d9   :  { %2339 = vadd.xlane.f32.xlu0 %v2338_v42 }
0x11e2   :  { %2549 = vrot.lane.b32.xlu1 %v4705_v60, %s3882_s21 }
0x11ea   :  { %3087 = vrot.lane.b32.xlu2 %v4675_v59, %s3884_s6 }
0x1234   :  { %v2493_v56 = vpop.xlane.xlu0 %2492 }
0x1235   :  { %3811 = vrcp.f32 %v2493_v56  ;;  %v2511_v55 = vand.u32 2147483648, %v2493_v56  ;;  %vm2505_vm9 = vweird.f32 %v2493_v56  ;;  %v2509_v10 = vand.u32 2147483647, %v2493_v56 }
0x1237   :  { %v2512_v23 = vor.u32 1.1754944e-38, %v2511_v55  ;;  %vm2510_vm14 = vcmp.eq.f32.partialorder %v2509_v10, 8.507059e+37 }
0x123b   :  { %v3812_v34 = vpop.eup %3811 }
0x123c   :  { %v2496_v31 = vpop.xlane.xlu1 %2495  ;;  %v2328_v0 = vpop.xlane.xlu0 %2327  ;;  %v2501_v49 = vmul.f32 %v3812_v34, %v2493_v56  ;;  %vm2506_vm5 = vweird.f32 %v3812_v34 }
0x123d   :  { %3813 = vrcp.f32 %v2496_v31  ;;  %v2331_v52 = vsub.f32 %v4732_v54, %v2328_v0  ;;  %v2526_v3 = vand.u32 2147483648, %v2496_v31  ;;  %vm2520_vm6 = vweird.f32 %v2496_v31  ;;  %vm2507_vm11 = vmor %vm2505_vm9, %vm2506_vm5 }
0x123e   :  { %v2502_v61 = vsub.f32 1.0, %v2501_v49  ;;  %v2524_v6 = vand.u32 2147483647, %v2496_v31 }
0x123f   :  { %v2336_v63 = vmul.f32 1.442695, %v2331_v52  ;;  %v2527_v18 = vor.u32 1.1754944e-38, %v2526_v3 }
0x1240   :  { %v2503_v28 = vmul.f32 %v3812_v34, %v2502_v61 }
0x1241   :  { %3815 = vpow2.f32 %v2336_v63  ;;  %v3655_v63 = vld [vmem:[%s4974_s9 + $0x48] sm:$0xff] }
0x1242   :  { %v2504_v54 = vadd.f32 %v3812_v34, %v2503_v28 }
0x1243   :  { %v3814_v4 = vpop.eup %3813 }
0x1244   :  { %v2516_v27 = vmul.f32 %v3814_v4, %v2496_v31  ;;  %v4775_v46 = vpop.xlane.xlu0 %2498  ;;  %vm2521_vm4 = vweird.f32 %v3814_v4  ;;  %v2508_v17 = vsel %vm2507_vm11, %v3812_v34, %v2504_v54 }
0x1245   :  { %v4777_v47 = vpop.xlane.xlu2 %2342  ;;  %3817 = vrcp.f32 %v4775_v46  ;;  %vm2522_vm10 = vmor %vm2520_vm6, %vm2521_vm4  ;;  %v2513_v26 = vsel %vm2510_vm14, %v2512_v23, %v2508_v17  ;;  %vm2535_vm9 = vweird.f32 %v4775_v46  ;;  %v2541_v52 = vand.u32 2147483648, %v4775_v46 }
0x1246   :  { %v2517_v59 = vsub.f32 1.0, %v2516_v27  ;;  %3819 = vrcp.f32 %v4777_v47  ;;  %v2514_v58 = vmul.f32 %v4747_v20, %v2513_v26  ;;  %v2373_v43 = vand.u32 2147483648, %v4777_v47 }
0x1247   :  { %v4781_v1 = vpop.eup %3815  ;;  %vm2367_vm0 = vweird.f32 %v4777_v47  ;;  %v2371_v19 = vand.u32 2147483647, %v4777_v47  ;;  %v2539_v61 = vand.u32 2147483647, %v4775_v46 }
0x1248   :  { %v2518_v48 = vmul.f32 %v3814_v4, %v2517_v59  ;;  %v2344_v57 = vsel %vm1430_vm13, %v4781_v1, 0.0  ;;  %vm2525_vm13 = vcmp.eq.f32.partialorder %v2524_v6, 8.507059e+37  ;;  %v2374_v49 = vor.u32 1.1754944e-38, %v2373_v43 }
0x1249   :  { %2345 = vadd.xlane.f32.xlu0 %v2344_v57 }
0x124a   :  { %v2519_v35 = vadd.f32 %v3814_v4, %v2518_v48  ;;  %v2542_v48 = vor.u32 1.1754944e-38, %v2541_v52 }
0x124b   :  { %v4785_v9 = vpop.eup %3817 }
0x124c   :  { %v3820_v11 = vpop.eup %3819  ;;  %v2523_v12 = vsel %vm2522_vm10, %v3814_v4, %v2519_v35  ;;  %v2531_v13 = vmul.f32 %v4785_v9, %v4775_v46  ;;  %v2340_v30 = vpop.xlane.xlu0 %2339  ;;  %vm2536_vm5 = vweird.f32 %v4785_v9  ;;  %vm2372_vm10 = vcmp.eq.f32.partialorder %v2371_v19, 8.507059e+37 }
0x124d   :  { %v2363_v14 = vmul.f32 %v3820_v11, %v4777_v47  ;;  %3821 = vrcp.f32 %v2340_v30  ;;  %v2528_v24 = vsel %vm2525_vm13, %v2527_v18, %v2523_v12  ;;  %vm2368_vm15 = vweird.f32 %v3820_v11  ;;  %vm4807_vm11 = vmor %vm2535_vm9, %vm2536_vm5 }
0x124e   :  { %v2532_v7 = vsub.f32 1.0, %v2531_v13  ;;  %v2529_v33 = vmul.f32 %v4751_v36, %v2528_v24  ;;  %vm4796_vm4 = vmor %vm2367_vm0, %vm2368_vm15  ;;  %v2356_v20 = vand.u32 2147483647, %v2340_v30  ;;  %v2358_v56 = vand.u32 2147483648, %v2340_v30 }
0x124f   :  { %v2364_v25 = vsub.f32 1.0, %v2363_v14  ;;  %vm2352_vm13 = vweird.f32 %v2340_v30  ;;  %vm2540_vm0 = vcmp.eq.f32.partialorder %v2539_v61, 8.507059e+37  ;;  %v3654_v61 = vld [vmem:[%s4974_s9 + $0x40] sm:$0xff] }
0x1250   :  { %v2533_v8 = vmul.f32 %v4785_v9, %v2532_v7  ;;  %v2545_v41 = vpack.c.bf16 %v2529_v33, %v2514_v58  ;;  %v2359_v28 = vor.u32 1.1754944e-38, %v2358_v56  ;;  %vm2357_vm15 = vcmp.eq.f32.partialorder %v2356_v20, 8.507059e+37 }
0x1251   :  { %v2365_v32 = vmul.f32 %v3820_v11, %v2364_v25 }
0x1252   :  { %v2534_v31 = vadd.f32 %v4785_v9, %v2533_v8 }
0x1253   :  { %v3822_v2 = vpop.eup %3821  ;;  %v2366_v38 = vadd.f32 %v3820_v11, %v2365_v32 }
0x1254   :  { %v2348_v29 = vmul.f32 %v3822_v2, %v2340_v30  ;;  %v2550_v39 = vpop.permute.xlu1 %2549  ;;  %vm2353_vm6 = vweird.f32 %v3822_v2  ;;  %v2538_v59 = vsel %vm4807_vm11, %v4785_v9, %v2534_v31  ;;  %v3651_v9 = vld [vmem:[%s4973_s8 + $0x48] sm:$0xff] }
0x1255   :  { %2570 = vmatpush.bf16.msrb.mxu3 %v2550_v39  ;;  %v2370_v34 = vsel %vm4796_vm4, %v3820_v11, %v2366_v38  ;;  %vm2354_vm14 = vmor %vm2352_vm13, %vm2353_vm6  ;;  %v2543_v55 = vsel %vm2540_vm0, %v2542_v48, %v2538_v59  ;;  %2674 = vmatpush.bf16.msra.mxu2 %v3651_v9 }
0x1256   :  { %v2349_v42 = vsub.f32 1.0, %v2348_v29  ;;  %v2375_v27 = vsel %vm2372_vm10, %v2374_v49, %v2370_v34  ;;  %v2544_v35 = vmul.f32 %v4758_v44, %v2543_v55 }
0x1257   :  { %v2376_v3 = vmul.f32 %v4760_v45, %v2375_v27  ;;  %v3650_v45 = vld [vmem:[%s4973_s8 + $0x40] sm:$0xff] }
0x1258   :  { %v2350_v0 = vmul.f32 %v3822_v2, %v2349_v42  ;;  %3507 = vmatmul.msk.bf16.vlgmr.msrb.gmra.mxu3 %vm142_vm3, %v2545_v41  ;;  %v2546_v6 = vpack.c.bf16 %v2544_v35, %v2544_v35 }
0x1259   :  { %2675 = vmatpush.bf16.msra.mxu2 %v3650_v45  ;;  %2727 = vmatpush.bf16.msra.mxu3 %v3655_v63 }
0x125a   :  { %v2351_v4 = vadd.f32 %v3822_v2, %v2350_v0 }
0x125c   :  { %v2355_v47 = vsel %vm2354_vm14, %v3822_v2, %v2351_v4 }
0x125d   :  { %v2360_v54 = vsel %vm2357_vm15, %v2359_v28, %v2355_v47  ;;  %2728 = vmatpush.bf16.msra.mxu3 %v3654_v61 }
0x125e   :  { %v2361_v57 = vmul.f32 %v4766_v40, %v2360_v54 }
0x1260   :  { %v2392_v46 = vpack.c.bf16 %v2376_v3, %v2361_v57 }
0x1262   :  { %3499 = vmatmul.msk.bf16.vlgmr.msrb.gmra.mxu2 %vm142_vm3, %v2392_v46 }
0x1268   :  { %3508 = vmatmul.msk.bf16.gmra.mxu3 %vm142_vm3, %v2546_v6 }
0x12bc   :  { %v2346_v10 = vpop.xlane.xlu0 %2345 }
0x12bd   :  { %3823 = vrcp.f32 %v2346_v10  ;;  %v2388_v13 = vand.u32 2147483648, %v2346_v10  ;;  %v2386_v30 = vand.u32 2147483647, %v2346_v10  ;;  %vm2382_vm5 = vweird.f32 %v2346_v10 }
0x12bf   :  { %v2389_v18 = vor.u32 1.1754944e-38, %v2388_v13  ;;  %vm2387_vm9 = vcmp.eq.f32.partialorder %v2386_v30, 8.507059e+37 }
0x12c3   :  { %v3824_v40 = vpop.eup %3823 }
0x12c4   :  { %v2378_v11 = vmul.f32 %v3824_v40, %v2346_v10  ;;  %vm2383_vm4 = vweird.f32 %v3824_v40 }
0x12c5   :  { %vm2384_vm6 = vmor %vm2382_vm5, %vm2383_vm4 }
0x12c6   :  { %v2379_v12 = vsub.f32 1.0, %v2378_v11 }
0x12c8   :  { %v2380_v44 = vmul.f32 %v3824_v40, %v2379_v12 }
0x12ca   :  { %v2381_v17 = vadd.f32 %v3824_v40, %v2380_v44 }
0x12cc   :  { %v2385_v14 = vsel %vm2384_vm6, %v3824_v40, %v2381_v17  ;;  %v3529_v40 = vld [vmem:[%s4975_s10 + $0xc8] sm:$0x7] }
0x12cd   :  { %v2390_v23 = vsel %vm2387_vm9, %v2389_v18, %v2385_v14  ;;  %v2831_v11 = vunpack.c.l.b16 %v3529_v40 }
0x12ce   :  { %v2391_v24 = vmul.f32 %v4781_v1, %v2390_v23  ;;  %v3656_v23 = vld [vmem:[%s4975_s10 + $0xd8] sm:$0xff] }
0x12cf   :  { %v2833_v13 = vpack.c.b16 %v2831_v11, %v2831_v11 }
0x12d0   :  { %v2393_v25 = vpack.c.bf16 %v2391_v24, %v2391_v24 }
0x12d2   :  { %3500 = vmatmul.msk.bf16.gmra.mxu2 %vm142_vm3, %v2393_v25  ;;  %v3549_v25 = vld [vmem:[%s4975_s10 + $0xe0] sm:$0x7] }
0x12db   :  { %v2572_v26 = vpop.f32.mrf.mxu3 }
0x12e2   :  { %3525 = vmatmul.msk.bf16.vlgmr.msra.gmra.mxu2 %vm204_vm7, %v4705_v60 }
0x12e3   :  { %v2574_v7 = vpop.f32.mrf.mxu3 }
0x12e4   :  { %v3680_v32 = vpack.i.bf16 %v2574_v7, %v2572_v26  ;;  %v2750_v26 = vunpack.c.l.b16 %v3549_v25  ;;  %v3653_v7 = vld [vmem:[%s4975_s10 + $0xcc] sm:$0xff] }
0x12e5   :  { %v2414_v58 = vpop.f32.mrf.mxu2 }
0x12e6   :  { %3681 = vrot.lane.b32.xlu1 %v3680_v32, %s3883_s22 }
0x12eb   :  { %v2577_v33 = vpop.f32.mrf.mxu3 }
0x12ec   :  { %2588 = vrot.lane.b32.xlu0 %v2577_v33, %s3883_s22 }
0x12ed   :  { %v2416_v1 = vpop.f32.mrf.mxu2 }
0x12f2   :  { %3526 = vmatmul.msk.bf16.gmra.mxu2 %vm204_vm7, %v4699_v37 }
0x12f3   :  { %v2579_v2 = vpop.f32.mrf.mxu3 }
0x1355   :  { %v2419_v38 = vpop.f32.mrf.mxu2 }
0x1358   :  { %v3682_v8 = vpop.permute.xlu1 %3681 }
0x1359   :  { %v3684_v29 = vunpack.i.h.bf16 %v3682_v8  ;;  %v3683_v39 = vunpack.i.l.bf16 %v3682_v8 }
0x135b   :  { %v2593_v43 = vsel %vm1379_vm12, %v2414_v58, %v3683_v39  ;;  %v2594_v60 = vsel %vm1379_vm12, %v2416_v1, %v3684_v29  ;;  %v3657_v29 = vld [vmem:[%s4975_s10 + $0xe4] sm:$0xff] }
0x135c   :  { %v2596_v41 = vpack.c.bf16 %v2594_v60, %v2593_v43  ;;  %v3558_v60 = vld [vmem:[%s4975_s10 + $0xec] sm:$0x7] }
0x135d   :  { %v2421_v19 = vpop.f32.mrf.mxu2 }
0x135e   :  { %3511 = vmatmul.msk.bf16.vlgmr.msrb.gmra.mxu1 %vm204_vm7, %v2596_v41  ;;  %v2589_v42 = vpop.permute.xlu0 %2588  ;;  %v2789_v41 = vunpack.c.l.b16 %v3558_v60 }
0x135f   :  { %v2595_v20 = vsel %vm1379_vm12, %v2419_v38, %v2589_v42 }
0x1360   :  { %v2597_v37 = vpack.c.bf16 %v2595_v20, %v2595_v20 }
0x1365   :  { %v2677_v36 = vpop.f32.mrf.mxu2 }
0x136d   :  { %v2679_v56 = vpop.f32.mrf.mxu2 }
0x136e   :  { %3512 = vmatmul.msk.bf16.gmra.mxu1 %vm204_vm7, %v2597_v37  ;;  %v2690_v49 = vpack.c.bf16 %v2679_v56, %v2677_v36  ;;  %v2791_v36 = vpack.c.b16 %v2789_v41, %v2789_v41 }
0x1375   :  { %v2682_v34 = vpop.f32.mrf.mxu2 }
0x1376   :  { %v2691_v31 = vpack.c.bf16 %v2682_v34, %v2682_v34 }
0x1378   :  { %v2841_v0 = vsel %vm149_vm2, %v2691_v31, 0  ;;  %2938 = vrot.lane.b32.xlu1 %v2691_v31, %s3880_s4 }
0x1379   :  { %2849 = vmatpush.bf16.msrb.mxu2 %v2841_v0  ;;  %v3696_v0 = vld [vmem:[%s4976_s11 + $0x8] ss:$0 sm:$0xff] }
0x137d   :  { %v2684_v52 = vpop.f32.mrf.mxu2  ;;  %2850 = vmatpush.bf16.msrb.mxu2 %v2690_v49 }
0x1380   :  { %2936 = vrot.lane.b32.xlu1 %v2690_v49, %s3880_s4 }
0x13db   :  { %v2631_v4 = vpop.f32.mrf.mxu1 }
0x13dc   :  { %v2632_v27 = vadd.f32 %v2631_v4, %v4734_v62 }
0x13de   :  { %v2640_v28 = vadd.f32 %v4556_v53, %v2632_v27 }
0x13e0   :  { %3825 = vtanh.f32 %v2640_v28 }
0x13e3   :  { %v2633_v47 = vpop.f32.mrf.mxu1 }
0x13e4   :  { %v2634_v59 = vadd.f32 %v2633_v47, %v4736_v5 }
0x13e6   :  { %v2641_v48 = vadd.f32 %v4556_v53, %v2634_v59  ;;  %v4853_v55 = vpop.eup %3825  ;;  %v3853_v53 = vld [vmem:[%s4982_s17] ss:$0 sm:$0xff] }
0x13e8   :  { %3827 = vtanh.f32 %v2641_v48 }
0x13ea   :  { %v2939_v54 = vpop.permute.xlu1 %2938 }
0x13eb   :  { %v2636_v3 = vpop.f32.mrf.mxu1  ;;  %v2948_v57 = vsel %vm149_vm2, %v2939_v54, 0 }
0x13ec   :  { %2956 = vmatpush.bf16.msrb.mxu3 %v2948_v57  ;;  %v2637_v62 = vadd.f32 %v2636_v3, %v4738_v50  ;;  %v3652_v50 = vld [vmem:[%s4975_s10 + $0xc0] sm:$0xff] }
0x13ed   :  { %3569 = vmatmul.msk.bf16.vlgmr.msrb.gmra.mxu2 %vm142_vm3, %v3652_v50 }
0x13ee   :  { %v4855_v46 = vpop.eup %3827  ;;  %v2642_v5 = vadd.f32 %v3853_v53, %v2637_v62  ;;  %v3660_v62 = vld [vmem:[%s4977_s12 + $0x28] sm:$0xff] }
0x13ef   :  { %v2701_v35 = vpack.c.bf16 %v4855_v46, %v4853_v55 }
0x13f0   :  { %3829 = vtanh.f32 %v2642_v5 }
0x13f1   :  { %3545 = vmatmul.msk.bf16.vlgmr.msra.gmra.mxu3 %vm204_vm7, %v2701_v35  ;;  %v3659_v35 = vld [vmem:[%s4977_s12 + $0x20] sm:$0xff] }
0x13f2   :  { %v2937_v6 = vpop.permute.xlu1 %2936 }
0x13f3   :  { %v2638_v9 = vpop.f32.mrf.mxu1  ;;  %2957 = vmatpush.bf16.msrb.mxu3 %v2937_v6 }
0x13f6   :  { %v4864_v10 = vpop.eup %3829 }
0x13f7   :  { %v2702_v45 = vpack.c.bf16 %v4864_v10, %v4864_v10 }
0x13fd   :  { %3570 = vmatmul.msk.bf16.gmra.mxu2 %vm142_vm3, %v2833_v13 }
0x1401   :  { %3546 = vmatmul.msk.bf16.gmra.mxu3 %vm204_vm7, %v2702_v45 }
0x1411   :  { %3579 = vmatmul.msk.bf16.vlgmr.msrb.gmra.mxu3 %vm142_vm3, %v3653_v7 }
0x1470   :  { %v2852_v2 = vpop.f32.mrf.mxu2 }
0x1474   :  { %v2730_v12 = vpop.f32.mrf.mxu3 }
0x1478   :  { %v2854_v58 = vpop.f32.mrf.mxu2 }
0x147c   :  { %v2732_v44 = vpop.f32.mrf.mxu3 }
0x147d   :  { %v2743_v30 = vpack.c.bf16 %v2732_v44, %v2730_v12  ;;  %v3697_v44 = vld [vmem:[%s4976_s11 + $0x9] ss:$0 sm:$0xff] }
0x147f   :  { %2794 = vrot.lane.b32.xlu0 %v2743_v30, %s3880_s4 }
0x1480   :  { %v2857_v39 = vpop.f32.mrf.mxu2 }
0x1484   :  { %v2735_v17 = vpop.f32.mrf.mxu3 }
0x1485   :  { %v2744_v18 = vpack.c.bf16 %v2735_v17, %v2735_v17 }
0x1487   :  { %v2760_v14 = vsel %vm149_vm2, %v2744_v18, 0  ;;  %3085 = vrot.lane.b32.xlu0 %v4670_v16, %s3884_s6  ;;  %2796 = vrot.lane.b32.xlu1 %v2744_v18, %s3880_s4  ;;  %v2752_v16 = vpack.c.b16 %v2750_v26, %v2750_v26 }
0x1488   :  { %2768 = vmatpush.bf16.msra.mxu0 %v2760_v14  ;;  %v2859_v43 = vpop.f32.mrf.mxu2 }
0x148c   :  { %v2737_v24 = vpop.f32.mrf.mxu3  ;;  %2769 = vmatpush.bf16.msra.mxu0 %v2743_v30 }
0x148f   :  { %3083 = vrot.lane.b32.xlu1 %v4668_v15, %s3884_s6  ;;  %3554 = vmatmul.msk.bf16.vlgmr.msra.gmra.mxu0 %vm142_vm3, %v3656_v23  ;;  %v3532_v15 = vld [vmem:[%s4975_s10 + $0xd4] sm:$0x7] }
0x1490   :  { %v2931_v32 = vunpack.c.l.b16 %v3532_v15  ;;  %3026 = vmatpush.bf16.msrb.mxu0 %v3660_v62 }
0x1492   :  { %v2933_v33 = vpack.c.b16 %v2931_v32, %v2931_v32 }
0x1494   :  { %3580 = vmatmul.msk.bf16.gmra.mxu3 %vm142_vm3, %v2933_v33  ;;  %v2959_v63 = vpop.f32.mrf.mxu3  ;;  %3027 = vmatpush.bf16.msrb.mxu0 %v3659_v35 }
0x149c   :  { %v2961_v27 = vpop.f32.mrf.mxu3 }
0x149f   :  { %3555 = vmatmul.msk.bf16.gmra.mxu0 %vm142_vm3, %v2752_v16 }
0x14f1   :  { %v2795_v8 = vpop.permute.xlu0 %2794 }
0x14f9   :  { %v2797_v1 = vpop.permute.xlu1 %2796  ;;  %v3086_v15 = vpop.permute.xlu0 %3085 }
0x14fa   :  { %v2806_v38 = vsel %vm149_vm2, %v2797_v1, 0 }
0x14fb   :  { %2814 = vmatpush.bf16.msra.mxu1 %v2806_v38 }
0x14ff   :  { %2815 = vmatpush.bf16.msra.mxu1 %v2795_v8 }
0x1502   :  { %3563 = vmatmul.msk.bf16.vlgmr.msra.gmra.mxu1 %vm142_vm3, %v3657_v29 }
0x150c   :  { %v2771_v19 = vpop.f32.mrf.mxu0 }
0x150d   :  { %v2853_v42 = vadd.f32 %v2852_v2, %v2771_v19 }
0x150f   :  { %v2866_v49 = vadd.f32 %v3696_v0, %v2853_v42 }
0x1511   :  { %v3572_v61 = vmul.f32 -1.442695, %v2866_v49 }
0x1512   :  { %3564 = vmatmul.msk.bf16.gmra.mxu1 %vm142_vm3, %v2791_v36 }
0x1513   :  { %3831 = vpow2.f32 %v3572_v61 }
0x1514   :  { %v2773_v20 = vpop.f32.mrf.mxu0 }
0x1515   :  { %v2855_v37 = vadd.f32 %v2854_v58, %v2773_v20 }
0x1517   :  { %v2867_v52 = vadd.f32 %v3696_v0, %v2855_v37  ;;  %v2964_v57 = vpop.f32.mrf.mxu3 }
0x1519   :  { %v3573_v4 = vmul.f32 -1.442695, %v2867_v52  ;;  %v3832_v28 = vpop.eup %3831 }
0x151a   :  { %v2878_v48 = vadd.f32 1.0, %v3832_v28 }
0x151b   :  { %3833 = vpow2.f32 %v3573_v4 }
0x151c   :  { %v2776_v56 = vpop.f32.mrf.mxu0  ;;  %3835 = vrcp.f32 %v2878_v48  ;;  %vm2886_vm12 = vweird.f32 %v2878_v48  ;;  %v2892_v24 = vand.u32 2147483648, %v2878_v48  ;;  %v2890_v26 = vand.u32 2147483647, %v2878_v48 }
0x151d   :  { %v2858_v34 = vadd.f32 %v2857_v39, %v2776_v56 }
0x151e   :  { %v2893_v1 = vor.u32 1.1754944e-38, %v2892_v24  ;;  %vm2891_vm0 = vcmp.eq.f32.partialorder %v2890_v26, 8.507059e+37 }
0x151f   :  { %v2868_v47 = vadd.f32 %v3696_v0, %v2858_v34  ;;  %v2966_v6 = vpop.f32.mrf.mxu3 }
0x1521   :  { %v3834_v59 = vpop.eup %3833  ;;  %v3574_v54 = vmul.f32 -1.442695, %v2868_v47 }
0x1522   :  { %v2879_v3 = vadd.f32 1.0, %v3834_v59  ;;  %v3836_v53 = vpop.eup %3835 }
0x1523   :  { %3837 = vpow2.f32 %v3574_v54  ;;  %v2882_v45 = vmul.f32 %v3836_v53, %v2878_v48  ;;  %vm2887_vm10 = vweird.f32 %v3836_v53 }
0x1524   :  { %v2778_v31 = vpop.f32.mrf.mxu0  ;;  %3839 = vrcp.f32 %v2879_v3  ;;  %vm2901_vm11 = vweird.f32 %v2879_v3  ;;  %v2907_v7 = vand.u32 2147483648, %v2879_v3  ;;  %vm4924_vm14 = vmor %vm2886_vm12, %vm2887_vm10  ;;  %v2905_v58 = vand.u32 2147483647, %v2879_v3 }
0x1525   :  { %v2883_v11 = vsub.f32 1.0, %v2882_v45 }
0x1526   :  { %v2908_v29 = vor.u32 1.1754944e-38, %v2907_v7  ;;  %vm2906_vm4 = vcmp.eq.f32.partialorder %v2905_v58, 8.507059e+37  ;;  %v3084_v7 = vpop.permute.xlu1 %3083  ;;  %v3105_v58 = vsel %vm1313_vm8, %v4352_v51, %v3086_v15 }
0x1527   :  { %v2884_v17 = vmul.f32 %v3836_v53, %v2883_v11 }
0x1529   :  { %v3838_v5 = vpop.eup %3837  ;;  %v2885_v25 = vadd.f32 %v3836_v53, %v2884_v17  ;;  %v3698_v17 = vld [vmem:[%s4979_s14 + $0x2] ss:$0 sm:$0xff] }
0x152a   :  { %v3840_v9 = vpop.eup %3839  ;;  %v4918_v50 = vadd.f32 1.0, %v3838_v5 }
0x152b   :  { %v2897_v40 = vmul.f32 %v3840_v9, %v2879_v3  ;;  %vm2902_vm13 = vweird.f32 %v3840_v9  ;;  %v2889_v8 = vsel %vm4924_vm14, %v3836_v53, %v2885_v25 }
0x152c   :  { %3841 = vrcp.f32 %v4918_v50  ;;  %vm2903_vm15 = vmor %vm2901_vm11, %vm2902_vm13  ;;  %v2894_v41 = vsel %vm2891_vm0, %v2893_v1, %v2889_v8  ;;  %vm2916_vm5 = vweird.f32 %v4918_v50  ;;  %v2922_v61 = vand.u32 2147483648, %v4918_v50 }
0x152d   :  { %v2898_v30 = vsub.f32 1.0, %v2897_v40  ;;  %v2979_v19 = vsub.f32 1.0, %v2894_v41  ;;  %v2985_v49 = vmul.f32 %v4853_v55, %v2894_v41  ;;  %v2920_v47 = vand.u32 2147483647, %v4918_v50 }
0x152e   :  { %v2923_v54 = vor.u32 1.1754944e-38, %v2922_v61 }
0x152f   :  { %v2899_v14 = vmul.f32 %v3840_v9, %v2898_v30  ;;  %vm2921_vm12 = vcmp.eq.f32.partialorder %v2920_v47, 8.507059e+37 }
0x1531   :  { %v2900_v2 = vadd.f32 %v3840_v9, %v2899_v14 }
0x1532   :  { %v3842_v23 = vpop.eup %3841 }
0x1533   :  { %v2912_v33 = vmul.f32 %v3842_v23, %v4918_v50  ;;  %v2904_v43 = vsel %vm2903_vm15, %v3840_v9, %v2900_v2  ;;  %vm2917_vm6 = vweird.f32 %v3842_v23 }
0x1534   :  { %v2909_v36 = vsel %vm2906_vm4, %v2908_v29, %v2904_v43  ;;  %vm2918_vm9 = vmor %vm2916_vm5, %vm2917_vm6 }
0x1535   :  { %v2913_v39 = vsub.f32 1.0, %v2912_v33  ;;  %v2980_v56 = vsub.f32 1.0, %v2909_v36 }
0x1537   :  { %v2914_v34 = vmul.f32 %v3842_v23, %v2913_v39 }
0x1539   :  { %v2915_v28 = vadd.f32 %v3842_v23, %v2914_v34 }
0x153b   :  { %v2919_v3 = vsel %vm2918_vm9, %v3842_v23, %v2915_v28 }
0x157f   :  { %v2817_v12 = vpop.f32.mrf.mxu1 }
0x1580   :  { %v2960_v13 = vadd.f32 %v2959_v63, %v2817_v12  ;;  %v2986_v63 = vmul.f32 %v4855_v46, %v2909_v36  ;;  %v3658_v12 = vld [vmem:[%s4978_s13 + $0x18] sm:$0xff] }
0x1582   :  { %v2973_v18 = vadd.f32 %v3697_v44, %v2960_v13 }
0x1584   :  { %3843 = vtanh.f32 %v2973_v18 }
0x1587   :  { %v2819_v16 = vpop.f32.mrf.mxu1 }
0x1588   :  { %v2962_v32 = vadd.f32 %v2961_v27, %v2819_v16 }
0x158a   :  { %v2974_v38 = vadd.f32 %v3697_v44, %v2962_v32  ;;  %v3844_v60 = vpop.eup %3843  ;;  %v3104_v32 = vsel %vm1313_vm8, %v4350_v22, %v3084_v7  ;;  %v3088_v22 = vpop.permute.xlu2 %3087 }
0x158b   :  { %v2982_v37 = vmul.f32 %v3844_v60, %v2979_v19  ;;  %v3106_v8 = vsel %vm1313_vm8, %v4357_v21, %v3088_v22 }
0x158c   :  { %3845 = vtanh.f32 %v2974_v38 }
0x158d   :  { %v2988_v4 = vadd.f32 %v2985_v49, %v2982_v37 }
0x158f   :  { %v2822_v42 = vpop.f32.mrf.mxu1 }
0x1590   :  { %v2965_v20 = vadd.f32 %v2964_v57, %v2822_v42  ;;  %v2924_v57 = vsel %vm2921_vm12, %v2923_v54, %v2919_v3 }
0x1591   :  { %v2981_v46 = vsub.f32 1.0, %v2924_v57  ;;  %v2987_v35 = vmul.f32 %v4864_v10, %v2924_v57  ;;  %v3584_v10 = vld [vmem:[%s4978_s13 + $0x20] sm:$0x7]  ;;  %s3886_s13 = smov [#allocation2]  }
0x1592   :  { %v3846_v31 = vpop.eup %3845  ;;  %v2975_v0 = vadd.f32 %v3697_v44, %v2965_v20  ;;  %v3050_v44 = vunpack.c.l.b16 %v3584_v10  ;;  %s3119_s14 = sshll.u32 %s3886_s13, 4  ;;  %s3120_s14 = int_to_ptr.vmem [resolvable:$true] %s3119_s14 }
0x1593   :  { %v2983_v52 = vmul.f32 %v3846_v31, %v2980_v56 }
0x1594   :  { %3847 = vtanh.f32 %v2975_v0  ;;  %v3052_v30 = vpack.c.b16 %v3050_v44, %v3050_v44 }
0x1595   :  { %v2989_v27 = vadd.f32 %v2986_v63, %v2983_v52 }
0x1597   :  { %v3000_v59 = vpack.c.bf16 %v2989_v27, %v2988_v4  ;;  %v2824_v48 = vpop.f32.mrf.mxu1 }
0x1599   :  { %3597 = vmatmul.msk.bf16.vlgmr.msrb.gmra.mxu0 %vm204_vm7, %v3000_v59 }
0x159a   :  { %v3848_v55 = vpop.eup %3847 }
0x159b   :  { %v2984_v62 = vmul.f32 %v3848_v55, %v2981_v46 }
0x159d   :  { %v2990_v53 = vadd.f32 %v2987_v35, %v2984_v62 }
0x159f   :  { %v3001_v5 = vpack.c.bf16 %v2990_v53, %v2990_v53 }
0x15a9   :  { %3598 = vmatmul.msk.bf16.gmra.mxu0 %vm204_vm7, %v3001_v5 }
0x1616   :  { %v3029_v6 = vpop.f32.mrf.mxu0 }
0x161e   :  { %v3031_v9 = vpop.f32.mrf.mxu0 }
0x161f   :  { %v3038_v11 = vpack.c.bf16 %v3031_v9, %v3029_v6 }
0x1626   :  { %v3034_v45 = vpop.f32.mrf.mxu0 }
0x1627   :  { %v3039_v50 = vpack.c.bf16 %v3034_v45, %v3034_v45 }
0x1629   :  { %v3060_v40 = vsel %vm149_vm2, %v3039_v50, 0  ;;  %vm3107_vm2 = vcmask 97280  }
0x162a   :  { %3068 = vmatpush.bf16.msrb.mxu1 %v3060_v40 }
0x162e   :  { %v3036_v13 = vpop.f32.mrf.mxu0  ;;  %3069 = vmatpush.bf16.msrb.mxu1 %v3038_v11 }
0x1631   :  { %3604 = vmatmul.msk.bf16.vlgmr.msrb.gmra.mxu1 %vm142_vm3, %v3658_v12 }
0x1641   :  { %3605 = vmatmul.msk.bf16.gmra.mxu1 %vm142_vm3, %v3052_v30  ;;  %vm3113_vm3 = vcmask 144384  }
0x16ae   :  { %v3071_v18 = vpop.f32.mrf.mxu1 }
0x16af   :  { %v3072_v14 = vadd.f32 %v3698_v17, %v3071_v18 }
0x16b1   :  { %3095 = vrot.lane.b32.xlu1 %v3072_v14, %s3885_s15 }
0x16b6   :  { %v3073_v23 = vpop.f32.mrf.mxu1 }
0x16b7   :  { %v3074_v24 = vadd.f32 %v3698_v17, %v3073_v23 }
0x16b9   :  { %3097 = vrot.lane.b32.xlu0 %v3074_v24, %s3885_s15 }
0x16be   :  { %v3076_v25 = vpop.f32.mrf.mxu1 }
0x16bf   :  { %v3077_v26 = vadd.f32 %v3698_v17, %v3076_v25 }
0x16c1   :  { %3099 = vrot.lane.b32.xlu1 %v3077_v26, %s3885_s15 }
0x16c6   :  { %v3078_v16 = vpop.f32.mrf.mxu1 }
0x1723   :  { %v3096_v33 = vpop.permute.xlu1 %3095 }
0x1724   :  { %v3108_v2 = vsel %vm3107_vm2, %v3104_v32, %v3096_v33 }
0x1725   :  { %3111 = vst.msk [vmem:[#allocation2] sm:$0xff] %vm103_vm1, %v3108_v2 }
0x172b   :  { %v3098_v1 = vpop.permute.xlu0 %3097 }
0x172c   :  { %v3109_v38 = vsel %vm3107_vm2, %v3105_v58, %v3098_v1 }
0x172d   :  { %3112 = vst.msk [vmem:[#allocation2 + $0x8] sm:$0xff] %vm103_vm1, %v3109_v38 }
0x1733   :  { %v3100_v29 = vpop.permute.xlu1 %3099 }
0x1734   :  { %v3110_v51 = vsel %vm3107_vm2, %v3106_v8, %v3100_v29 }
0x1735   :  { %3114 = vst.msk [vmem:[#allocation2 + $0x10] sm:$0x3f] %vm3113_vm3, %v3110_v51 }
0x1736   :  { %3127 = dma.vmem_to_hbm [thread:$0]  %s3120_s14, 384, %s3122_s25, [#allocation3], %s3887_s5, %s3887_s5, %s3888_s26  }
0x1737   :  { %3878 = dma.done.wait [#allocation3], 384  }
0x1738   :  { %3879 = vsyncadd [#allocation3], 4294966912 }
0x1739   :  { %3132 = vsyncpa [#allocation3], 1 }

</bundles_post_ra>
